<compile_context>
chip_gen: v7x
topology: tpu7x:2x2x1
jax: 0.10.0
libtpu: 0.0.40
codegen_flags: <defaults>
</compile_context>

<pallas_src>
import numpy as np
import jax
import jax.numpy as jnp
from jax.experimental import pallas as pl
from jax.experimental.pallas import tpu as pltpu


# ----------------------------------------------------------------------------- helpers
LANE = 128


def _round_up(x, m):
    return (x + m - 1) // m * m


def _vmem_limit_bytes():
    # Generation-aware scoped-VMEM limit: ~96 MiB on v5e/v6e (128 MiB physical),
    # ~48 MiB on v7x (64 MiB physical); conservative fallback if the query fails.
    try:
        cap = int(pltpu.get_tpu_info().vmem_capacity_bytes)
        return max(32 << 20, min(cap * 3 // 4, 100 << 20))
    except Exception:
        return 32 << 20


_VMEM_LIMIT = _vmem_limit_bytes()


def _cparams(*sem):
    return pltpu.CompilerParams(dimension_semantics=sem, vmem_limit_bytes=_VMEM_LIMIT)


# ----------------------------------------------------------------------------- encoder
def encoder_forward(patches, w_enc, w_fc, b_fc):
    """patches: (B, P, PD) bf16 -> (B, Ep) bf16.  Stand-in conv-proj + avgpool + fc."""
    B, P, PD = patches.shape
    C = w_enc.shape[1]
    Ep = w_fc.shape[1]

    # Batch TB images per grid step so the patch matmul has >=256 rows when possible.
    target = max(8, _round_up(pl.cdiv(256, P), 8))
    if B <= target:
        TB, Bpad = B, B                       # single step, block == full array
    else:
        TB, Bpad = target, _round_up(B, target)
    if Bpad != B:
        patches = jnp.pad(patches, ((0, Bpad - B), (0, 0), (0, 0)))
    rows = patches.reshape(Bpad * P, PD)      # XLA-side flatten; rows of one image contiguous

    def kernel(patch_ref, wenc_ref, wfc_ref, bfc_ref, out_ref):
        # patch-projection "conv": one big matmul, f32 accumulation
        feat = jnp.dot(patch_ref[...], wenc_ref[...],
                       preferred_element_type=jnp.float32)            # (TB*P, C)
        inv = 1.0 / P
        # AdaptiveAvgPool2d((1,1)) == mean over the P patches of each image
        pooled = jnp.concatenate(
            [jnp.sum(feat[b * P:(b + 1) * P], axis=0, keepdims=True) * inv
             for b in range(TB)], axis=0).astype(jnp.bfloat16)        # (TB, C)
        out_ref[...] = (jnp.dot(pooled, wfc_ref[...],
                                preferred_element_type=jnp.float32)
                        + bfc_ref[...]).astype(out_ref.dtype)

    cost = pl.CostEstimate(
        flops=2 * Bpad * P * PD * C + 2 * Bpad * C * Ep,
        transcendentals=0,
        bytes_accessed=Bpad * P * PD * 2 + PD * C * 2 + C * Ep * 2 + Ep * 4 + Bpad * Ep * 2)

    out = pl.pallas_call(
        kernel,
        out_shape=jax.ShapeDtypeStruct((Bpad, Ep), jnp.bfloat16),
        grid=(Bpad // TB,),
        in_specs=[pl.BlockSpec((TB * P, PD), lambda b: (b, 0)),
                  pl.BlockSpec((PD, C), lambda b: (0, 0)),
                  pl.BlockSpec((C, Ep), lambda b: (0, 0)),
                  pl.BlockSpec((1, Ep), lambda b: (0, 0))],
        out_specs=pl.BlockSpec((TB, Ep), lambda b: (b, 0)),
        compiler_params=_cparams("parallel"),
        cost_estimate=cost,
    )(rows, w_enc, w_fc, b_fc)
    return out[:B]                                                     # (B, Ep) bf16


# ----------------------------------------------------------------------------- embedding
def embedding_forward(token_ids, table3):
    """Row gather: (Ntok,) int32 -> (Ntok, Ep) bf16.  G rows DMA'd per grid step."""
    Ntok = token_ids.shape[0]
    _, _, Ep = table3.shape
    G = 8
    Npad = _round_up(Ntok, G)
    ids = jnp.pad(token_ids.astype(jnp.int32), (0, Npad - Ntok))

    def kernel(ids_ref, table_hbm, out_ref, sem):
        i = pl.program_id(0)
        copies = []
        for g in range(G):                    # G independent row DMAs, then wait all
            cp = pltpu.make_async_copy(table_hbm.at[ids_ref[i * G + g]],
                                       out_ref.at[g], sem.at[g])
            cp.start()
            copies.append(cp)
        for cp in copies:
            cp.wait()

    out = pl.pallas_call(
        kernel,
        out_shape=jax.ShapeDtypeStruct((Npad, 1, Ep), jnp.bfloat16),
        grid_spec=pltpu.PrefetchScalarGridSpec(
            num_scalar_prefetch=1,
            grid=(Npad // G,),
            in_specs=[pl.BlockSpec(memory_space=pl.ANY)],
            out_specs=pl.BlockSpec((G, 1, Ep), lambda i, ids: (i, 0, 0)),
            scratch_shapes=[pltpu.SemaphoreType.DMA((G,))]),
        compiler_params=_cparams("parallel"),
    )(ids, table3)
    return out[:Ntok, 0, :]                                            # (Ntok, Ep) bf16


# ----------------------------------------------------------------------------- LSTM
def lstm_forward(x_tm, params):
    """x_tm: (S, Bp, Ep) bf16 time-major (Bp multiple of 8).
    Returns (S*Bp, Hp) f32 top-layer hidden states. PyTorch gate order (i,f,g,o),
    zero initial state, biases b_ih+b_hh pre-merged."""
    S, Bp, Ep = x_tm.shape
    L, _, H4p = params["w_ih"].shape
    Hp = H4p // 4
    x2 = x_tm.reshape(S * Bp, Ep)

    def kernel(x_ref, wih_ref, whh_ref, b_ref, out_ref, xproj_ref):
        l = pl.program_id(0)
        wih = wih_ref[0]                      # (Ep, 4Hp) bf16  (layer l, pipelined)
        whh = whh_ref[0]                      # (Hp, 4Hp) bf16  (preloaded once per layer)
        bias = b_ref[0]                       # (1, 4Hp)  f32

        # Hoisted input projection: ONE (S*Bp, 4Hp) matmul per layer (no recurrence dep).
        @pl.when(l == 0)
        def _():
            xproj_ref[...] = jnp.dot(x_ref[...], wih,
                                     preferred_element_type=jnp.float32) + bias

        @pl.when(l > 0)
        def _():
            # previous layer's output block stays resident (constant out index_map)
            xproj_ref[...] = jnp.dot(out_ref[...].astype(jnp.bfloat16), wih,
                                     preferred_element_type=jnp.float32) + bias

        # Serial recurrence: only h @ W_hh on the critical path; unrolled for LLO overlap.
        def step(t, carry):
            h, c = carry
            row = pl.multiple_of(t * Bp, Bp)
            gates = xproj_ref[pl.ds(row, Bp), :] + jnp.dot(
                h.astype(jnp.bfloat16), whh, preferred_element_type=jnp.float32)
            i_g = jax.nn.sigmoid(gates[:, 0:Hp])
            f_g = jax.nn.sigmoid(gates[:, Hp:2 * Hp])
            g_g = jnp.tanh(gates[:, 2 * Hp:3 * Hp])
            o_g = jax.nn.sigmoid(gates[:, 3 * Hp:4 * Hp])
            c = f_g * c + i_g * g_g
            h = o_g * jnp.tanh(c)
            out_ref[pl.ds(row, Bp), :] = h    # 8-sublane dense f32 store
            return (h, c)

        init = (jnp.zeros((Bp, Hp), jnp.float32), jnp.zeros((Bp, Hp), jnp.float32))
        jax.lax.fori_loop(0, S, step, init, unroll=True)

    return pl.pallas_call(
        kernel,
        out_shape=jax.ShapeDtypeStruct((S * Bp, Hp), jnp.float32),
        grid=(L,),                            # layer axis: weights pipeline layer-by-layer
        in_specs=[pl.BlockSpec((S * Bp, Ep), lambda l: (0, 0)),
                  pl.BlockSpec((1, Ep, H4p), lambda l: (l, 0, 0)),
                  pl.BlockSpec((1, Hp, H4p), lambda l: (l, 0, 0)),
                  pl.BlockSpec((1, 1, H4p), lambda l: (l, 0, 0))],
        out_specs=pl.BlockSpec((S * Bp, Hp), lambda l: (0, 0)),
        scratch_shapes=[pltpu.VMEM((S * Bp, H4p), jnp.float32)],
        compiler_params=_cparams("arbitrary"),
    )(x2, params["w_ih"], params["w_hh"], params["b_lstm"])


# ----------------------------------------------------------------------------- fc_out
def fc_out_forward(h_packed, w_out, b_out):
    """h_packed: (N, Hp) f32 -> logits (N, Vp) f32."""
    N, Hp = h_packed.shape
    Vp = w_out.shape[1]
    if N >= 512:
        TN = 256                              # fills v6e/v7x 256-row MXU
    elif N >= 128:
        TN = 128
    else:
        TN = _round_up(max(N, 1), 8)
    Npad = _round_up(N, TN)
    if Npad != N:
        h_packed = jnp.pad(h_packed, ((0, Npad - N), (0, 0)))

    def kernel(x_ref, w_ref, b_ref, out_ref):
        out_ref[...] = (jnp.dot(x_ref[...].astype(jnp.bfloat16), w_ref[...],
                                preferred_element_type=jnp.float32)
                        + b_ref[...]).astype(out_ref.dtype)

    cost = pl.CostEstimate(
        flops=2 * Npad * Hp * Vp, transcendentals=0,
        bytes_accessed=Npad * Hp * 4 + Hp * Vp * 2 + Vp * 4 + Npad * Vp * 4)

    # TODO(synk): for very large vocab on v7x, add a second grid axis over Vp tiles.
    out = pl.pallas_call(
        kernel,
        out_shape=jax.ShapeDtypeStruct((Npad, Vp), jnp.float32),
        grid=(Npad // TN,),
        in_specs=[pl.BlockSpec((TN, Hp), lambda i: (i, 0)),
                  pl.BlockSpec((Hp, Vp), lambda i: (0, 0)),
                  pl.BlockSpec((1, Vp), lambda i: (0, 0))],
        out_specs=pl.BlockSpec((TN, Vp), lambda i: (i, 0)),
        compiler_params=_cparams("parallel"),
        cost_estimate=cost,
    )(h_packed, w_out, b_out)
    return out[:N]                                                     # (N, Vp) f32


# ----------------------------------------------------------------------------- forward
def image_to_ascii_forward(images, captions, lengths, params, patch_size=16):
    """Full forward pass. Returns (sum(lengths), vocab_size) logits, matching the
    PyTorch packed-sequence output of fc_out(hiddens[0])."""
    B, Cin, Himg, Wimg = images.shape
    gh, gw = Himg // patch_size, Wimg // patch_size
    P = gh * gw
    PD = Cin * patch_size * patch_size

    # glue: NCHW -> (B, P, Cin*ps*ps) patch tensor (rows ordered (patch_row, patch_col))
    patches = images.reshape(B, Cin, gh, patch_size, gw, patch_size)
    patches = patches.transpose(0, 2, 4, 1, 3, 5).reshape(B, P, PD).astype(jnp.bfloat16)

    features = encoder_forward(patches, params["w_enc"], params["w_fc"],
                               params["b_fc"])                         # (B, Ep) bf16

    _, T = captions.shape
    tok = captions.reshape(-1).astype(jnp.int32)                       # (B*T,)
    emb = embedding_forward(tok, params["emb_table3"])                 # (B*T, Ep) bf16
    embeddings = jnp.concatenate([features[:, None, :],
                                  emb.reshape(B, T, -1)], axis=1)      # (B, T+1, Ep)

    # torch.sort(lengths, descending=True) + reorder rows (static host-side glue)
    lengths = np.asarray(lengths)
    sorted_idx = np.argsort(-lengths, kind="stable")
    lengths_sorted = lengths[sorted_idx]
    embeddings = embeddings[jnp.asarray(sorted_idx)]

    # pad batch to a sublane multiple: dense LSTM stores; padded rows never gathered
    S = T + 1
    Bp = _round_up(B, 8)
    if Bp != B:
        embeddings = jnp.pad(embeddings, ((0, Bp - B), (0, 0), (0, 0)))

    x_tm = jnp.transpose(embeddings, (1, 0, 2))                        # (S, Bp, Ep)
    h_all = lstm_forward(x_tm, params)                                 # (S*Bp, Hp) f32

    # pack_padded_sequence(batch_first=True).data order == time-major rows b < batch_sizes[t]
    batch_sizes = [int(np.sum(lengths_sorted > t)) for t in range(int(lengths_sorted[0]))]
    pack_idx = np.array([t * Bp + b for t, bs in enumerate(batch_sizes)
                         for b in range(bs)], dtype=np.int32)
    # TODO(synk): this gather could be fused into fc_out via scalar-prefetch row DMAs to
    # save one HBM round trip; kept as XLA glue (negligible at these sizes).
    h_packed = h_all[jnp.asarray(pack_idx)]                            # (sum(lengths), Hp)

    logits = fc_out_forward(h_packed, params["w_out"], params["b_out"])  # (N, Vp) f32
    return logits[:, :params["vocab_size"]]                            # (sum(lengths), V)


# ----------------------------------------------------------------------------- params
def init_params(key, vocab_size, embed_size, hidden_size, num_layers,
                patch_dim, enc_channels=2048):
    assert embed_size == hidden_size, "weights are stacked per layer; keep E == H"
    E, H, V, L = embed_size, hidden_size, vocab_size, num_layers
    H4 = 4 * H
    ks = jax.random.split(key, 10)
    s = 0.05
    raw = {
        "w_enc": s * jax.random.normal(ks[0], (patch_dim, enc_channels), jnp.float32),
        "w_fc": s * jax.random.normal(ks[1], (enc_channels, E), jnp.float32),
        "b_fc": s * jax.random.normal(ks[2], (1, E), jnp.float32),
        "emb_table": s * jax.random.normal(ks[3], (V, E), jnp.float32),
        # PyTorch weight_ih_l{k}: (4H, in); stored pre-transposed as (L, in, 4H)
        "w_ih": s * jax.random.normal(ks[4], (L, E, H4), jnp.float32),
        "w_hh": s * jax.random.normal(ks[5], (L, H, H4), jnp.float32),
        "b_ih": s * jax.random.normal(ks[6], (L, 1, H4), jnp.float32),
        "b_hh": s * jax.random.normal(ks[7], (L, 1, H4), jnp.float32),
        "w_out": s * jax.random.normal(ks[8], (H, V), jnp.float32),
        "b_out": s * jax.random.normal(ks[9], (1, V), jnp.float32),
    }
    return prepare_params(raw, E, H, V, L)


def prepare_params(raw, E, H, V, L):
    """Pad feature dims to 128-lane multiples (gate-aware for the LSTM) and cast
    weights to bf16 (biases stay f32).  Zero padding is exact: padded hidden lanes
    stay identically zero through the LSTM and contribute nothing downstream."""
    Ep, Hp, Vp = _round_up(E, LANE), _round_up(H, LANE), _round_up(V, LANE)

    def pad_gate_cols(w, in_dim, in_pad):          # (L, in, 4H) -> (L, in_pad, 4Hp)
        w = w.reshape(L, in_dim, 4, H)
        w = jnp.pad(w, ((0, 0), (0, in_pad - in_dim), (0, 0), (0, Hp - H)))
        return w.reshape(L, in_pad, 4 * Hp)

    b = (raw["b_ih"] + raw["b_hh"]).reshape(L, 1, 4, H)                # merge biases
    b = jnp.pad(b, ((0, 0), (0, 0), (0, 0), (0, Hp - H))).reshape(L, 1, 4 * Hp)

    return {
        "w_enc": raw["w_enc"].astype(jnp.bfloat16),
        "w_fc": jnp.pad(raw["w_fc"], ((0, 0), (0, Ep - E))).astype(jnp.bfloat16),
        "b_fc": jnp.pad(raw["b_fc"], ((0, 0), (0, Ep - E))),                 # f32
        "emb_table3": jnp.pad(raw["emb_table"], ((0, 0), (0, Ep - E)))
                        .astype(jnp.bfloat16).reshape(V, 1, Ep),
        "w_ih": pad_gate_cols(raw["w_ih"], E, Ep).astype(jnp.bfloat16),
        "w_hh": pad_gate_cols(raw["w_hh"], H, Hp).astype(jnp.bfloat16),
        "b_lstm": b,                                                         # f32
        "w_out": jnp.pad(raw["w_out"], ((0, Hp - H), (0, Vp - V))).astype(jnp.bfloat16),
        "b_out": jnp.pad(raw["b_out"], ((0, 0), (0, Vp - V))),               # f32
        "vocab_size": V,
    }


# ----------------------------------------------------------------------------- main
if __name__ == "__main__":
    VOCAB, EMBED, HIDDEN, NLAYERS = 64, 32, 32, 2
    B, T = 2, 7                      # caption length 7 -> sequence length 8 after feature token
    PATCH = 16
    IMG = 32                         # 32x32 images -> 2x2 patch grid

    key = jax.random.PRNGKey(0)
    k_img, k_cap, k_par = jax.random.split(key, 3)
    images = jax.random.normal(k_img, (B, 3, IMG, IMG), jnp.float32)
    captions = jax.random.randint(k_cap, (B, T), 0, VOCAB, jnp.int32)
    lengths = [8, 6]

    params = init_params(k_par, VOCAB, EMBED, HIDDEN, NLAYERS,
                         patch_dim=3 * PATCH * PATCH)

    out = image_to_ascii_forward(images, captions, lengths, params, patch_size=PATCH)
    out = jax.block_until_ready(out)

    assert out.shape == (sum(lengths), VOCAB), out.shape
    assert bool(jnp.all(jnp.isfinite(out)))
    print("KERNEL_OK")
</pallas_src>

<mosaic_0001>
module attributes {stable_mosaic.version = 11 : i64} {
  func.func @kernel(%arg0: i32, %arg1: memref<8x768xbf16, #tpu.memory_space<vmem>>, %arg2: memref<768x2048xbf16, #tpu.memory_space<vmem>>, %arg3: memref<2048x128xbf16, #tpu.memory_space<vmem>>, %arg4: memref<1x128xf32, #tpu.memory_space<vmem>>, %arg5: memref<2x128xbf16, #tpu.memory_space<vmem>>) attributes {dimension_semantics = [#tpu.dimension_semantics<parallel>], iteration_bounds = array<i64: 1>, scalar_prefetch = 0 : i64, scratch_operands = 0 : i64, tpu.core_type = #tpu.core_type<tc>, window_params = [{transform_indices = @transform_0, window_bounds = array<i64: 8, 768>}, {pipeline_mode = #tpu.pipeline_mode<synchronous>, transform_indices = @transform_1, window_bounds = array<i64: 768, 2048>}, {pipeline_mode = #tpu.pipeline_mode<synchronous>, transform_indices = @transform_2, window_bounds = array<i64: 2048, 128>}, {pipeline_mode = #tpu.pipeline_mode<synchronous>, transform_indices = @transform_3, window_bounds = array<i64: 1, 128>}, {transform_indices = @transform_4, window_bounds = array<i64: 2, 128>}]} {
    %c0 = arith.constant 0 : index
    %c0_0 = arith.constant 0 : index
    %0 = vector.load %arg1[%c0, %c0_0] : memref<8x768xbf16, #tpu.memory_space<vmem>>, vector<8x768xbf16>
    %c0_1 = arith.constant 0 : index
    %c0_2 = arith.constant 0 : index
    %1 = vector.load %arg2[%c0_1, %c0_2] : memref<768x2048xbf16, #tpu.memory_space<vmem>>, vector<768x2048xbf16>
    %cst = arith.constant dense<0.000000e+00> : vector<8x2048xf32>
    %2 = tpu.matmul %0, %1, %cst {dimension_numbers = #tpu.dot_dimension_numbers<[1], [0], [0], [1], [0, 0, 1, 1], [], []>} : vector<8x768xbf16>, vector<768x2048xbf16>, vector<8x2048xf32> -> vector<8x2048xf32>
    %3 = vector.extract_strided_slice %2 {offsets = [0, 0], sizes = [4, 2048], strides = [1, 1]} : vector<8x2048xf32> to vector<4x2048xf32>
    %cst_3 = arith.constant dense<0.000000e+00> : vector<2048xf32>
    %4 = vector.multi_reduction <add>, %3, %cst_3 [0] : vector<4x2048xf32> to vector<2048xf32>
    %5 = vector.shape_cast %4 : vector<2048xf32> to vector<1x2048xf32>
    %cst_4 = arith.constant 2.500000e-01 : f32
    %6 = vector.broadcast %cst_4 : f32 to vector<1x2048xf32>
    %7 = arith.mulf %5, %6 : vector<1x2048xf32>
    %8 = vector.extract_strided_slice %2 {offsets = [4, 0], sizes = [4, 2048], strides = [1, 1]} : vector<8x2048xf32> to vector<4x2048xf32>
    %cst_5 = arith.constant dense<0.000000e+00> : vector<2048xf32>
    %9 = vector.multi_reduction <add>, %8, %cst_5 [0] : vector<4x2048xf32> to vector<2048xf32>
    %10 = vector.shape_cast %9 : vector<2048xf32> to vector<1x2048xf32>
    %cst_6 = arith.constant 2.500000e-01 : f32
    %11 = vector.broadcast %cst_6 : f32 to vector<1x2048xf32>
    %12 = arith.mulf %10, %11 : vector<1x2048xf32>
    %13 = tpu.concatenate %7, %12 in 0 : vector<1x2048xf32>, vector<1x2048xf32> -> vector<2x2048xf32>
    %14 = arith.truncf %13 : vector<2x2048xf32> to vector<2x2048xbf16>
    %c0_7 = arith.constant 0 : index
    %c0_8 = arith.constant 0 : index
    %15 = vector.load %arg3[%c0_7, %c0_8] : memref<2048x128xbf16, #tpu.memory_space<vmem>>, vector<2048x128xbf16>
    %cst_9 = arith.constant dense<0.000000e+00> : vector<2x128xf32>
    %16 = tpu.matmul %14, %15, %cst_9 {dimension_numbers = #tpu.dot_dimension_numbers<[1], [0], [0], [1], [0, 0, 1, 1], [], []>} : vector<2x2048xbf16>, vector<2048x128xbf16>, vector<2x128xf32> -> vector<2x128xf32>
    %c0_10 = arith.constant 0 : index
    %c0_11 = arith.constant 0 : index
    %17 = vector.load %arg4[%c0_10, %c0_11] : memref<1x128xf32, #tpu.memory_space<vmem>>, vector<1x128xf32>
    %18 = vector.broadcast %17 : vector<1x128xf32> to vector<2x128xf32>
    %19 = arith.addf %16, %18 : vector<2x128xf32>
    %20 = arith.truncf %19 : vector<2x128xf32> to vector<2x128xbf16>
    %c0_12 = arith.constant 0 : index
    %c0_13 = arith.constant 0 : index
    %21 = vector.load %arg5[%c0_12, %c0_13] : memref<2x128xbf16, #tpu.memory_space<vmem>>, vector<2x128xbf16>
    tpu.vector_store %arg5[%c0_12, %c0_13], %20 {strides = array<i32>} : memref<2x128xbf16, #tpu.memory_space<vmem>>, vector<2x128xbf16>,
    return
  }
  func.func @transform_0(%arg0: i32) -> (i32, i32) {
    %c0_i32 = arith.constant 0 : i32
    %c0_i32_0 = arith.constant 0 : i32
    return %arg0, %c0_i32 : i32, i32
  }
  func.func @transform_1(%arg0: i32) -> (i32, i32) {
    %c0_i32 = arith.constant 0 : i32
    %c0_i32_0 = arith.constant 0 : i32
    %c0_i32_1 = arith.constant 0 : i32
    return %c0_i32, %c0_i32_0 : i32, i32
  }
  func.func @transform_2(%arg0: i32) -> (i32, i32) {
    %c0_i32 = arith.constant 0 : i32
    %c0_i32_0 = arith.constant 0 : i32
    %c0_i32_1 = arith.constant 0 : i32
    return %c0_i32, %c0_i32_0 : i32, i32
  }
  func.func @transform_3(%arg0: i32) -> (i32, i32) {
    %c0_i32 = arith.constant 0 : i32
    %c0_i32_0 = arith.constant 0 : i32
    %c0_i32_1 = arith.constant 0 : i32
    return %c0_i32, %c0_i32_0 : i32, i32
  }
  func.func @transform_4(%arg0: i32) -> (i32, i32) {
    %c0_i32 = arith.constant 0 : i32
    %c0_i32_0 = arith.constant 0 : i32
    return %arg0, %c0_i32 : i32, i32
  }
}

</mosaic_0001>

<bundles_post_ra>
// kernel: tpu_custom_call.1
= control target key start
LH: loop header
LB: loop body
LE: loop exit
PB: predicated region body
PF: predicated region fallthrough
CT: control target
= control target key end

     0   :  { %9 = vsyncpa [#allocation3], 0  ;;  %s9063_s0 = inlined_call_operand.hbm [shape: bf16[8,768], index: 0, kind: input, shape index: {}]   ;;  %s9064_s1 = inlined_call_operand.hbm [shape: bf16[768,2048], index: 1, kind: input, shape index: {}]   ;;  %s9065_s2 = inlined_call_operand.hbm [shape: bf16[2048,128], index: 2, kind: input, shape index: {}]   ;;  %s9066_s3 = inlined_call_operand.hbm [shape: f32[1,128], index: 3, kind: input, shape index: {}]   ;;  %s9067_s4 = inlined_call_operand.hbm [shape: bf16[2,128], index: 4, kind: output, shape index: {}]  }
   0x1   :  { %10 = vsyncpa [#allocation6], 0 }
   0x2   :  { %11 = vsyncpa [#allocation9], 0 }
   0x3   :  { %12 = vsyncpa [#allocation4], 0  ;;  %s8797_s15 = smov [#allocation5]   ;;  %s8679_s19 = scalar_lea.hbm %s9064_s1, 98304 }
   0x4   :  { %s28_s16 = sshll.u32 %s8797_s15, 4  ;;  %p8680_p0 = scmp.ne.s32.totalorder %s9064_s1, %s8679_s19  ;;  %s29_s16 = int_to_ptr.vmem [resolvable:$true] %s28_s16 }
   0x5   :  { %p8683_p1 = scmp.lt.u32.totalorder %s8679_s19, %s9064_s1 }
   0x7   :  { %p8685_p2 = pnand %p8683_p1, %p8680_p0 }
   0x9   :  { %8688 = shalt.err (!%p8685_p2)
}
   0xa   :  { %s8689_s24 = scalar_lea.vmem %s29_s16, 98304  ;;  %p8694_p4 = scmp.lt.s32.totalorder %s29_s16, %s29_s16 }
   0xb   :  { %p8690_p3 = scmp.ne.s32.totalorder %s29_s16, %s8689_s24  ;;  %p8695_p5 = scmp.lt.s32.totalorder %s8689_s24, %s8689_s24 }
   0xd   :  { %p8696_p6 = por %p8695_p5, %p8694_p4 }
   0xf   :  { %p8697_p7 = pnand %p8696_p6, %p8690_p3 }
  0x11   :  { %8700 = shalt.err (!%p8697_p7)
}
  0x12   :  { %s8798_s25 = smov 1024   ;;  %s8799_s26 = smov 64  }
  0x13   :  { %34 = dma.hbm_to_vmem [thread:$0]  %s9064_s1, 98304, %s29_s16, [#allocation6], %s8798_s25, %s8798_s25, %s8799_s26  }
  0x14   :  { %s8800_s29 = smov [#allocation2]   ;;  %s8801_s5 = smov [#allocation7]  }
  0x15   :  { %s19_s30 = sshll.u32 %s8800_s29, 4  ;;  %s40_s6 = sshll.u32 %s8801_s5, 4  ;;  %s20_s30 = int_to_ptr.vmem [resolvable:$true] %s19_s30  ;;  %s41_s6 = int_to_ptr.vmem [resolvable:$true] %s40_s6 }
  0x16   :  { %s8701_s9 = scalar_lea.hbm %s9063_s0, 384 }
  0x17   :  { %p8702_p8 = scmp.ne.s32.totalorder %s9063_s0, %s8701_s9  ;;  %p8705_p9 = scmp.lt.u32.totalorder %s8701_s9, %s9063_s0 }
  0x19   :  { %p8707_p10 = pnand %p8705_p9, %p8702_p8 }
  0x1b   :  { %8710 = shalt.err (!%p8707_p10)
}
  0x1c   :  { %s8711_s1 = scalar_lea.vmem %s20_s30, 384  ;;  %p8716_p12 = scmp.lt.s32.totalorder %s20_s30, %s20_s30 }
  0x1d   :  { %p8712_p11 = scmp.ne.s32.totalorder %s20_s30, %s8711_s1  ;;  %p8717_p13 = scmp.lt.s32.totalorder %s8711_s1, %s8711_s1 }
  0x1f   :  { %p8718_p0 = por %p8717_p13, %p8716_p12 }
  0x21   :  { %p8719_p1 = pnand %p8718_p0, %p8712_p11 }
  0x23   :  { %8722 = shalt.err (!%p8719_p1)
}
  0x24   :  { %22 = dma.hbm_to_vmem [thread:$0]  %s9063_s0, 384, %s20_s30, [#allocation3]  }
  0x25   :  { %s8723_s18 = scalar_lea.hbm %s9065_s2, 16384 }
  0x26   :  { %p8724_p2 = scmp.ne.s32.totalorder %s9065_s2, %s8723_s18  ;;  %p8727_p3 = scmp.lt.u32.totalorder %s8723_s18, %s9065_s2 }
  0x28   :  { %p8729_p4 = pnand %p8727_p3, %p8724_p2 }
  0x2a   :  { %8732 = shalt.err (!%p8729_p4)
}
  0x2b   :  { %s8733_s23 = scalar_lea.vmem %s41_s6, 16384  ;;  %p8738_p6 = scmp.lt.s32.totalorder %s41_s6, %s41_s6 }
  0x2c   :  { %p8734_p5 = scmp.ne.s32.totalorder %s41_s6, %s8733_s23  ;;  %p8739_p7 = scmp.lt.s32.totalorder %s8733_s23, %s8733_s23 }
  0x2e   :  { %p8740_p8 = por %p8739_p7, %p8738_p6 }
  0x30   :  { %p8741_p9 = pnand %p8740_p8, %p8734_p5 }
  0x32   :  { %8744 = shalt.err (!%p8741_p9)
}
  0x33   :  { %s8802_s0 = smov 4   ;;  %s8803_s27 = smov [#allocation8]  }
  0x34   :  { %46 = dma.hbm_to_vmem [thread:$0]  %s9065_s2, 16384, %s41_s6, [#allocation6], %s8799_s26, %s8799_s26, %s8802_s0  }
  0x35   :  { %s53_s28 = sshll.u32 %s8803_s27, 4  ;;  %s8745_s5 = scalar_lea.hbm %s9066_s3, 16  ;;  %s54_s28 = int_to_ptr.vmem [resolvable:$true] %s53_s28 }
  0x36   :  { %p8746_p10 = scmp.ne.s32.totalorder %s9066_s3, %s8745_s5  ;;  %p8749_p11 = scmp.lt.u32.totalorder %s8745_s5, %s9066_s3 }
  0x38   :  { %p8751_p12 = pnand %p8749_p11, %p8746_p10 }
  0x3a   :  { %8754 = shalt.err (!%p8751_p12)
}
  0x3b   :  { %s8755_s11 = scalar_lea.vmem %s54_s28, 16  ;;  %s8759_s2 = scalar_lea.vmem %s54_s28, 32 }
  0x3c   :  { %p8756_p13 = scmp.ne.s32.totalorder %s54_s28, %s8755_s11  ;;  %p8760_p0 = scmp.lt.s32.totalorder %s54_s28, %s54_s28 }
  0x3d   :  { %p8761_p1 = scmp.lt.s32.totalorder %s8759_s2, %s8755_s11 }
  0x3f   :  { %p8762_p2 = por %p8761_p1, %p8760_p0 }
  0x41   :  { %p8763_p3 = pnand %p8762_p2, %p8756_p13 }
  0x43   :  { %8766 = shalt.err (!%p8763_p3)
}
  0x44   :  { %56 = dma.hbm_to_vmem [thread:$0]  %s9066_s3, 16, %s54_s28, [#allocation9]  }
  0x45   :  { %8789 = dma.done.wait [#allocation3], 384  }
  0x46   :  { %8790 = vsyncadd [#allocation3], 4294966912 }
  0x47   :  { %8791 = dma.done.wait [#allocation6], 114688  }
  0x48   :  { %8792 = vsyncadd [#allocation6], 4294852608 }
  0x49   :  { %8793 = dma.done.wait [#allocation9], 16  }
  0x4a   :  { %8794 = vsyncadd [#allocation9], 4294967280  ;;  %v73_v0 = vld [vmem:[#allocation5] sm:$0xff]  ;;  %v74_v2 = vld [vmem:[#allocation5 + $0x8] sm:$0xff]  ;;  %vm5686_vm0 = vcmask 1043456   ;;  %vm5991_vm1 = vcmask 1040384  }
  0x4b   :  { %v81_v1 = vld [vmem:[#allocation5 + $0x40] sm:$0xff]  ;;  %v82_v4 = vld [vmem:[#allocation5 + $0x48] sm:$0xff]  ;;  %s8804_s3 = smov [#allocation10]  }
  0x4c   :  { %v7401_v3 = vcombine.high %v73_v0, %v81_v1  ;;  %v7400_v5 = vcombine.low %v73_v0, %v81_v1  ;;  %v89_v6 = vld [vmem:[#allocation5 + $0x80] sm:$0xff]  ;;  %v7403_v8 = vcombine.high %v74_v2, %v82_v4  ;;  %v7402_v9 = vcombine.low %v74_v2, %v82_v4  ;;  %v90_v11 = vld [vmem:[#allocation5 + $0x88] sm:$0xff]  ;;  %s7383_s12 = sshll.u32 %s8804_s3, 4  ;;  %s7384_s12 = int_to_ptr.vmem [resolvable:$true] %s7383_s12 }
  0x4d   :  { %v97_v7 = vld [vmem:[#allocation5 + $0xc0] sm:$0xff]  ;;  %v98_v12 = vld [vmem:[#allocation5 + $0xc8] sm:$0xff]  ;;  %s8767_s13 = scalar_lea.vmem %s7384_s12, 16  ;;  %s8771_s1 = scalar_lea.vmem %s7384_s12, 32 }
  0x4e   :  { %v7417_v10 = vcombine.high %v89_v6, %v97_v7  ;;  %v105_v13 = vld [vmem:[#allocation5 + $0x100] sm:$0xff]  ;;  %4702 = vmatprep.subr.bf16.mxu0 %v7401_v3  ;;  %v7419_v14 = vcombine.high %v90_v11, %v98_v12  ;;  %v106_v16 = vld [vmem:[#allocation5 + $0x108] sm:$0xff]  ;;  %4825 = vmatprep.subr.bf16.mxu1 %v7403_v8  ;;  %v7416_v18 = vcombine.low %v89_v6, %v97_v7  ;;  %p8768_p4 = scmp.ne.s32.totalorder %s7384_s12, %s8767_s13  ;;  %p8772_p5 = scmp.lt.s32.totalorder %s7384_s12, %s7384_s12 }
  0x4f   :  { %v113_v15 = vld [vmem:[#allocation5 + $0x140] sm:$0xff]  ;;  %v114_v17 = vld [vmem:[#allocation5 + $0x148] sm:$0xff]  ;;  %4703 = vmatpush1.bf16.msra.mxu0 %v7400_v5  ;;  %4826 = vmatpush1.bf16.msra.mxu1 %v7402_v9  ;;  %v7418_v19 = vcombine.low %v90_v11, %v98_v12  ;;  %p8773_p6 = scmp.lt.s32.totalorder %s8771_s1, %s8767_s13 }
  0x50   :  { %4704 = vmatprep.subr.bf16.mxu0 %v7417_v10  ;;  %v7433_v20 = vcombine.high %v105_v13, %v113_v15  ;;  %4827 = vmatprep.subr.bf16.mxu1 %v7419_v14  ;;  %v7435_v21 = vcombine.high %v106_v16, %v114_v17  ;;  %v121_v22 = vld [vmem:[#allocation5 + $0x180] sm:$0xff]  ;;  %v122_v24 = vld [vmem:[#allocation5 + $0x188] sm:$0xff]  ;;  %v7432_v26 = vcombine.low %v105_v13, %v113_v15 }
  0x51   :  { %v129_v23 = vld [vmem:[#allocation5 + $0x1c0] sm:$0xff]  ;;  %v130_v25 = vld [vmem:[#allocation5 + $0x1c8] sm:$0xff]  ;;  %v7434_v27 = vcombine.low %v106_v16, %v114_v17  ;;  %p8774_p7 = por %p8773_p6, %p8772_p5 }
  0x52   :  { %v7449_v28 = vcombine.high %v121_v22, %v129_v23  ;;  %v7451_v29 = vcombine.high %v122_v24, %v130_v25  ;;  %v137_v30 = vld [vmem:[#allocation5 + $0x200] sm:$0xff]  ;;  %v138_v32 = vld [vmem:[#allocation5 + $0x208] sm:$0xff]  ;;  %v7448_v34 = vcombine.low %v121_v22, %v129_v23  ;;  %v7450_v35 = vcombine.low %v122_v24, %v130_v25 }
  0x53   :  { %4705 = vmatpush1.bf16.msra.mxu0 %v7416_v18  ;;  %4828 = vmatpush1.bf16.msra.mxu1 %v7418_v19  ;;  %v145_v31 = vld [vmem:[#allocation5 + $0x240] sm:$0xff]  ;;  %v146_v33 = vld [vmem:[#allocation5 + $0x248] sm:$0xff]  ;;  %p8775_p8 = pnand %p8774_p7, %p8768_p4 }
  0x54   :  { %4706 = vmatprep.subr.bf16.mxu0 %v7433_v20  ;;  %4829 = vmatprep.subr.bf16.mxu1 %v7435_v21  ;;  %v7465_v36 = vcombine.high %v137_v30, %v145_v31  ;;  %v7467_v37 = vcombine.high %v138_v32, %v146_v33  ;;  %v153_v38 = vld [vmem:[#allocation5 + $0x280] sm:$0xff]  ;;  %v154_v40 = vld [vmem:[#allocation5 + $0x288] sm:$0xff]  ;;  %v7464_v42 = vcombine.low %v137_v30, %v145_v31 }
  0x55   :  { %v161_v39 = vld [vmem:[#allocation5 + $0x2c0] sm:$0xff]  ;;  %v162_v41 = vld [vmem:[#allocation5 + $0x2c8] sm:$0xff]  ;;  %v7466_v43 = vcombine.low %v138_v32, %v146_v33 }
  0x56   :  { %v7481_v44 = vcombine.high %v153_v38, %v161_v39  ;;  %v7483_v45 = vcombine.high %v154_v40, %v162_v41  ;;  %v169_v46 = vld [vmem:[#allocation5 + $0x300] sm:$0xff]  ;;  %v170_v48 = vld [vmem:[#allocation5 + $0x308] sm:$0xff]  ;;  %v7480_v50 = vcombine.low %v153_v38, %v161_v39  ;;  %v7482_v51 = vcombine.low %v154_v40, %v162_v41 }
  0x57   :  { %4707 = vmatpush1.bf16.msra.mxu0 %v7432_v26  ;;  %4830 = vmatpush1.bf16.msra.mxu1 %v7434_v27  ;;  %v177_v47 = vld [vmem:[#allocation5 + $0x340] sm:$0xff]  ;;  %v178_v49 = vld [vmem:[#allocation5 + $0x348] sm:$0xff] }
  0x58   :  { %4708 = vmatprep.subr.bf16.mxu0 %v7449_v28  ;;  %4831 = vmatprep.subr.bf16.mxu1 %v7451_v29  ;;  %v7497_v52 = vcombine.high %v169_v46, %v177_v47  ;;  %v8881_v53 = vld [vmem:[#allocation2] sm:$0xff]  ;;  %v7499_v54 = vcombine.high %v170_v48, %v178_v49  ;;  %v185_v55 = vld [vmem:[#allocation5 + $0x380] sm:$0xff]  ;;  %v7496_v60 = vcombine.low %v169_v46, %v177_v47 }
  0x59   :  { %v193_v56 = vld [vmem:[#allocation5 + $0x3c0] sm:$0xff]  ;;  %v8885_v57 = vcombine.high %v8881_v53, %v8881_v53  ;;  %v186_v58 = vld [vmem:[#allocation5 + $0x388] sm:$0xff]  ;;  %v7498_v61 = vcombine.low %v170_v48, %v178_v49 }
  0x5a   :  { %v194_v59 = vld [vmem:[#allocation5 + $0x3c8] sm:$0xff]  ;;  %v7513_v62 = vcombine.high %v185_v55, %v193_v56  ;;  %v201_v0 = vld [vmem:[#allocation5 + $0x400] sm:$0xff]  ;;  %v7512_v4 = vcombine.low %v185_v55, %v193_v56 }
  0x5b   :  { %4709 = vmatpush1.bf16.msra.mxu0 %v7448_v34  ;;  %4832 = vmatpush1.bf16.msra.mxu1 %v7450_v35  ;;  %v7515_v63 = vcombine.high %v186_v58, %v194_v59  ;;  %v209_v1 = vld [vmem:[#allocation5 + $0x440] sm:$0xff]  ;;  %v202_v2 = vld [vmem:[#allocation5 + $0x408] sm:$0xff]  ;;  %v7514_v5 = vcombine.low %v186_v58, %v194_v59 }
  0x5c   :  { %4710 = vmatprep.subr.bf16.mxu0 %v7465_v36  ;;  %4833 = vmatprep.subr.bf16.mxu1 %v7467_v37  ;;  %v210_v3 = vld [vmem:[#allocation5 + $0x448] sm:$0xff]  ;;  %v7529_v6 = vcombine.high %v201_v0, %v209_v1  ;;  %v217_v8 = vld [vmem:[#allocation5 + $0x480] sm:$0xff]  ;;  %v7528_v12 = vcombine.low %v201_v0, %v209_v1 }
  0x5d   :  { %4734 = vmatprep.mubr.bf16.mxu0 %v8885_v57  ;;  %4857 = vmatprep.mubr.bf16.mxu1 %v8885_v57  ;;  %v7531_v7 = vcombine.high %v202_v2, %v210_v3  ;;  %v225_v9 = vld [vmem:[#allocation5 + $0x4c0] sm:$0xff]  ;;  %v218_v10 = vld [vmem:[#allocation5 + $0x488] sm:$0xff]  ;;  %v7530_v13 = vcombine.low %v202_v2, %v210_v3 }
  0x5e   :  { %v226_v11 = vld [vmem:[#allocation5 + $0x4c8] sm:$0xff]  ;;  %v7545_v14 = vcombine.high %v217_v8, %v225_v9  ;;  %v233_v16 = vld [vmem:[#allocation5 + $0x500] sm:$0xff]  ;;  %v7544_v20 = vcombine.low %v217_v8, %v225_v9 }
  0x5f   :  { %4711 = vmatpush1.bf16.msra.mxu0 %v7464_v42  ;;  %4834 = vmatpush1.bf16.msra.mxu1 %v7466_v43  ;;  %v7547_v15 = vcombine.high %v218_v10, %v226_v11  ;;  %v241_v17 = vld [vmem:[#allocation5 + $0x540] sm:$0xff]  ;;  %v234_v18 = vld [vmem:[#allocation5 + $0x508] sm:$0xff]  ;;  %v7546_v21 = vcombine.low %v218_v10, %v226_v11 }
  0x60   :  { %4712 = vmatprep.subr.bf16.mxu0 %v7481_v44  ;;  %4835 = vmatprep.subr.bf16.mxu1 %v7483_v45  ;;  %v242_v19 = vld [vmem:[#allocation5 + $0x548] sm:$0xff]  ;;  %v7561_v22 = vcombine.high %v233_v16, %v241_v17  ;;  %v249_v24 = vld [vmem:[#allocation5 + $0x580] sm:$0xff]  ;;  %v7560_v28 = vcombine.low %v233_v16, %v241_v17 }
  0x61   :  { %v7563_v23 = vcombine.high %v234_v18, %v242_v19  ;;  %v257_v25 = vld [vmem:[#allocation5 + $0x5c0] sm:$0xff]  ;;  %v250_v26 = vld [vmem:[#allocation5 + $0x588] sm:$0xff]  ;;  %v7562_v29 = vcombine.low %v234_v18, %v242_v19 }
  0x62   :  { %v258_v27 = vld [vmem:[#allocation5 + $0x5c8] sm:$0xff]  ;;  %v7577_v30 = vcombine.high %v249_v24, %v257_v25  ;;  %v265_v32 = vld [vmem:[#allocation5 + $0x600] sm:$0xff]  ;;  %v7576_v36 = vcombine.low %v249_v24, %v257_v25 }
  0x63   :  { %4713 = vmatpush1.bf16.msra.mxu0 %v7480_v50  ;;  %4836 = vmatpush1.bf16.msra.mxu1 %v7482_v51  ;;  %v7579_v31 = vcombine.high %v250_v26, %v258_v27  ;;  %v273_v33 = vld [vmem:[#allocation5 + $0x640] sm:$0xff]  ;;  %v266_v34 = vld [vmem:[#allocation5 + $0x608] sm:$0xff]  ;;  %v7578_v37 = vcombine.low %v250_v26, %v258_v27 }
  0x64   :  { %4714 = vmatprep.subr.bf16.mxu0 %v7497_v52  ;;  %4837 = vmatprep.subr.bf16.mxu1 %v7499_v54  ;;  %v274_v35 = vld [vmem:[#allocation5 + $0x648] sm:$0xff]  ;;  %v7593_v38 = vcombine.high %v265_v32, %v273_v33  ;;  %v281_v40 = vld [vmem:[#allocation5 + $0x680] sm:$0xff]  ;;  %v7592_v44 = vcombine.low %v265_v32, %v273_v33 }
  0x65   :  { %v7595_v39 = vcombine.high %v266_v34, %v274_v35  ;;  %v289_v41 = vld [vmem:[#allocation5 + $0x6c0] sm:$0xff]  ;;  %v282_v42 = vld [vmem:[#allocation5 + $0x688] sm:$0xff]  ;;  %v7594_v45 = vcombine.low %v266_v34, %v274_v35 }
  0x66   :  { %v290_v43 = vld [vmem:[#allocation5 + $0x6c8] sm:$0xff]  ;;  %v7609_v46 = vcombine.high %v281_v40, %v289_v41  ;;  %v297_v48 = vld [vmem:[#allocation5 + $0x700] sm:$0xff]  ;;  %v7608_v52 = vcombine.low %v281_v40, %v289_v41 }
  0x67   :  { %4715 = vmatpush1.bf16.msra.mxu0 %v7496_v60  ;;  %4838 = vmatpush1.bf16.msra.mxu1 %v7498_v61  ;;  %v7611_v47 = vcombine.high %v282_v42, %v290_v43  ;;  %v305_v49 = vld [vmem:[#allocation5 + $0x740] sm:$0xff]  ;;  %v298_v50 = vld [vmem:[#allocation5 + $0x708] sm:$0xff]  ;;  %v7610_v54 = vcombine.low %v282_v42, %v290_v43 }
  0x68   :  { %4716 = vmatprep.subr.bf16.mxu0 %v7513_v62  ;;  %4839 = vmatprep.subr.bf16.mxu1 %v7515_v63  ;;  %v306_v51 = vld [vmem:[#allocation5 + $0x748] sm:$0xff]  ;;  %v7625_v55 = vcombine.high %v297_v48, %v305_v49  ;;  %v313_v58 = vld [vmem:[#allocation5 + $0x780] sm:$0xff]  ;;  %v7624_v62 = vcombine.low %v297_v48, %v305_v49 }
  0x69   :  { %v7627_v56 = vcombine.high %v298_v50, %v306_v51  ;;  %v321_v59 = vld [vmem:[#allocation5 + $0x7c0] sm:$0xff]  ;;  %v314_v60 = vld [vmem:[#allocation5 + $0x788] sm:$0xff]  ;;  %v7626_v63 = vcombine.low %v298_v50, %v306_v51 }
  0x6a   :  { %v322_v61 = vld [vmem:[#allocation5 + $0x7c8] sm:$0xff]  ;;  %v7641_v0 = vcombine.high %v313_v58, %v321_v59  ;;  %v329_v2 = vld [vmem:[#allocation5 + $0x800] sm:$0xff] }
  0x6b   :  { %4717 = vmatpush1.bf16.msra.mxu0 %v7512_v4  ;;  %4840 = vmatpush1.bf16.msra.mxu1 %v7514_v5  ;;  %v7643_v1 = vcombine.high %v314_v60, %v322_v61  ;;  %v337_v3 = vld [vmem:[#allocation5 + $0x840] sm:$0xff]  ;;  %v330_v4 = vld [vmem:[#allocation5 + $0x808] sm:$0xff] }
  0x6c   :  { %4718 = vmatprep.subr.bf16.mxu0 %v7529_v6  ;;  %4841 = vmatprep.subr.bf16.mxu1 %v7531_v7  ;;  %v338_v5 = vld [vmem:[#allocation5 + $0x848] sm:$0xff]  ;;  %v7640_v6 = vcombine.low %v313_v58, %v321_v59  ;;  %v7642_v7 = vcombine.low %v314_v60, %v322_v61  ;;  %v7657_v8 = vcombine.high %v329_v2, %v337_v3  ;;  %v345_v10 = vld [vmem:[#allocation5 + $0x880] sm:$0xff] }
  0x6d   :  { %v7659_v9 = vcombine.high %v330_v4, %v338_v5  ;;  %v353_v11 = vld [vmem:[#allocation5 + $0x8c0] sm:$0xff]  ;;  %v7656_v16 = vcombine.low %v329_v2, %v337_v3  ;;  %v7658_v17 = vcombine.low %v330_v4, %v338_v5 }
  0x6e   :  { %v7673_v18 = vcombine.high %v345_v10, %v353_v11  ;;  %v361_v19 = vld [vmem:[#allocation5 + $0x900] sm:$0xff]  ;;  %v7672_v24 = vcombine.low %v345_v10, %v353_v11 }
  0x6f   :  { %4719 = vmatpush1.bf16.msra.mxu0 %v7528_v12  ;;  %4842 = vmatpush1.bf16.msra.mxu1 %v7530_v13  ;;  %v8891_v12 = vcombine.low %v8881_v53, %v8881_v53  ;;  %v346_v13 = vld [vmem:[#allocation5 + $0x888] sm:$0xff]  ;;  %v377_v27 = vld [vmem:[#allocation5 + $0x980] sm:$0xff] }
  0x70   :  { %4720 = vmatprep.subr.bf16.mxu0 %v7545_v14  ;;  %4843 = vmatprep.subr.bf16.mxu1 %v7547_v15  ;;  %v354_v14 = vld [vmem:[#allocation5 + $0x8c8] sm:$0xff]  ;;  %v8893_v15 = vld [vmem:[#allocation2 + $0x8] sm:$0xff]  ;;  %v393_v35 = vld [vmem:[#allocation5 + $0xa00] sm:$0xff] }
  0x71   :  { %v8897_v53 = vcombine.high %v8893_v15, %v8893_v15  ;;  %v7674_v25 = vcombine.low %v346_v13, %v354_v14  ;;  %v409_v43 = vld [vmem:[#allocation5 + $0xa80] sm:$0xff] }
  0x72   :  { %v425_v51 = vld [vmem:[#allocation5 + $0xb00] sm:$0xff] }
  0x73   :  { %4721 = vmatpush1.bf16.msra.mxu0 %v7544_v20  ;;  %4844 = vmatpush1.bf16.msra.mxu1 %v7546_v21  ;;  %v369_v20 = vld [vmem:[#allocation5 + $0x940] sm:$0xff]  ;;  %v362_v21 = vld [vmem:[#allocation5 + $0x908] sm:$0xff] }
  0x74   :  { %4722 = vmatprep.subr.bf16.mxu0 %v7561_v22  ;;  %4845 = vmatprep.subr.bf16.mxu1 %v7563_v23  ;;  %v7675_v22 = vcombine.high %v346_v13, %v354_v14  ;;  %v370_v23 = vld [vmem:[#allocation5 + $0x948] sm:$0xff]  ;;  %v7689_v26 = vcombine.high %v361_v19, %v369_v20  ;;  %v7688_v32 = vcombine.low %v361_v19, %v369_v20  ;;  %v441_v61 = vld [vmem:[#allocation5 + $0xb80] sm:$0xff] }
  0x75   :  { %v7690_v33 = vcombine.low %v362_v21, %v370_v23  ;;  %v457_v5 = vld [vmem:[#allocation5 + $0xc00] sm:$0xff]  ;;  %v482_v19 = vld [vmem:[#allocation5 + $0xcc8] sm:$0xff] }
  0x76   :  { %v473_v14 = vld [vmem:[#allocation5 + $0xc80] sm:$0xff] }
  0x77   :  { %4723 = vmatpush1.bf16.msra.mxu0 %v7560_v28  ;;  %4846 = vmatpush1.bf16.msra.mxu1 %v7562_v29  ;;  %v385_v28 = vld [vmem:[#allocation5 + $0x9c0] sm:$0xff]  ;;  %v378_v29 = vld [vmem:[#allocation5 + $0x988] sm:$0xff] }
  0x78   :  { %4724 = vmatprep.subr.bf16.mxu0 %v7577_v30  ;;  %4847 = vmatprep.subr.bf16.mxu1 %v7579_v31  ;;  %v7691_v30 = vcombine.high %v362_v21, %v370_v23  ;;  %v386_v31 = vld [vmem:[#allocation5 + $0x9c8] sm:$0xff]  ;;  %v7705_v34 = vcombine.high %v377_v27, %v385_v28  ;;  %v7704_v40 = vcombine.low %v377_v27, %v385_v28  ;;  %v489_v23 = vld [vmem:[#allocation5 + $0xd00] sm:$0xff] }
  0x79   :  { %v7706_v41 = vcombine.low %v378_v29, %v386_v31  ;;  %v498_v27 = vld [vmem:[#allocation5 + $0xd48] sm:$0xff] }
  0x7b   :  { %4725 = vmatpush1.bf16.msra.mxu0 %v7576_v36  ;;  %4848 = vmatpush1.bf16.msra.mxu1 %v7578_v37  ;;  %v401_v36 = vld [vmem:[#allocation5 + $0xa40] sm:$0xff]  ;;  %v394_v37 = vld [vmem:[#allocation5 + $0xa08] sm:$0xff] }
  0x7c   :  { %4726 = vmatprep.subr.bf16.mxu0 %v7593_v38  ;;  %4849 = vmatprep.subr.bf16.mxu1 %v7595_v39  ;;  %v7707_v38 = vcombine.high %v378_v29, %v386_v31  ;;  %v402_v39 = vld [vmem:[#allocation5 + $0xa48] sm:$0xff]  ;;  %v7721_v42 = vcombine.high %v393_v35, %v401_v36  ;;  %v7720_v48 = vcombine.low %v393_v35, %v401_v36  ;;  %v505_v31 = vld [vmem:[#allocation5 + $0xd80] sm:$0xff] }
  0x7d   :  { %v7722_v49 = vcombine.low %v394_v37, %v402_v39  ;;  %v514_v35 = vld [vmem:[#allocation5 + $0xdc8] sm:$0xff] }
  0x7f   :  { %4727 = vmatpush1.bf16.msra.mxu0 %v7592_v44  ;;  %4850 = vmatpush1.bf16.msra.mxu1 %v7594_v45  ;;  %v417_v44 = vld [vmem:[#allocation5 + $0xac0] sm:$0xff]  ;;  %v410_v45 = vld [vmem:[#allocation5 + $0xa88] sm:$0xff] }
  0x80   :  { %4728 = vmatprep.subr.bf16.mxu0 %v7609_v46  ;;  %4851 = vmatprep.subr.bf16.mxu1 %v7611_v47  ;;  %v7723_v46 = vcombine.high %v394_v37, %v402_v39  ;;  %v418_v47 = vld [vmem:[#allocation5 + $0xac8] sm:$0xff]  ;;  %v7737_v50 = vcombine.high %v409_v43, %v417_v44  ;;  %v7736_v58 = vcombine.low %v409_v43, %v417_v44  ;;  %v521_v39 = vld [vmem:[#allocation5 + $0xe00] sm:$0xff] }
  0x81   :  { %v7738_v59 = vcombine.low %v410_v45, %v418_v47  ;;  %v530_v43 = vld [vmem:[#allocation5 + $0xe48] sm:$0xff] }
  0x83   :  { %4729 = vmatpush1.bf16.msra.mxu0 %v7608_v52  ;;  %4852 = vmatpush1.bf16.msra.mxu1 %v7610_v54  ;;  %v433_v52 = vld [vmem:[#allocation5 + $0xb40] sm:$0xff]  ;;  %v426_v54 = vld [vmem:[#allocation5 + $0xb08] sm:$0xff] }
  0x84   :  { %4730 = vmatprep.subr.bf16.mxu0 %v7625_v55  ;;  %4853 = vmatprep.subr.bf16.mxu1 %v7627_v56  ;;  %v7739_v55 = vcombine.high %v410_v45, %v418_v47  ;;  %v434_v56 = vld [vmem:[#allocation5 + $0xb48] sm:$0xff]  ;;  %v7753_v60 = vcombine.high %v425_v51, %v433_v52  ;;  %v7752_v2 = vcombine.low %v425_v51, %v433_v52  ;;  %v537_v47 = vld [vmem:[#allocation5 + $0xe80] sm:$0xff] }
  0x85   :  { %v7754_v3 = vcombine.low %v426_v54, %v434_v56  ;;  %v546_v51 = vld [vmem:[#allocation5 + $0xec8] sm:$0xff] }
  0x87   :  { %4731 = vmatpush1.bf16.msra.mxu0 %v7624_v62  ;;  %4854 = vmatpush1.bf16.msra.mxu1 %v7626_v63  ;;  %v449_v62 = vld [vmem:[#allocation5 + $0xbc0] sm:$0xff]  ;;  %v442_v63 = vld [vmem:[#allocation5 + $0xb88] sm:$0xff] }
  0x88   :  { %4732 = vmatprep.subr.bf16.mxu0 %v7641_v0  ;;  %4855 = vmatprep.subr.bf16.mxu1 %v7643_v1  ;;  %v7755_v0 = vcombine.high %v426_v54, %v434_v56  ;;  %v450_v1 = vld [vmem:[#allocation5 + $0xbc8] sm:$0xff]  ;;  %v7769_v4 = vcombine.high %v441_v61, %v449_v62  ;;  %v7768_v10 = vcombine.low %v441_v61, %v449_v62  ;;  %v553_v56 = vld [vmem:[#allocation5 + $0xf00] sm:$0xff] }
  0x89   :  { %v7770_v11 = vcombine.low %v442_v63, %v450_v1  ;;  %v562_v61 = vld [vmem:[#allocation5 + $0xf48] sm:$0xff] }
  0x8b   :  { %4733 = vmatpush1.bf16.msra.mxu0 %v7640_v6  ;;  %4856 = vmatpush1.bf16.msra.mxu1 %v7642_v7  ;;  %v465_v6 = vld [vmem:[#allocation5 + $0xc40] sm:$0xff]  ;;  %v458_v7 = vld [vmem:[#allocation5 + $0xc08] sm:$0xff] }
  0x8c   :  { %4743 = vmatprep.subr.bf16.mxu0 %v7657_v8  ;;  %4866 = vmatprep.subr.bf16.mxu1 %v7659_v9  ;;  %v7771_v8 = vcombine.high %v442_v63, %v450_v1  ;;  %v466_v9 = vld [vmem:[#allocation5 + $0xc48] sm:$0xff]  ;;  %v7785_v13 = vcombine.high %v457_v5, %v465_v6  ;;  %v7784_v20 = vcombine.low %v457_v5, %v465_v6  ;;  %v569_v1 = vld [vmem:[#allocation5 + $0xf80] sm:$0xff] }
  0x8d   :  { %v7786_v21 = vcombine.low %v458_v7, %v466_v9  ;;  %v578_v5 = vld [vmem:[#allocation5 + $0xfc8] sm:$0xff] }
  0x8e   :  { %4735 = vmatmul.mubr.bf16.vlgmr.msra.gmra.mrb[0].mxu0 %v8891_v12  ;;  %4858 = vmatmul.mubr.bf16.vlgmr.msra.gmra.mrb[0].mxu1 %v8891_v12 }
  0x8f   :  { %4744 = vmatpush1.bf16.msra.mxu0 %v7656_v16  ;;  %4867 = vmatpush1.bf16.msra.mxu1 %v7658_v17  ;;  %v481_v16 = vld [vmem:[#allocation5 + $0xcc0] sm:$0xff]  ;;  %v474_v17 = vld [vmem:[#allocation5 + $0xc88] sm:$0xff] }
  0x90   :  { %4745 = vmatprep.subr.bf16.mxu0 %v7673_v18  ;;  %4868 = vmatprep.subr.bf16.mxu1 %v7675_v22  ;;  %v7787_v18 = vcombine.high %v458_v7, %v466_v9  ;;  %v7801_v22 = vcombine.high %v473_v14, %v481_v16  ;;  %v7800_v28 = vcombine.low %v473_v14, %v481_v16  ;;  %v585_v9 = vld [vmem:[#allocation5 + $0x1000] sm:$0xff]  ;;  %v594_v14 = vld [vmem:[#allocation5 + $0x1048] sm:$0xff] }
  0x91   :  { %4775 = vmatprep.mubr.bf16.mxu0 %v8897_v53  ;;  %4898 = vmatprep.mubr.bf16.mxu1 %v8897_v53  ;;  %v7802_v29 = vcombine.low %v474_v17, %v482_v19 }
  0x93   :  { %4746 = vmatpush1.bf16.msra.mxu0 %v7672_v24  ;;  %4869 = vmatpush1.bf16.msra.mxu1 %v7674_v25  ;;  %v497_v24 = vld [vmem:[#allocation5 + $0xd40] sm:$0xff]  ;;  %v490_v25 = vld [vmem:[#allocation5 + $0xd08] sm:$0xff] }
  0x94   :  { %4747 = vmatprep.subr.bf16.mxu0 %v7689_v26  ;;  %4870 = vmatprep.subr.bf16.mxu1 %v7691_v30  ;;  %v7803_v26 = vcombine.high %v474_v17, %v482_v19  ;;  %v7817_v30 = vcombine.high %v489_v23, %v497_v24  ;;  %v7816_v36 = vcombine.low %v489_v23, %v497_v24  ;;  %v601_v17 = vld [vmem:[#allocation5 + $0x1080] sm:$0xff]  ;;  %v8903_v24 = vld [vmem:[#allocation2 + $0x10] sm:$0xff] }
  0x95   :  { %v7818_v37 = vcombine.low %v490_v25, %v498_v27 }
  0x97   :  { %4748 = vmatpush1.bf16.msra.mxu0 %v7688_v32  ;;  %4871 = vmatpush1.bf16.msra.mxu1 %v7690_v33  ;;  %v513_v32 = vld [vmem:[#allocation5 + $0xdc0] sm:$0xff]  ;;  %v506_v33 = vld [vmem:[#allocation5 + $0xd88] sm:$0xff] }
  0x98   :  { %4749 = vmatprep.subr.bf16.mxu0 %v7705_v34  ;;  %4872 = vmatprep.subr.bf16.mxu1 %v7707_v38  ;;  %v7819_v34 = vcombine.high %v490_v25, %v498_v27  ;;  %v7833_v38 = vcombine.high %v505_v31, %v513_v32  ;;  %v7832_v44 = vcombine.low %v505_v31, %v513_v32  ;;  %v618_v31 = vld [vmem:[#allocation5 + $0x1108] sm:$0xff] }
  0x99   :  { %v7834_v45 = vcombine.low %v506_v33, %v514_v35  ;;  %v8907_v25 = vcombine.low %v8893_v15, %v8893_v15 }
  0x9b   :  { %4750 = vmatpush1.bf16.msra.mxu0 %v7704_v40  ;;  %4873 = vmatpush1.bf16.msra.mxu1 %v7706_v41  ;;  %v529_v40 = vld [vmem:[#allocation5 + $0xe40] sm:$0xff]  ;;  %v522_v41 = vld [vmem:[#allocation5 + $0xe08] sm:$0xff] }
  0x9c   :  { %4751 = vmatprep.subr.bf16.mxu0 %v7721_v42  ;;  %4874 = vmatprep.subr.bf16.mxu1 %v7723_v46  ;;  %v7835_v42 = vcombine.high %v506_v33, %v514_v35  ;;  %v7849_v46 = vcombine.high %v521_v39, %v529_v40  ;;  %v7848_v52 = vcombine.low %v521_v39, %v529_v40  ;;  %v626_v33 = vld [vmem:[#allocation5 + $0x1148] sm:$0xff] }
  0x9d   :  { %v7850_v54 = vcombine.low %v522_v41, %v530_v43  ;;  %v634_v39 = vld [vmem:[#allocation5 + $0x1188] sm:$0xff]  ;;  %v7947_v40 = vcombine.high %v618_v31, %v626_v33 }
  0x9f   :  { %4752 = vmatpush1.bf16.msra.mxu0 %v7720_v48  ;;  %4875 = vmatpush1.bf16.msra.mxu1 %v7722_v49  ;;  %v545_v48 = vld [vmem:[#allocation5 + $0xec0] sm:$0xff]  ;;  %v538_v49 = vld [vmem:[#allocation5 + $0xe88] sm:$0xff] }
  0xa0   :  { %4753 = vmatprep.subr.bf16.mxu0 %v7737_v50  ;;  %4876 = vmatprep.subr.bf16.mxu1 %v7739_v55  ;;  %v7851_v50 = vcombine.high %v522_v41, %v530_v43  ;;  %v7865_v55 = vcombine.high %v537_v47, %v545_v48  ;;  %v7864_v62 = vcombine.low %v537_v47, %v545_v48  ;;  %v642_v41 = vld [vmem:[#allocation5 + $0x11c8] sm:$0xff] }
  0xa1   :  { %v7866_v63 = vcombine.low %v538_v49, %v546_v51  ;;  %v7946_v43 = vcombine.low %v618_v31, %v626_v33  ;;  %v650_v47 = vld [vmem:[#allocation5 + $0x1208] sm:$0xff]  ;;  %v7963_v48 = vcombine.high %v634_v39, %v642_v41 }
  0xa2   :  { %v738_v31 = vld [vmem:[#allocation5 + $0x14c8] sm:$0xff] }
  0xa3   :  { %4754 = vmatpush1.bf16.msra.mxu0 %v7736_v58  ;;  %4877 = vmatpush1.bf16.msra.mxu1 %v7738_v59  ;;  %v561_v58 = vld [vmem:[#allocation5 + $0xf40] sm:$0xff]  ;;  %v554_v59 = vld [vmem:[#allocation5 + $0xf08] sm:$0xff] }
  0xa4   :  { %4755 = vmatprep.subr.bf16.mxu0 %v7753_v60  ;;  %4878 = vmatprep.subr.bf16.mxu1 %v7755_v0  ;;  %v7867_v60 = vcombine.high %v538_v49, %v546_v51  ;;  %v7881_v0 = vcombine.high %v553_v56, %v561_v58  ;;  %v7880_v6 = vcombine.low %v553_v56, %v561_v58  ;;  %v658_v49 = vld [vmem:[#allocation5 + $0x1248] sm:$0xff] }
  0xa5   :  { %v7882_v7 = vcombine.low %v554_v59, %v562_v61  ;;  %v7962_v51 = vcombine.low %v634_v39, %v642_v41  ;;  %v666_v56 = vld [vmem:[#allocation5 + $0x1288] sm:$0xff]  ;;  %v7979_v58 = vcombine.high %v650_v47, %v658_v49 }
  0xa6   :  { %v754_v39 = vld [vmem:[#allocation5 + $0x1548] sm:$0xff] }
  0xa7   :  { %4756 = vmatpush1.bf16.msra.mxu0 %v7752_v2  ;;  %4879 = vmatpush1.bf16.msra.mxu1 %v7754_v3  ;;  %v577_v2 = vld [vmem:[#allocation5 + $0xfc0] sm:$0xff]  ;;  %v570_v3 = vld [vmem:[#allocation5 + $0xf88] sm:$0xff] }
  0xa8   :  { %4757 = vmatprep.subr.bf16.mxu0 %v7769_v4  ;;  %4880 = vmatprep.subr.bf16.mxu1 %v7771_v8  ;;  %v7883_v4 = vcombine.high %v554_v59, %v562_v61  ;;  %v7897_v8 = vcombine.high %v569_v1, %v577_v2  ;;  %v7896_v16 = vcombine.low %v569_v1, %v577_v2  ;;  %v674_v59 = vld [vmem:[#allocation5 + $0x12c8] sm:$0xff] }
  0xa9   :  { %v7978_v61 = vcombine.low %v650_v47, %v658_v49  ;;  %v682_v1 = vld [vmem:[#allocation5 + $0x1308] sm:$0xff]  ;;  %v7995_v2 = vcombine.high %v666_v56, %v674_v59 }
  0xaa   :  { %v770_v47 = vld [vmem:[#allocation5 + $0x15c8] sm:$0xff] }
  0xab   :  { %4758 = vmatpush1.bf16.msra.mxu0 %v7768_v10  ;;  %4881 = vmatpush1.bf16.msra.mxu1 %v7770_v11  ;;  %v593_v10 = vld [vmem:[#allocation5 + $0x1040] sm:$0xff]  ;;  %v586_v11 = vld [vmem:[#allocation5 + $0x1008] sm:$0xff] }
  0xac   :  { %4759 = vmatprep.subr.bf16.mxu0 %v7785_v13  ;;  %4882 = vmatprep.subr.bf16.mxu1 %v7787_v18  ;;  %v7899_v13 = vcombine.high %v570_v3, %v578_v5  ;;  %v7898_v18 = vcombine.low %v570_v3, %v578_v5  ;;  %v7913_v19 = vcombine.high %v585_v9, %v593_v10  ;;  %v690_v3 = vld [vmem:[#allocation5 + $0x1348] sm:$0xff] }
  0xad   :  { %v7915_v23 = vcombine.high %v586_v11, %v594_v14  ;;  %v7914_v27 = vcombine.low %v586_v11, %v594_v14  ;;  %v7994_v5 = vcombine.low %v666_v56, %v674_v59  ;;  %v706_v11 = vld [vmem:[#allocation5 + $0x13c8] sm:$0xff]  ;;  %v8010_v14 = vcombine.low %v682_v1, %v690_v3 }
  0xae   :  { %v786_v56 = vld [vmem:[#allocation5 + $0x1648] sm:$0xff] }
  0xaf   :  { %4760 = vmatpush1.bf16.msra.mxu0 %v7784_v20  ;;  %4883 = vmatpush1.bf16.msra.mxu1 %v7786_v21  ;;  %v609_v20 = vld [vmem:[#allocation5 + $0x10c0] sm:$0xff]  ;;  %v602_v21 = vld [vmem:[#allocation5 + $0x1088] sm:$0xff] }
  0xb0   :  { %4761 = vmatprep.subr.bf16.mxu0 %v7801_v22  ;;  %4884 = vmatprep.subr.bf16.mxu1 %v7803_v26  ;;  %v610_v22 = vld [vmem:[#allocation5 + $0x10c8] sm:$0xff]  ;;  %v7912_v26 = vcombine.low %v585_v9, %v593_v10  ;;  %v7928_v15 = vcombine.low %v601_v17, %v609_v20  ;;  %v8011_v10 = vcombine.high %v682_v1, %v690_v3 }
  0xb1   :  { %v7931_v32 = vcombine.high %v602_v21, %v610_v22  ;;  %v7930_v35 = vcombine.low %v602_v21, %v610_v22  ;;  %v698_v9 = vld [vmem:[#allocation5 + $0x1388] sm:$0xff] }
  0xb2   :  { %v722_v21 = vld [vmem:[#allocation5 + $0x1448] sm:$0xff] }
  0xb3   :  { %4762 = vmatpush1.bf16.msra.mxu0 %v7800_v28  ;;  %4885 = vmatpush1.bf16.msra.mxu1 %v7802_v29  ;;  %v7929_v28 = vcombine.high %v601_v17, %v609_v20  ;;  %v617_v29 = vld [vmem:[#allocation5 + $0x1100] sm:$0xff]  ;;  %v8027_v20 = vcombine.high %v698_v9, %v706_v11  ;;  %v802_v1 = vld [vmem:[#allocation5 + $0x16c8] sm:$0xff] }
  0xb4   :  { %4763 = vmatprep.subr.bf16.mxu0 %v7817_v30  ;;  %4886 = vmatprep.subr.bf16.mxu1 %v7819_v34  ;;  %v625_v30 = vld [vmem:[#allocation5 + $0x1140] sm:$0xff]  ;;  %v8911_v34 = vcombine.high %v8903_v24, %v8903_v24 }
  0xb5   :  { %v713_v17 = vld [vmem:[#allocation5 + $0x1400] sm:$0xff] }
  0xb7   :  { %4764 = vmatpush1.bf16.msra.mxu0 %v7816_v36  ;;  %4887 = vmatpush1.bf16.msra.mxu1 %v7818_v37  ;;  %v7945_v36 = vcombine.high %v617_v29, %v625_v30  ;;  %v633_v37 = vld [vmem:[#allocation5 + $0x1180] sm:$0xff] }
  0xb8   :  { %4765 = vmatprep.subr.bf16.mxu0 %v7833_v38  ;;  %4888 = vmatprep.subr.bf16.mxu1 %v7835_v42  ;;  %v641_v38 = vld [vmem:[#allocation5 + $0x11c0] sm:$0xff]  ;;  %v7944_v42 = vcombine.low %v617_v29, %v625_v30  ;;  %v730_v29 = vld [vmem:[#allocation5 + $0x1488] sm:$0xff] }
  0xb9   :  { %v8058_v41 = vcombine.low %v730_v29, %v738_v31 }
  0xbb   :  { %4766 = vmatpush1.bf16.msra.mxu0 %v7832_v44  ;;  %4889 = vmatpush1.bf16.msra.mxu1 %v7834_v45  ;;  %v7961_v44 = vcombine.high %v633_v37, %v641_v38  ;;  %v649_v45 = vld [vmem:[#allocation5 + $0x1200] sm:$0xff] }
  0xbc   :  { %4767 = vmatprep.subr.bf16.mxu0 %v7849_v46  ;;  %4890 = vmatprep.subr.bf16.mxu1 %v7851_v50  ;;  %v657_v46 = vld [vmem:[#allocation5 + $0x1240] sm:$0xff]  ;;  %v7960_v50 = vcombine.low %v633_v37, %v641_v38  ;;  %v746_v37 = vld [vmem:[#allocation5 + $0x1508] sm:$0xff]  ;;  %v8059_v38 = vcombine.high %v730_v29, %v738_v31  ;;  %v84_v29 = vld [vmem:[#allocation5 + $0x58] sm:$0xff] }
  0xbd   :  { %v8074_v49 = vcombine.low %v746_v37, %v754_v39 }
  0xbf   :  { %4768 = vmatpush1.bf16.msra.mxu0 %v7848_v52  ;;  %4891 = vmatpush1.bf16.msra.mxu1 %v7850_v54  ;;  %v7977_v52 = vcombine.high %v649_v45, %v657_v46  ;;  %v665_v54 = vld [vmem:[#allocation5 + $0x1280] sm:$0xff] }
  0xc0   :  { %4769 = vmatprep.subr.bf16.mxu0 %v7865_v55  ;;  %4892 = vmatprep.subr.bf16.mxu1 %v7867_v60  ;;  %v673_v55 = vld [vmem:[#allocation5 + $0x12c0] sm:$0xff]  ;;  %v7976_v60 = vcombine.low %v649_v45, %v657_v46  ;;  %v762_v45 = vld [vmem:[#allocation5 + $0x1588] sm:$0xff]  ;;  %v8075_v46 = vcombine.high %v746_v37, %v754_v39  ;;  %v100_v37 = vld [vmem:[#allocation5 + $0xd8] sm:$0xff] }
  0xc1   :  { %v8090_v59 = vcombine.low %v762_v45, %v770_v47 }
  0xc3   :  { %4770 = vmatpush1.bf16.msra.mxu0 %v7864_v62  ;;  %4893 = vmatpush1.bf16.msra.mxu1 %v7866_v63  ;;  %v7993_v62 = vcombine.high %v665_v54, %v673_v55  ;;  %v681_v63 = vld [vmem:[#allocation5 + $0x1300] sm:$0xff] }
  0xc4   :  { %4771 = vmatprep.subr.bf16.mxu0 %v7881_v0  ;;  %4894 = vmatprep.subr.bf16.mxu1 %v7883_v4  ;;  %v689_v0 = vld [vmem:[#allocation5 + $0x1340] sm:$0xff]  ;;  %v7992_v4 = vcombine.low %v665_v54, %v673_v55  ;;  %v778_v54 = vld [vmem:[#allocation5 + $0x1608] sm:$0xff]  ;;  %v8091_v55 = vcombine.high %v762_v45, %v770_v47  ;;  %v108_v45 = vld [vmem:[#allocation5 + $0x118] sm:$0xff] }
  0xc5   :  { %v8106_v3 = vcombine.low %v778_v54, %v786_v56 }
  0xc7   :  { %4772 = vmatpush1.bf16.msra.mxu0 %v7880_v6  ;;  %4895 = vmatpush1.bf16.msra.mxu1 %v7882_v7  ;;  %v8009_v6 = vcombine.high %v681_v63, %v689_v0  ;;  %v697_v7 = vld [vmem:[#allocation5 + $0x1380] sm:$0xff] }
  0xc8   :  { %4773 = vmatprep.subr.bf16.mxu0 %v7897_v8  ;;  %4896 = vmatprep.subr.bf16.mxu1 %v7899_v13  ;;  %v705_v8 = vld [vmem:[#allocation5 + $0x13c0] sm:$0xff]  ;;  %v8008_v13 = vcombine.low %v681_v63, %v689_v0  ;;  %v794_v63 = vld [vmem:[#allocation5 + $0x1688] sm:$0xff]  ;;  %v8107_v0 = vcombine.high %v778_v54, %v786_v56  ;;  %v132_v54 = vld [vmem:[#allocation5 + $0x1d8] sm:$0xff] }
  0xc9   :  { %v8024_v22 = vcombine.low %v697_v7, %v705_v8 }
  0xcb   :  { %4774 = vmatpush1.bf16.msra.mxu0 %v7896_v16  ;;  %4897 = vmatpush1.bf16.msra.mxu1 %v7898_v18  ;;  %v8025_v16 = vcombine.high %v697_v7, %v705_v8  ;;  %v721_v18 = vld [vmem:[#allocation5 + $0x1440] sm:$0xff]  ;;  %v810_v7 = vld [vmem:[#allocation5 + $0x1708] sm:$0xff]  ;;  %v8123_v8 = vcombine.high %v794_v63, %v802_v1 }
  0xcc   :  { %4784 = vmatprep.subr.bf16.mxu0 %v7913_v19  ;;  %4907 = vmatprep.subr.bf16.mxu1 %v7915_v23  ;;  %v714_v19 = vld [vmem:[#allocation5 + $0x1408] sm:$0xff]  ;;  %v8026_v23 = vcombine.low %v698_v9, %v706_v11  ;;  %v8122_v11 = vcombine.low %v794_v63, %v802_v1  ;;  %v148_v63 = vld [vmem:[#allocation5 + $0x258] sm:$0xff] }
  0xcd   :  { %v8043_v30 = vcombine.high %v714_v19, %v722_v21  ;;  %v8042_v33 = vcombine.low %v714_v19, %v722_v21  ;;  %v818_v9 = vld [vmem:[#allocation5 + $0x1748] sm:$0xff] }
  0xce   :  { %4776 = vmatmul.mubr.bf16.vlgmr.msra.gmra.mrb[0].mxu0 %v8907_v25  ;;  %4899 = vmatmul.mubr.bf16.vlgmr.msra.gmra.mrb[0].mxu1 %v8907_v25  ;;  %v834_v19 = vld [vmem:[#allocation5 + $0x17c8] sm:$0xff]  ;;  %v8138_v21 = vcombine.low %v810_v7, %v818_v9 }
  0xcf   :  { %4785 = vmatpush1.bf16.msra.mxu0 %v7912_v26  ;;  %4908 = vmatpush1.bf16.msra.mxu1 %v7914_v27  ;;  %v8041_v26 = vcombine.high %v713_v17, %v721_v18  ;;  %v729_v27 = vld [vmem:[#allocation5 + $0x1480] sm:$0xff] }
  0xd0   :  { %4786 = vmatprep.subr.bf16.mxu0 %v7929_v28  ;;  %4909 = vmatprep.subr.bf16.mxu1 %v7931_v32  ;;  %v737_v28 = vld [vmem:[#allocation5 + $0x14c0] sm:$0xff]  ;;  %v8040_v32 = vcombine.low %v713_v17, %v721_v18  ;;  %v826_v17 = vld [vmem:[#allocation5 + $0x1788] sm:$0xff]  ;;  %v8139_v18 = vcombine.high %v810_v7, %v818_v9  ;;  %v164_v7 = vld [vmem:[#allocation5 + $0x2d8] sm:$0xff] }
  0xd1   :  { %4816 = vmatprep.mubr.bf16.mxu0 %v8911_v34  ;;  %4939 = vmatprep.mubr.bf16.mxu1 %v8911_v34  ;;  %v8154_v31 = vcombine.low %v826_v17, %v834_v19 }
  0xd3   :  { %4787 = vmatpush1.bf16.msra.mxu0 %v7928_v15  ;;  %4910 = vmatpush1.bf16.msra.mxu1 %v7930_v35  ;;  %v8057_v15 = vcombine.high %v729_v27, %v737_v28  ;;  %v745_v35 = vld [vmem:[#allocation5 + $0x1500] sm:$0xff] }
  0xd4   :  { %4788 = vmatprep.subr.bf16.mxu0 %v7945_v36  ;;  %4911 = vmatprep.subr.bf16.mxu1 %v7947_v40  ;;  %v753_v36 = vld [vmem:[#allocation5 + $0x1540] sm:$0xff]  ;;  %v8056_v40 = vcombine.low %v729_v27, %v737_v28  ;;  %v76_v27 = vld [vmem:[#allocation5 + $0x18] sm:$0xff]  ;;  %v8155_v28 = vcombine.high %v826_v17, %v834_v19 }
  0xd5   :  { %v180_v17 = vld [vmem:[#allocation5 + $0x358] sm:$0xff] }
  0xd7   :  { %4789 = vmatpush1.bf16.msra.mxu0 %v7944_v42  ;;  %4912 = vmatpush1.bf16.msra.mxu1 %v7946_v43  ;;  %v8073_v42 = vcombine.high %v745_v35, %v753_v36  ;;  %v761_v43 = vld [vmem:[#allocation5 + $0x1580] sm:$0xff] }
  0xd8   :  { %4790 = vmatprep.subr.bf16.mxu0 %v7961_v44  ;;  %4913 = vmatprep.subr.bf16.mxu1 %v7963_v48  ;;  %v769_v44 = vld [vmem:[#allocation5 + $0x15c0] sm:$0xff]  ;;  %v8072_v48 = vcombine.low %v745_v35, %v753_v36  ;;  %v92_v35 = vld [vmem:[#allocation5 + $0x98] sm:$0xff]  ;;  %v7407_v36 = vcombine.high %v76_v27, %v84_v29 }
  0xdb   :  { %4791 = vmatpush1.bf16.msra.mxu0 %v7960_v50  ;;  %4914 = vmatpush1.bf16.msra.mxu1 %v7962_v51  ;;  %v8089_v50 = vcombine.high %v761_v43, %v769_v44  ;;  %v777_v51 = vld [vmem:[#allocation5 + $0x1600] sm:$0xff] }
  0xdc   :  { %4792 = vmatprep.subr.bf16.mxu0 %v7977_v52  ;;  %4915 = vmatprep.subr.bf16.mxu1 %v7979_v58  ;;  %v785_v52 = vld [vmem:[#allocation5 + $0x1640] sm:$0xff]  ;;  %v8088_v58 = vcombine.low %v761_v43, %v769_v44  ;;  %v107_v43 = vld [vmem:[#allocation5 + $0x110] sm:$0xff] }
  0xdd   :  { %v115_v44 = vld [vmem:[#allocation5 + $0x150] sm:$0xff] }
  0xdf   :  { %4793 = vmatpush1.bf16.msra.mxu0 %v7976_v60  ;;  %4916 = vmatpush1.bf16.msra.mxu1 %v7978_v61  ;;  %v8105_v60 = vcombine.high %v777_v51, %v785_v52  ;;  %v793_v61 = vld [vmem:[#allocation5 + $0x1680] sm:$0xff] }
  0xe0   :  { %4794 = vmatprep.subr.bf16.mxu0 %v7993_v62  ;;  %4917 = vmatprep.subr.bf16.mxu1 %v7995_v2  ;;  %v801_v62 = vld [vmem:[#allocation5 + $0x16c0] sm:$0xff]  ;;  %v8104_v2 = vcombine.low %v777_v51, %v785_v52  ;;  %v131_v51 = vld [vmem:[#allocation5 + $0x1d0] sm:$0xff]  ;;  %v124_v52 = vld [vmem:[#allocation5 + $0x198] sm:$0xff] }
  0xe1   :  { %v7454_v1 = vcombine.low %v124_v52, %v132_v54 }
  0xe3   :  { %4795 = vmatpush1.bf16.msra.mxu0 %v7992_v4  ;;  %4918 = vmatpush1.bf16.msra.mxu1 %v7994_v5  ;;  %v8121_v4 = vcombine.high %v793_v61, %v801_v62  ;;  %v809_v5 = vld [vmem:[#allocation5 + $0x1700] sm:$0xff] }
  0xe4   :  { %4796 = vmatprep.subr.bf16.mxu0 %v8009_v6  ;;  %4919 = vmatprep.subr.bf16.mxu1 %v8011_v10  ;;  %v817_v6 = vld [vmem:[#allocation5 + $0x1740] sm:$0xff]  ;;  %v8120_v10 = vcombine.low %v793_v61, %v801_v62  ;;  %v147_v61 = vld [vmem:[#allocation5 + $0x250] sm:$0xff]  ;;  %v140_v62 = vld [vmem:[#allocation5 + $0x218] sm:$0xff] }
  0xe5   :  { %v7470_v9 = vcombine.low %v140_v62, %v148_v63 }
  0xe7   :  { %4797 = vmatpush1.bf16.msra.mxu0 %v8008_v13  ;;  %4920 = vmatpush1.bf16.msra.mxu1 %v8010_v14  ;;  %v8137_v13 = vcombine.high %v809_v5, %v817_v6  ;;  %v825_v14 = vld [vmem:[#allocation5 + $0x1780] sm:$0xff] }
  0xe8   :  { %4798 = vmatprep.subr.bf16.mxu0 %v8025_v16  ;;  %4921 = vmatprep.subr.bf16.mxu1 %v8027_v20  ;;  %v833_v16 = vld [vmem:[#allocation5 + $0x17c0] sm:$0xff]  ;;  %v8136_v20 = vcombine.low %v809_v5, %v817_v6  ;;  %v163_v5 = vld [vmem:[#allocation5 + $0x2d0] sm:$0xff]  ;;  %v156_v6 = vld [vmem:[#allocation5 + $0x298] sm:$0xff] }
  0xe9   :  { %v7486_v19 = vcombine.low %v156_v6, %v164_v7 }
  0xeb   :  { %4799 = vmatpush1.bf16.msra.mxu0 %v8024_v22  ;;  %4922 = vmatpush1.bf16.msra.mxu1 %v8026_v23  ;;  %v8153_v22 = vcombine.high %v825_v14, %v833_v16  ;;  %v75_v23 = vld [vmem:[#allocation5 + $0x10] sm:$0xff] }
  0xec   :  { %4800 = vmatprep.subr.bf16.mxu0 %v8041_v26  ;;  %4923 = vmatprep.subr.bf16.mxu1 %v8043_v30  ;;  %v83_v26 = vld [vmem:[#allocation5 + $0x50] sm:$0xff]  ;;  %v8152_v30 = vcombine.low %v825_v14, %v833_v16  ;;  %v172_v16 = vld [vmem:[#allocation5 + $0x318] sm:$0xff] }
  0xed   :  { %v7404_v39 = vcombine.low %v75_v23, %v83_v26  ;;  %v179_v14 = vld [vmem:[#allocation5 + $0x350] sm:$0xff] }
  0xef   :  { %4801 = vmatpush1.bf16.msra.mxu0 %v8040_v32  ;;  %4924 = vmatpush1.bf16.msra.mxu1 %v8042_v33  ;;  %v7405_v32 = vcombine.high %v75_v23, %v83_v26  ;;  %v91_v33 = vld [vmem:[#allocation5 + $0x90] sm:$0xff]  ;;  %v188_v26 = vld [vmem:[#allocation5 + $0x398] sm:$0xff] }
  0xf0   :  { %4802 = vmatprep.subr.bf16.mxu0 %v8057_v15  ;;  %4925 = vmatprep.subr.bf16.mxu1 %v8059_v38  ;;  %v99_v15 = vld [vmem:[#allocation5 + $0xd0] sm:$0xff]  ;;  %v8919_v38 = vcombine.low %v8903_v24, %v8903_v24  ;;  %v7422_v24 = vcombine.low %v92_v35, %v100_v37 }
  0xf1   :  { %v7420_v47 = vcombine.low %v91_v33, %v99_v15  ;;  %v195_v23 = vld [vmem:[#allocation5 + $0x3d0] sm:$0xff] }
  0xf3   :  { %4803 = vmatpush1.bf16.msra.mxu0 %v8056_v40  ;;  %4926 = vmatpush1.bf16.msra.mxu1 %v8058_v41  ;;  %v7406_v40 = vcombine.low %v76_v27, %v84_v29  ;;  %v7421_v41 = vcombine.high %v91_v33, %v99_v15  ;;  %v196_v27 = vld [vmem:[#allocation5 + $0x3d8] sm:$0xff]  ;;  %v7502_v29 = vcombine.low %v172_v16, %v180_v17  ;;  %v211_v33 = vld [vmem:[#allocation5 + $0x450] sm:$0xff] }
  0xf4   :  { %4804 = vmatprep.subr.bf16.mxu0 %v8073_v42  ;;  %4927 = vmatprep.subr.bf16.mxu1 %v8075_v46  ;;  %v7423_v42 = vcombine.high %v92_v35, %v100_v37  ;;  %v116_v46 = vld [vmem:[#allocation5 + $0x158] sm:$0xff]  ;;  %v7518_v37 = vcombine.low %v188_v26, %v196_v27 }
  0xf5   :  { %v7438_v56 = vcombine.low %v108_v45, %v116_v46  ;;  %v204_v15 = vld [vmem:[#allocation5 + $0x418] sm:$0xff] }
  0xf6   :  { %v212_v35 = vld [vmem:[#allocation5 + $0x458] sm:$0xff] }
  0xf7   :  { %4805 = vmatpush1.bf16.msra.mxu0 %v8072_v48  ;;  %4928 = vmatpush1.bf16.msra.mxu1 %v8074_v49  ;;  %v7437_v48 = vcombine.high %v107_v43, %v115_v44  ;;  %v7439_v49 = vcombine.high %v108_v45, %v116_v46  ;;  %v7534_v46 = vcombine.low %v204_v15, %v212_v35 }
  0xf8   :  { %4806 = vmatprep.subr.bf16.mxu0 %v8089_v50  ;;  %4929 = vmatprep.subr.bf16.mxu1 %v8091_v55  ;;  %v123_v50 = vld [vmem:[#allocation5 + $0x190] sm:$0xff]  ;;  %v7436_v55 = vcombine.low %v107_v43, %v115_v44  ;;  %v220_v43 = vld [vmem:[#allocation5 + $0x498] sm:$0xff] }
  0xf9   :  { %v228_v44 = vld [vmem:[#allocation5 + $0x4d8] sm:$0xff] }
  0xfb   :  { %4807 = vmatpush1.bf16.msra.mxu0 %v8088_v58  ;;  %4930 = vmatpush1.bf16.msra.mxu1 %v8090_v59  ;;  %v7453_v58 = vcombine.high %v123_v50, %v131_v51  ;;  %v7455_v59 = vcombine.high %v124_v52, %v132_v54  ;;  %v7550_v54 = vcombine.low %v220_v43, %v228_v44 }
  0xfc   :  { %4808 = vmatprep.subr.bf16.mxu0 %v8105_v60  ;;  %4931 = vmatprep.subr.bf16.mxu1 %v8107_v0  ;;  %v139_v60 = vld [vmem:[#allocation5 + $0x210] sm:$0xff]  ;;  %v7452_v0 = vcombine.low %v123_v50, %v131_v51  ;;  %v236_v50 = vld [vmem:[#allocation5 + $0x518] sm:$0xff] }
  0xfd   :  { %v244_v51 = vld [vmem:[#allocation5 + $0x558] sm:$0xff] }
  0xff   :  { %4809 = vmatpush1.bf16.msra.mxu0 %v8104_v2  ;;  %4932 = vmatpush1.bf16.msra.mxu1 %v8106_v3  ;;  %v7469_v2 = vcombine.high %v139_v60, %v147_v61  ;;  %v7471_v3 = vcombine.high %v140_v62, %v148_v63  ;;  %v7566_v63 = vcombine.low %v236_v50, %v244_v51 }
 0x100   :  { %4810 = vmatprep.subr.bf16.mxu0 %v8121_v4  ;;  %4933 = vmatprep.subr.bf16.mxu1 %v8123_v8  ;;  %v155_v4 = vld [vmem:[#allocation5 + $0x290] sm:$0xff]  ;;  %v7468_v8 = vcombine.low %v139_v60, %v147_v61  ;;  %v252_v60 = vld [vmem:[#allocation5 + $0x598] sm:$0xff] }
 0x101   :  { %v260_v61 = vld [vmem:[#allocation5 + $0x5d8] sm:$0xff] }
 0x103   :  { %4811 = vmatpush1.bf16.msra.mxu0 %v8120_v10  ;;  %4934 = vmatpush1.bf16.msra.mxu1 %v8122_v11  ;;  %v7485_v10 = vcombine.high %v155_v4, %v163_v5  ;;  %v7487_v11 = vcombine.high %v156_v6, %v164_v7  ;;  %v7582_v7 = vcombine.low %v252_v60, %v260_v61 }
 0x104   :  { %4812 = vmatprep.subr.bf16.mxu0 %v8137_v13  ;;  %4935 = vmatprep.subr.bf16.mxu1 %v8139_v18  ;;  %v171_v13 = vld [vmem:[#allocation5 + $0x310] sm:$0xff]  ;;  %v7484_v18 = vcombine.low %v155_v4, %v163_v5  ;;  %v268_v4 = vld [vmem:[#allocation5 + $0x618] sm:$0xff] }
 0x105   :  { %v276_v5 = vld [vmem:[#allocation5 + $0x658] sm:$0xff] }
 0x107   :  { %4813 = vmatpush1.bf16.msra.mxu0 %v8136_v20  ;;  %4936 = vmatpush1.bf16.msra.mxu1 %v8138_v21  ;;  %v7501_v20 = vcombine.high %v171_v13, %v179_v14  ;;  %v7503_v21 = vcombine.high %v172_v16, %v180_v17  ;;  %v7598_v17 = vcombine.low %v268_v4, %v276_v5 }
 0x108   :  { %4814 = vmatprep.subr.bf16.mxu0 %v8153_v22  ;;  %4937 = vmatprep.subr.bf16.mxu1 %v8155_v28  ;;  %v187_v22 = vld [vmem:[#allocation5 + $0x390] sm:$0xff]  ;;  %v7500_v28 = vcombine.low %v171_v13, %v179_v14  ;;  %v284_v13 = vld [vmem:[#allocation5 + $0x698] sm:$0xff] }
 0x109   :  { %v292_v14 = vld [vmem:[#allocation5 + $0x6d8] sm:$0xff] }
 0x10b   :  { %4815 = vmatpush1.bf16.msra.mxu0 %v8152_v30  ;;  %4938 = vmatpush1.bf16.msra.mxu1 %v8154_v31  ;;  %v7517_v30 = vcombine.high %v187_v22, %v195_v23  ;;  %v7519_v31 = vcombine.high %v188_v26, %v196_v27  ;;  %v7614_v27 = vcombine.low %v284_v13, %v292_v14 }
 0x10c   :  { %4948 = vmatprep.subr.bf16.mxu0 %v7405_v32  ;;  %5071 = vmatprep.subr.bf16.mxu1 %v7407_v36  ;;  %v203_v32 = vld [vmem:[#allocation5 + $0x410] sm:$0xff]  ;;  %v7516_v36 = vcombine.low %v187_v22, %v195_v23  ;;  %v300_v22 = vld [vmem:[#allocation5 + $0x718] sm:$0xff] }
 0x10d   :  { %v7532_v45 = vcombine.low %v203_v32, %v211_v33  ;;  %v308_v23 = vld [vmem:[#allocation5 + $0x758] sm:$0xff] }
 0x10e   :  { %4817 = vmatmul.mubr.bf16.vlgmr.msra.gmra.mrb[0].mxu0 %v8919_v38  ;;  %4940 = vmatmul.mubr.bf16.vlgmr.msra.gmra.mrb[0].mxu1 %v8919_v38 }
 0x10f   :  { %4949 = vmatpush1.bf16.msra.mxu0 %v7404_v39  ;;  %5072 = vmatpush1.bf16.msra.mxu1 %v7406_v40  ;;  %v7533_v39 = vcombine.high %v203_v32, %v211_v33  ;;  %v7535_v40 = vcombine.high %v204_v15, %v212_v35  ;;  %v316_v32 = vld [vmem:[#allocation5 + $0x798] sm:$0xff]  ;;  %v7630_v35 = vcombine.low %v300_v22, %v308_v23 }
 0x110   :  { %4950 = vmatprep.subr.bf16.mxu0 %v7421_v41  ;;  %5073 = vmatprep.subr.bf16.mxu1 %v7423_v42  ;;  %v219_v41 = vld [vmem:[#allocation5 + $0x490] sm:$0xff]  ;;  %v324_v33 = vld [vmem:[#allocation5 + $0x7d8] sm:$0xff] }
 0x111   :  { %4980 = vmatprep.mubr.bf16.mxu0 %v8885_v57  ;;  %5103 = vmatprep.mubr.bf16.mxu1 %v8885_v57  ;;  %v227_v42 = vld [vmem:[#allocation5 + $0x4d0] sm:$0xff] }
 0x112   :  { %v7548_v52 = vcombine.low %v219_v41, %v227_v42 }
 0x113   :  { %4951 = vmatpush1.bf16.msra.mxu0 %v7420_v47  ;;  %5074 = vmatpush1.bf16.msra.mxu1 %v7422_v24  ;;  %v7549_v47 = vcombine.high %v219_v41, %v227_v42  ;;  %v7551_v24 = vcombine.high %v220_v43, %v228_v44  ;;  %v332_v41 = vld [vmem:[#allocation5 + $0x818] sm:$0xff]  ;;  %v7646_v44 = vcombine.low %v316_v32, %v324_v33 }
 0x114   :  { %4952 = vmatprep.subr.bf16.mxu0 %v7437_v48  ;;  %5075 = vmatprep.subr.bf16.mxu1 %v7439_v49  ;;  %v235_v48 = vld [vmem:[#allocation5 + $0x510] sm:$0xff]  ;;  %v340_v42 = vld [vmem:[#allocation5 + $0x858] sm:$0xff] }
 0x115   :  { %v243_v49 = vld [vmem:[#allocation5 + $0x550] sm:$0xff] }
 0x116   :  { %v7564_v62 = vcombine.low %v235_v48, %v243_v49 }
 0x117   :  { %4953 = vmatpush1.bf16.msra.mxu0 %v7436_v55  ;;  %5076 = vmatpush1.bf16.msra.mxu1 %v7438_v56  ;;  %v7565_v55 = vcombine.high %v235_v48, %v243_v49  ;;  %v7567_v56 = vcombine.high %v236_v50, %v244_v51  ;;  %v348_v48 = vld [vmem:[#allocation5 + $0x898] sm:$0xff]  ;;  %v7662_v51 = vcombine.low %v332_v41, %v340_v42 }
 0x118   :  { %4954 = vmatprep.subr.bf16.mxu0 %v7453_v58  ;;  %5077 = vmatprep.subr.bf16.mxu1 %v7455_v59  ;;  %v251_v58 = vld [vmem:[#allocation5 + $0x590] sm:$0xff]  ;;  %v356_v49 = vld [vmem:[#allocation5 + $0x8d8] sm:$0xff] }
 0x119   :  { %v259_v59 = vld [vmem:[#allocation5 + $0x5d0] sm:$0xff] }
 0x11a   :  { %v7580_v6 = vcombine.low %v251_v58, %v259_v59 }
 0x11b   :  { %4955 = vmatpush1.bf16.msra.mxu0 %v7452_v0  ;;  %5078 = vmatpush1.bf16.msra.mxu1 %v7454_v1  ;;  %v7581_v0 = vcombine.high %v251_v58, %v259_v59  ;;  %v7583_v1 = vcombine.high %v252_v60, %v260_v61  ;;  %v364_v58 = vld [vmem:[#allocation5 + $0x918] sm:$0xff]  ;;  %v7678_v61 = vcombine.low %v348_v48, %v356_v49 }
 0x11c   :  { %4956 = vmatprep.subr.bf16.mxu0 %v7469_v2  ;;  %5079 = vmatprep.subr.bf16.mxu1 %v7471_v3  ;;  %v267_v2 = vld [vmem:[#allocation5 + $0x610] sm:$0xff]  ;;  %v372_v59 = vld [vmem:[#allocation5 + $0x958] sm:$0xff] }
 0x11d   :  { %v275_v3 = vld [vmem:[#allocation5 + $0x650] sm:$0xff] }
 0x11e   :  { %v7596_v16 = vcombine.low %v267_v2, %v275_v3 }
 0x11f   :  { %4957 = vmatpush1.bf16.msra.mxu0 %v7468_v8  ;;  %5080 = vmatpush1.bf16.msra.mxu1 %v7470_v9  ;;  %v7597_v8 = vcombine.high %v267_v2, %v275_v3  ;;  %v7599_v9 = vcombine.high %v268_v4, %v276_v5  ;;  %v380_v2 = vld [vmem:[#allocation5 + $0x998] sm:$0xff]  ;;  %v7694_v5 = vcombine.low %v364_v58, %v372_v59 }
 0x120   :  { %4958 = vmatprep.subr.bf16.mxu0 %v7485_v10  ;;  %5081 = vmatprep.subr.bf16.mxu1 %v7487_v11  ;;  %v283_v10 = vld [vmem:[#allocation5 + $0x690] sm:$0xff]  ;;  %v388_v3 = vld [vmem:[#allocation5 + $0x9d8] sm:$0xff] }
 0x121   :  { %v291_v11 = vld [vmem:[#allocation5 + $0x6d0] sm:$0xff] }
 0x122   :  { %v7612_v26 = vcombine.low %v283_v10, %v291_v11 }
 0x123   :  { %4959 = vmatpush1.bf16.msra.mxu0 %v7484_v18  ;;  %5082 = vmatpush1.bf16.msra.mxu1 %v7486_v19  ;;  %v7613_v18 = vcombine.high %v283_v10, %v291_v11  ;;  %v7615_v19 = vcombine.high %v284_v13, %v292_v14  ;;  %v396_v10 = vld [vmem:[#allocation5 + $0xa18] sm:$0xff]  ;;  %v7710_v14 = vcombine.low %v380_v2, %v388_v3 }
 0x124   :  { %4960 = vmatprep.subr.bf16.mxu0 %v7501_v20  ;;  %5083 = vmatprep.subr.bf16.mxu1 %v7503_v21  ;;  %v299_v20 = vld [vmem:[#allocation5 + $0x710] sm:$0xff]  ;;  %v404_v11 = vld [vmem:[#allocation5 + $0xa58] sm:$0xff] }
 0x125   :  { %v307_v21 = vld [vmem:[#allocation5 + $0x750] sm:$0xff] }
 0x126   :  { %v7628_v15 = vcombine.low %v299_v20, %v307_v21 }
 0x127   :  { %4961 = vmatpush1.bf16.msra.mxu0 %v7500_v28  ;;  %5084 = vmatpush1.bf16.msra.mxu1 %v7502_v29  ;;  %v7629_v28 = vcombine.high %v299_v20, %v307_v21  ;;  %v7631_v29 = vcombine.high %v300_v22, %v308_v23  ;;  %v412_v20 = vld [vmem:[#allocation5 + $0xa98] sm:$0xff]  ;;  %v7726_v23 = vcombine.low %v396_v10, %v404_v11 }
 0x128   :  { %4962 = vmatprep.subr.bf16.mxu0 %v7517_v30  ;;  %5085 = vmatprep.subr.bf16.mxu1 %v7519_v31  ;;  %v315_v30 = vld [vmem:[#allocation5 + $0x790] sm:$0xff]  ;;  %v420_v21 = vld [vmem:[#allocation5 + $0xad8] sm:$0xff] }
 0x129   :  { %v323_v31 = vld [vmem:[#allocation5 + $0x7d0] sm:$0xff] }
 0x12a   :  { %v7644_v43 = vcombine.low %v315_v30, %v323_v31 }
 0x12b   :  { %4963 = vmatpush1.bf16.msra.mxu0 %v7516_v36  ;;  %5086 = vmatpush1.bf16.msra.mxu1 %v7518_v37  ;;  %v7645_v36 = vcombine.high %v315_v30, %v323_v31  ;;  %v7647_v37 = vcombine.high %v316_v32, %v324_v33  ;;  %v428_v30 = vld [vmem:[#allocation5 + $0xb18] sm:$0xff]  ;;  %v7742_v33 = vcombine.low %v412_v20, %v420_v21 }
 0x12c   :  { %4964 = vmatprep.subr.bf16.mxu0 %v7533_v39  ;;  %5087 = vmatprep.subr.bf16.mxu1 %v7535_v40  ;;  %v331_v39 = vld [vmem:[#allocation5 + $0x810] sm:$0xff]  ;;  %v436_v31 = vld [vmem:[#allocation5 + $0xb58] sm:$0xff] }
 0x12d   :  { %v339_v40 = vld [vmem:[#allocation5 + $0x850] sm:$0xff] }
 0x12e   :  { %v7660_v50 = vcombine.low %v331_v39, %v339_v40 }
 0x12f   :  { %4965 = vmatpush1.bf16.msra.mxu0 %v7532_v45  ;;  %5088 = vmatpush1.bf16.msra.mxu1 %v7534_v46  ;;  %v7661_v45 = vcombine.high %v331_v39, %v339_v40  ;;  %v7663_v46 = vcombine.high %v332_v41, %v340_v42  ;;  %v444_v39 = vld [vmem:[#allocation5 + $0xb98] sm:$0xff]  ;;  %v7758_v42 = vcombine.low %v428_v30, %v436_v31 }
 0x130   :  { %4966 = vmatprep.subr.bf16.mxu0 %v7549_v47  ;;  %5089 = vmatprep.subr.bf16.mxu1 %v7551_v24  ;;  %v347_v47 = vld [vmem:[#allocation5 + $0x890] sm:$0xff]  ;;  %v452_v40 = vld [vmem:[#allocation5 + $0xbd8] sm:$0xff] }
 0x131   :  { %v355_v24 = vld [vmem:[#allocation5 + $0x8d0] sm:$0xff] }
 0x132   :  { %v7676_v60 = vcombine.low %v347_v47, %v355_v24 }
 0x133   :  { %4967 = vmatpush1.bf16.msra.mxu0 %v7548_v52  ;;  %5090 = vmatpush1.bf16.msra.mxu1 %v7550_v54  ;;  %v7677_v52 = vcombine.high %v347_v47, %v355_v24  ;;  %v7679_v54 = vcombine.high %v348_v48, %v356_v49  ;;  %v460_v47 = vld [vmem:[#allocation5 + $0xc18] sm:$0xff]  ;;  %v7774_v49 = vcombine.low %v444_v39, %v452_v40 }
 0x134   :  { %4968 = vmatprep.subr.bf16.mxu0 %v7565_v55  ;;  %5091 = vmatprep.subr.bf16.mxu1 %v7567_v56  ;;  %v363_v55 = vld [vmem:[#allocation5 + $0x910] sm:$0xff]  ;;  %v468_v24 = vld [vmem:[#allocation5 + $0xc58] sm:$0xff] }
 0x135   :  { %v371_v56 = vld [vmem:[#allocation5 + $0x950] sm:$0xff] }
 0x136   :  { %v7692_v4 = vcombine.low %v363_v55, %v371_v56 }
 0x137   :  { %4969 = vmatpush1.bf16.msra.mxu0 %v7564_v62  ;;  %5092 = vmatpush1.bf16.msra.mxu1 %v7566_v63  ;;  %v7693_v62 = vcombine.high %v363_v55, %v371_v56  ;;  %v7695_v63 = vcombine.high %v364_v58, %v372_v59  ;;  %v476_v55 = vld [vmem:[#allocation5 + $0xc98] sm:$0xff]  ;;  %v7790_v59 = vcombine.low %v460_v47, %v468_v24 }
 0x138   :  { %4970 = vmatprep.subr.bf16.mxu0 %v7581_v0  ;;  %5093 = vmatprep.subr.bf16.mxu1 %v7583_v1  ;;  %v379_v0 = vld [vmem:[#allocation5 + $0x990] sm:$0xff]  ;;  %v484_v56 = vld [vmem:[#allocation5 + $0xcd8] sm:$0xff] }
 0x139   :  { %v387_v1 = vld [vmem:[#allocation5 + $0x9d0] sm:$0xff] }
 0x13a   :  { %v7708_v13 = vcombine.low %v379_v0, %v387_v1 }
 0x13b   :  { %4971 = vmatpush1.bf16.msra.mxu0 %v7580_v6  ;;  %5094 = vmatpush1.bf16.msra.mxu1 %v7582_v7  ;;  %v7709_v6 = vcombine.high %v379_v0, %v387_v1  ;;  %v7711_v7 = vcombine.high %v380_v2, %v388_v3  ;;  %v492_v0 = vld [vmem:[#allocation5 + $0xd18] sm:$0xff]  ;;  %v7806_v3 = vcombine.low %v476_v55, %v484_v56 }
 0x13c   :  { %4972 = vmatprep.subr.bf16.mxu0 %v7597_v8  ;;  %5095 = vmatprep.subr.bf16.mxu1 %v7599_v9  ;;  %v395_v8 = vld [vmem:[#allocation5 + $0xa10] sm:$0xff]  ;;  %v500_v1 = vld [vmem:[#allocation5 + $0xd58] sm:$0xff] }
 0x13d   :  { %v403_v9 = vld [vmem:[#allocation5 + $0xa50] sm:$0xff] }
 0x13e   :  { %v7724_v22 = vcombine.low %v395_v8, %v403_v9 }
 0x13f   :  { %4973 = vmatpush1.bf16.msra.mxu0 %v7596_v16  ;;  %5096 = vmatpush1.bf16.msra.mxu1 %v7598_v17  ;;  %v7725_v16 = vcombine.high %v395_v8, %v403_v9  ;;  %v7727_v17 = vcombine.high %v396_v10, %v404_v11  ;;  %v508_v8 = vld [vmem:[#allocation5 + $0xd98] sm:$0xff]  ;;  %v7822_v11 = vcombine.low %v492_v0, %v500_v1 }
 0x140   :  { %4974 = vmatprep.subr.bf16.mxu0 %v7613_v18  ;;  %5097 = vmatprep.subr.bf16.mxu1 %v7615_v19  ;;  %v411_v18 = vld [vmem:[#allocation5 + $0xa90] sm:$0xff]  ;;  %v516_v9 = vld [vmem:[#allocation5 + $0xdd8] sm:$0xff] }
 0x141   :  { %v419_v19 = vld [vmem:[#allocation5 + $0xad0] sm:$0xff] }
 0x142   :  { %v7740_v32 = vcombine.low %v411_v18, %v419_v19 }
 0x143   :  { %4975 = vmatpush1.bf16.msra.mxu0 %v7612_v26  ;;  %5098 = vmatpush1.bf16.msra.mxu1 %v7614_v27  ;;  %v7741_v26 = vcombine.high %v411_v18, %v419_v19  ;;  %v7743_v27 = vcombine.high %v412_v20, %v420_v21  ;;  %v524_v18 = vld [vmem:[#allocation5 + $0xe18] sm:$0xff]  ;;  %v7838_v21 = vcombine.low %v508_v8, %v516_v9 }
 0x144   :  { %4976 = vmatprep.subr.bf16.mxu0 %v7629_v28  ;;  %5099 = vmatprep.subr.bf16.mxu1 %v7631_v29  ;;  %v427_v28 = vld [vmem:[#allocation5 + $0xb10] sm:$0xff]  ;;  %v532_v19 = vld [vmem:[#allocation5 + $0xe58] sm:$0xff] }
 0x145   :  { %v435_v29 = vld [vmem:[#allocation5 + $0xb50] sm:$0xff] }
 0x146   :  { %v7756_v41 = vcombine.low %v427_v28, %v435_v29 }
 0x147   :  { %4977 = vmatpush1.bf16.msra.mxu0 %v7628_v15  ;;  %5100 = vmatpush1.bf16.msra.mxu1 %v7630_v35  ;;  %v7757_v15 = vcombine.high %v427_v28, %v435_v29  ;;  %v7759_v35 = vcombine.high %v428_v30, %v436_v31  ;;  %v540_v28 = vld [vmem:[#allocation5 + $0xe98] sm:$0xff]  ;;  %v7854_v31 = vcombine.low %v524_v18, %v532_v19 }
 0x148   :  { %4978 = vmatprep.subr.bf16.mxu0 %v7645_v36  ;;  %5101 = vmatprep.subr.bf16.mxu1 %v7647_v37  ;;  %v443_v36 = vld [vmem:[#allocation5 + $0xb90] sm:$0xff]  ;;  %v548_v29 = vld [vmem:[#allocation5 + $0xed8] sm:$0xff] }
 0x149   :  { %v451_v37 = vld [vmem:[#allocation5 + $0xbd0] sm:$0xff] }
 0x14a   :  { %v7772_v48 = vcombine.low %v443_v36, %v451_v37 }
 0x14b   :  { %4979 = vmatpush1.bf16.msra.mxu0 %v7644_v43  ;;  %5102 = vmatpush1.bf16.msra.mxu1 %v7646_v44  ;;  %v7773_v43 = vcombine.high %v443_v36, %v451_v37  ;;  %v7775_v44 = vcombine.high %v444_v39, %v452_v40  ;;  %v556_v36 = vld [vmem:[#allocation5 + $0xf18] sm:$0xff]  ;;  %v7870_v40 = vcombine.low %v540_v28, %v548_v29 }
 0x14c   :  { %4989 = vmatprep.subr.bf16.mxu0 %v7661_v45  ;;  %5112 = vmatprep.subr.bf16.mxu1 %v7663_v46  ;;  %v459_v45 = vld [vmem:[#allocation5 + $0xc10] sm:$0xff]  ;;  %v564_v37 = vld [vmem:[#allocation5 + $0xf58] sm:$0xff] }
 0x14d   :  { %v467_v46 = vld [vmem:[#allocation5 + $0xc50] sm:$0xff] }
 0x14e   :  { %4981 = vmatmul.mubr.bf16.vlgmr.msra.gmra.mrb[4].mxu0 %v8891_v12  ;;  %5104 = vmatmul.mubr.bf16.vlgmr.msra.gmra.mrb[4].mxu1 %v8891_v12  ;;  %v7788_v58 = vcombine.low %v459_v45, %v467_v46 }
 0x14f   :  { %4990 = vmatpush1.bf16.msra.mxu0 %v7660_v50  ;;  %5113 = vmatpush1.bf16.msra.mxu1 %v7662_v51  ;;  %v7789_v50 = vcombine.high %v459_v45, %v467_v46  ;;  %v7791_v51 = vcombine.high %v460_v47, %v468_v24  ;;  %v572_v45 = vld [vmem:[#allocation5 + $0xf98] sm:$0xff]  ;;  %v7886_v24 = vcombine.low %v556_v36, %v564_v37 }
 0x150   :  { %4991 = vmatprep.subr.bf16.mxu0 %v7677_v52  ;;  %5114 = vmatprep.subr.bf16.mxu1 %v7679_v54  ;;  %v475_v52 = vld [vmem:[#allocation5 + $0xc90] sm:$0xff]  ;;  %v580_v46 = vld [vmem:[#allocation5 + $0xfd8] sm:$0xff] }
 0x151   :  { %5021 = vmatprep.mubr.bf16.mxu0 %v8897_v53  ;;  %5144 = vmatprep.mubr.bf16.mxu1 %v8897_v53  ;;  %v483_v54 = vld [vmem:[#allocation5 + $0xcd0] sm:$0xff] }
 0x152   :  { %v7804_v2 = vcombine.low %v475_v52, %v483_v54 }
 0x153   :  { %4992 = vmatpush1.bf16.msra.mxu0 %v7676_v60  ;;  %5115 = vmatpush1.bf16.msra.mxu1 %v7678_v61  ;;  %v7805_v60 = vcombine.high %v475_v52, %v483_v54  ;;  %v7807_v61 = vcombine.high %v476_v55, %v484_v56  ;;  %v588_v52 = vld [vmem:[#allocation5 + $0x1018] sm:$0xff]  ;;  %v7902_v56 = vcombine.low %v572_v45, %v580_v46 }
 0x154   :  { %4993 = vmatprep.subr.bf16.mxu0 %v7693_v62  ;;  %5116 = vmatprep.subr.bf16.mxu1 %v7695_v63  ;;  %v491_v62 = vld [vmem:[#allocation5 + $0xd10] sm:$0xff]  ;;  %v596_v54 = vld [vmem:[#allocation5 + $0x1058] sm:$0xff] }
 0x155   :  { %v499_v63 = vld [vmem:[#allocation5 + $0xd50] sm:$0xff] }
 0x156   :  { %v7820_v10 = vcombine.low %v491_v62, %v499_v63 }
 0x157   :  { %4994 = vmatpush1.bf16.msra.mxu0 %v7692_v4  ;;  %5117 = vmatpush1.bf16.msra.mxu1 %v7694_v5  ;;  %v7821_v4 = vcombine.high %v491_v62, %v499_v63  ;;  %v7823_v5 = vcombine.high %v492_v0, %v500_v1  ;;  %v604_v62 = vld [vmem:[#allocation5 + $0x1098] sm:$0xff]  ;;  %v7918_v1 = vcombine.low %v588_v52, %v596_v54 }
 0x158   :  { %4995 = vmatprep.subr.bf16.mxu0 %v7709_v6  ;;  %5118 = vmatprep.subr.bf16.mxu1 %v7711_v7  ;;  %v507_v6 = vld [vmem:[#allocation5 + $0xd90] sm:$0xff]  ;;  %v612_v63 = vld [vmem:[#allocation5 + $0x10d8] sm:$0xff] }
 0x159   :  { %v515_v7 = vld [vmem:[#allocation5 + $0xdd0] sm:$0xff] }
 0x15a   :  { %v7836_v20 = vcombine.low %v507_v6, %v515_v7 }
 0x15b   :  { %4996 = vmatpush1.bf16.msra.mxu0 %v7708_v13  ;;  %5119 = vmatpush1.bf16.msra.mxu1 %v7710_v14  ;;  %v7837_v13 = vcombine.high %v507_v6, %v515_v7  ;;  %v7839_v14 = vcombine.high %v508_v8, %v516_v9  ;;  %v620_v6 = vld [vmem:[#allocation5 + $0x1118] sm:$0xff]  ;;  %v7934_v9 = vcombine.low %v604_v62, %v612_v63 }
 0x15c   :  { %4997 = vmatprep.subr.bf16.mxu0 %v7725_v16  ;;  %5120 = vmatprep.subr.bf16.mxu1 %v7727_v17  ;;  %v523_v16 = vld [vmem:[#allocation5 + $0xe10] sm:$0xff]  ;;  %v628_v7 = vld [vmem:[#allocation5 + $0x1158] sm:$0xff] }
 0x15d   :  { %v531_v17 = vld [vmem:[#allocation5 + $0xe50] sm:$0xff] }
 0x15e   :  { %v7852_v30 = vcombine.low %v523_v16, %v531_v17 }
 0x15f   :  { %4998 = vmatpush1.bf16.msra.mxu0 %v7724_v22  ;;  %5121 = vmatpush1.bf16.msra.mxu1 %v7726_v23  ;;  %v7853_v22 = vcombine.high %v523_v16, %v531_v17  ;;  %v7855_v23 = vcombine.high %v524_v18, %v532_v19  ;;  %v636_v16 = vld [vmem:[#allocation5 + $0x1198] sm:$0xff]  ;;  %v7950_v19 = vcombine.low %v620_v6, %v628_v7 }
 0x160   :  { %4999 = vmatprep.subr.bf16.mxu0 %v7741_v26  ;;  %5122 = vmatprep.subr.bf16.mxu1 %v7743_v27  ;;  %v539_v26 = vld [vmem:[#allocation5 + $0xe90] sm:$0xff]  ;;  %v644_v17 = vld [vmem:[#allocation5 + $0x11d8] sm:$0xff] }
 0x161   :  { %v547_v27 = vld [vmem:[#allocation5 + $0xed0] sm:$0xff] }
 0x162   :  { %v7868_v39 = vcombine.low %v539_v26, %v547_v27 }
 0x163   :  { %5000 = vmatpush1.bf16.msra.mxu0 %v7740_v32  ;;  %5123 = vmatpush1.bf16.msra.mxu1 %v7742_v33  ;;  %v7869_v32 = vcombine.high %v539_v26, %v547_v27  ;;  %v7871_v33 = vcombine.high %v540_v28, %v548_v29  ;;  %v652_v26 = vld [vmem:[#allocation5 + $0x1218] sm:$0xff]  ;;  %v7966_v29 = vcombine.low %v636_v16, %v644_v17 }
 0x164   :  { %5001 = vmatprep.subr.bf16.mxu0 %v7757_v15  ;;  %5124 = vmatprep.subr.bf16.mxu1 %v7759_v35  ;;  %v555_v15 = vld [vmem:[#allocation5 + $0xf10] sm:$0xff]  ;;  %v660_v27 = vld [vmem:[#allocation5 + $0x1258] sm:$0xff] }
 0x165   :  { %v563_v35 = vld [vmem:[#allocation5 + $0xf50] sm:$0xff] }
 0x166   :  { %v7884_v47 = vcombine.low %v555_v15, %v563_v35 }
 0x167   :  { %5002 = vmatpush1.bf16.msra.mxu0 %v7756_v41  ;;  %5125 = vmatpush1.bf16.msra.mxu1 %v7758_v42  ;;  %v7885_v41 = vcombine.high %v555_v15, %v563_v35  ;;  %v7887_v42 = vcombine.high %v556_v36, %v564_v37  ;;  %v668_v15 = vld [vmem:[#allocation5 + $0x1298] sm:$0xff]  ;;  %v7982_v37 = vcombine.low %v652_v26, %v660_v27 }
 0x168   :  { %5003 = vmatprep.subr.bf16.mxu0 %v7773_v43  ;;  %5126 = vmatprep.subr.bf16.mxu1 %v7775_v44  ;;  %v571_v43 = vld [vmem:[#allocation5 + $0xf90] sm:$0xff]  ;;  %v676_v35 = vld [vmem:[#allocation5 + $0x12d8] sm:$0xff] }
 0x169   :  { %v579_v44 = vld [vmem:[#allocation5 + $0xfd0] sm:$0xff] }
 0x16a   :  { %v7900_v55 = vcombine.low %v571_v43, %v579_v44 }
 0x16b   :  { %5004 = vmatpush1.bf16.msra.mxu0 %v7772_v48  ;;  %5127 = vmatpush1.bf16.msra.mxu1 %v7774_v49  ;;  %v7901_v48 = vcombine.high %v571_v43, %v579_v44  ;;  %v7903_v49 = vcombine.high %v572_v45, %v580_v46  ;;  %v684_v43 = vld [vmem:[#allocation5 + $0x1318] sm:$0xff]  ;;  %v7998_v46 = vcombine.low %v668_v15, %v676_v35 }
 0x16c   :  { %5005 = vmatprep.subr.bf16.mxu0 %v7789_v50  ;;  %5128 = vmatprep.subr.bf16.mxu1 %v7791_v51  ;;  %v587_v50 = vld [vmem:[#allocation5 + $0x1010] sm:$0xff]  ;;  %v692_v44 = vld [vmem:[#allocation5 + $0x1358] sm:$0xff] }
 0x16d   :  { %v595_v51 = vld [vmem:[#allocation5 + $0x1050] sm:$0xff] }
 0x16e   :  { %v7916_v0 = vcombine.low %v587_v50, %v595_v51 }
 0x16f   :  { %5006 = vmatpush1.bf16.msra.mxu0 %v7788_v58  ;;  %5129 = vmatpush1.bf16.msra.mxu1 %v7790_v59  ;;  %v7917_v58 = vcombine.high %v587_v50, %v595_v51  ;;  %v7919_v59 = vcombine.high %v588_v52, %v596_v54  ;;  %v700_v50 = vld [vmem:[#allocation5 + $0x1398] sm:$0xff]  ;;  %v8014_v54 = vcombine.low %v684_v43, %v692_v44 }
 0x170   :  { %5007 = vmatprep.subr.bf16.mxu0 %v7805_v60  ;;  %5130 = vmatprep.subr.bf16.mxu1 %v7807_v61  ;;  %v603_v60 = vld [vmem:[#allocation5 + $0x1090] sm:$0xff]  ;;  %v708_v51 = vld [vmem:[#allocation5 + $0x13d8] sm:$0xff] }
 0x171   :  { %v611_v61 = vld [vmem:[#allocation5 + $0x10d0] sm:$0xff] }
 0x172   :  { %v7932_v8 = vcombine.low %v603_v60, %v611_v61 }
 0x173   :  { %5008 = vmatpush1.bf16.msra.mxu0 %v7804_v2  ;;  %5131 = vmatpush1.bf16.msra.mxu1 %v7806_v3  ;;  %v7933_v2 = vcombine.high %v603_v60, %v611_v61  ;;  %v7935_v3 = vcombine.high %v604_v62, %v612_v63  ;;  %v716_v60 = vld [vmem:[#allocation5 + $0x1418] sm:$0xff]  ;;  %v8030_v63 = vcombine.low %v700_v50, %v708_v51 }
 0x174   :  { %5009 = vmatprep.subr.bf16.mxu0 %v7821_v4  ;;  %5132 = vmatprep.subr.bf16.mxu1 %v7823_v5  ;;  %v619_v4 = vld [vmem:[#allocation5 + $0x1110] sm:$0xff]  ;;  %v724_v61 = vld [vmem:[#allocation5 + $0x1458] sm:$0xff] }
 0x175   :  { %v627_v5 = vld [vmem:[#allocation5 + $0x1150] sm:$0xff] }
 0x176   :  { %v7948_v18 = vcombine.low %v619_v4, %v627_v5 }
 0x177   :  { %5010 = vmatpush1.bf16.msra.mxu0 %v7820_v10  ;;  %5133 = vmatpush1.bf16.msra.mxu1 %v7822_v11  ;;  %v7949_v10 = vcombine.high %v619_v4, %v627_v5  ;;  %v7951_v11 = vcombine.high %v620_v6, %v628_v7  ;;  %v732_v4 = vld [vmem:[#allocation5 + $0x1498] sm:$0xff]  ;;  %v8046_v7 = vcombine.low %v716_v60, %v724_v61 }
 0x178   :  { %5011 = vmatprep.subr.bf16.mxu0 %v7837_v13  ;;  %5134 = vmatprep.subr.bf16.mxu1 %v7839_v14  ;;  %v635_v13 = vld [vmem:[#allocation5 + $0x1190] sm:$0xff]  ;;  %v740_v5 = vld [vmem:[#allocation5 + $0x14d8] sm:$0xff] }
 0x179   :  { %v643_v14 = vld [vmem:[#allocation5 + $0x11d0] sm:$0xff] }
 0x17a   :  { %v7964_v28 = vcombine.low %v635_v13, %v643_v14 }
 0x17b   :  { %5012 = vmatpush1.bf16.msra.mxu0 %v7836_v20  ;;  %5135 = vmatpush1.bf16.msra.mxu1 %v7838_v21  ;;  %v7965_v20 = vcombine.high %v635_v13, %v643_v14  ;;  %v7967_v21 = vcombine.high %v636_v16, %v644_v17  ;;  %v748_v13 = vld [vmem:[#allocation5 + $0x1518] sm:$0xff]  ;;  %v8062_v17 = vcombine.low %v732_v4, %v740_v5 }
 0x17c   :  { %5013 = vmatprep.subr.bf16.mxu0 %v7853_v22  ;;  %5136 = vmatprep.subr.bf16.mxu1 %v7855_v23  ;;  %v651_v22 = vld [vmem:[#allocation5 + $0x1210] sm:$0xff]  ;;  %v756_v14 = vld [vmem:[#allocation5 + $0x1558] sm:$0xff] }
 0x17d   :  { %v659_v23 = vld [vmem:[#allocation5 + $0x1250] sm:$0xff] }
 0x17e   :  { %v7980_v36 = vcombine.low %v651_v22, %v659_v23 }
 0x17f   :  { %5014 = vmatpush1.bf16.msra.mxu0 %v7852_v30  ;;  %5137 = vmatpush1.bf16.msra.mxu1 %v7854_v31  ;;  %v7981_v30 = vcombine.high %v651_v22, %v659_v23  ;;  %v7983_v31 = vcombine.high %v652_v26, %v660_v27  ;;  %v764_v22 = vld [vmem:[#allocation5 + $0x1598] sm:$0xff]  ;;  %v8078_v27 = vcombine.low %v748_v13, %v756_v14 }
 0x180   :  { %5015 = vmatprep.subr.bf16.mxu0 %v7869_v32  ;;  %5138 = vmatprep.subr.bf16.mxu1 %v7871_v33  ;;  %v667_v32 = vld [vmem:[#allocation5 + $0x1290] sm:$0xff]  ;;  %v772_v23 = vld [vmem:[#allocation5 + $0x15d8] sm:$0xff] }
 0x181   :  { %v675_v33 = vld [vmem:[#allocation5 + $0x12d0] sm:$0xff] }
 0x182   :  { %v7996_v45 = vcombine.low %v667_v32, %v675_v33 }
 0x183   :  { %5016 = vmatpush1.bf16.msra.mxu0 %v7868_v39  ;;  %5139 = vmatpush1.bf16.msra.mxu1 %v7870_v40  ;;  %v7997_v39 = vcombine.high %v667_v32, %v675_v33  ;;  %v7999_v40 = vcombine.high %v668_v15, %v676_v35  ;;  %v780_v32 = vld [vmem:[#allocation5 + $0x1618] sm:$0xff]  ;;  %v8094_v35 = vcombine.low %v764_v22, %v772_v23 }
 0x184   :  { %5017 = vmatprep.subr.bf16.mxu0 %v7885_v41  ;;  %5140 = vmatprep.subr.bf16.mxu1 %v7887_v42  ;;  %v683_v41 = vld [vmem:[#allocation5 + $0x1310] sm:$0xff]  ;;  %v788_v33 = vld [vmem:[#allocation5 + $0x1658] sm:$0xff] }
 0x185   :  { %v691_v42 = vld [vmem:[#allocation5 + $0x1350] sm:$0xff] }
 0x186   :  { %v8012_v52 = vcombine.low %v683_v41, %v691_v42 }
 0x187   :  { %5018 = vmatpush1.bf16.msra.mxu0 %v7884_v47  ;;  %5141 = vmatpush1.bf16.msra.mxu1 %v7886_v24  ;;  %v8013_v47 = vcombine.high %v683_v41, %v691_v42  ;;  %v8015_v24 = vcombine.high %v684_v43, %v692_v44  ;;  %v796_v41 = vld [vmem:[#allocation5 + $0x1698] sm:$0xff]  ;;  %v8110_v44 = vcombine.low %v780_v32, %v788_v33 }
 0x188   :  { %5019 = vmatprep.subr.bf16.mxu0 %v7901_v48  ;;  %5142 = vmatprep.subr.bf16.mxu1 %v7903_v49  ;;  %v699_v48 = vld [vmem:[#allocation5 + $0x1390] sm:$0xff]  ;;  %v804_v42 = vld [vmem:[#allocation5 + $0x16d8] sm:$0xff] }
 0x189   :  { %v707_v49 = vld [vmem:[#allocation5 + $0x13d0] sm:$0xff] }
 0x18a   :  { %v8028_v62 = vcombine.low %v699_v48, %v707_v49 }
 0x18b   :  { %5020 = vmatpush1.bf16.msra.mxu0 %v7900_v55  ;;  %5143 = vmatpush1.bf16.msra.mxu1 %v7902_v56  ;;  %v8029_v55 = vcombine.high %v699_v48, %v707_v49  ;;  %v8031_v56 = vcombine.high %v700_v50, %v708_v51  ;;  %v812_v48 = vld [vmem:[#allocation5 + $0x1718] sm:$0xff]  ;;  %v8126_v51 = vcombine.low %v796_v41, %v804_v42 }
 0x18c   :  { %5030 = vmatprep.subr.bf16.mxu0 %v7917_v58  ;;  %5153 = vmatprep.subr.bf16.mxu1 %v7919_v59  ;;  %v715_v58 = vld [vmem:[#allocation5 + $0x1410] sm:$0xff]  ;;  %v820_v49 = vld [vmem:[#allocation5 + $0x1758] sm:$0xff] }
 0x18d   :  { %v723_v59 = vld [vmem:[#allocation5 + $0x1450] sm:$0xff] }
 0x18e   :  { %5022 = vmatmul.mubr.bf16.vlgmr.msra.gmra.mrb[4].mxu0 %v8907_v25  ;;  %5145 = vmatmul.mubr.bf16.vlgmr.msra.gmra.mrb[4].mxu1 %v8907_v25  ;;  %v8044_v6 = vcombine.low %v715_v58, %v723_v59 }
 0x18f   :  { %5031 = vmatpush1.bf16.msra.mxu0 %v7916_v0  ;;  %5154 = vmatpush1.bf16.msra.mxu1 %v7918_v1  ;;  %v8045_v0 = vcombine.high %v715_v58, %v723_v59  ;;  %v8047_v1 = vcombine.high %v716_v60, %v724_v61  ;;  %v828_v58 = vld [vmem:[#allocation5 + $0x1798] sm:$0xff]  ;;  %v8142_v61 = vcombine.low %v812_v48, %v820_v49 }
 0x190   :  { %5032 = vmatprep.subr.bf16.mxu0 %v7933_v2  ;;  %5155 = vmatprep.subr.bf16.mxu1 %v7935_v3  ;;  %v731_v2 = vld [vmem:[#allocation5 + $0x1490] sm:$0xff]  ;;  %v836_v59 = vld [vmem:[#allocation5 + $0x17d8] sm:$0xff] }
 0x191   :  { %5062 = vmatprep.mubr.bf16.mxu0 %v8911_v34  ;;  %5185 = vmatprep.mubr.bf16.mxu1 %v8911_v34  ;;  %v739_v3 = vld [vmem:[#allocation5 + $0x14d0] sm:$0xff] }
 0x192   :  { %v8060_v16 = vcombine.low %v731_v2, %v739_v3 }
 0x193   :  { %5033 = vmatpush1.bf16.msra.mxu0 %v7932_v8  ;;  %5156 = vmatpush1.bf16.msra.mxu1 %v7934_v9  ;;  %v8061_v8 = vcombine.high %v731_v2, %v739_v3  ;;  %v8063_v9 = vcombine.high %v732_v4, %v740_v5  ;;  %v78_v2 = vld [vmem:[#allocation5 + $0x28] sm:$0xff]  ;;  %v8158_v5 = vcombine.low %v828_v58, %v836_v59 }
 0x194   :  { %5034 = vmatprep.subr.bf16.mxu0 %v7949_v10  ;;  %5157 = vmatprep.subr.bf16.mxu1 %v7951_v11  ;;  %v747_v10 = vld [vmem:[#allocation5 + $0x1510] sm:$0xff]  ;;  %v86_v3 = vld [vmem:[#allocation5 + $0x68] sm:$0xff] }
 0x195   :  { %v755_v11 = vld [vmem:[#allocation5 + $0x1550] sm:$0xff] }
 0x196   :  { %v8076_v26 = vcombine.low %v747_v10, %v755_v11 }
 0x197   :  { %5035 = vmatpush1.bf16.msra.mxu0 %v7948_v18  ;;  %5158 = vmatpush1.bf16.msra.mxu1 %v7950_v19  ;;  %v8077_v18 = vcombine.high %v747_v10, %v755_v11  ;;  %v8079_v19 = vcombine.high %v748_v13, %v756_v14  ;;  %v94_v10 = vld [vmem:[#allocation5 + $0xa8] sm:$0xff]  ;;  %v7410_v14 = vcombine.low %v78_v2, %v86_v3 }
 0x198   :  { %5036 = vmatprep.subr.bf16.mxu0 %v7965_v20  ;;  %5159 = vmatprep.subr.bf16.mxu1 %v7967_v21  ;;  %v763_v20 = vld [vmem:[#allocation5 + $0x1590] sm:$0xff]  ;;  %v102_v11 = vld [vmem:[#allocation5 + $0xe8] sm:$0xff] }
 0x199   :  { %v771_v21 = vld [vmem:[#allocation5 + $0x15d0] sm:$0xff] }
 0x19a   :  { %v8092_v15 = vcombine.low %v763_v20, %v771_v21 }
 0x19b   :  { %5037 = vmatpush1.bf16.msra.mxu0 %v7964_v28  ;;  %5160 = vmatpush1.bf16.msra.mxu1 %v7966_v29  ;;  %v8093_v28 = vcombine.high %v763_v20, %v771_v21  ;;  %v8095_v29 = vcombine.high %v764_v22, %v772_v23  ;;  %v110_v20 = vld [vmem:[#allocation5 + $0x128] sm:$0xff]  ;;  %v7426_v23 = vcombine.low %v94_v10, %v102_v11 }
 0x19c   :  { %5038 = vmatprep.subr.bf16.mxu0 %v7981_v30  ;;  %5161 = vmatprep.subr.bf16.mxu1 %v7983_v31  ;;  %v779_v30 = vld [vmem:[#allocation5 + $0x1610] sm:$0xff]  ;;  %v118_v21 = vld [vmem:[#allocation5 + $0x168] sm:$0xff] }
 0x19d   :  { %v787_v31 = vld [vmem:[#allocation5 + $0x1650] sm:$0xff] }
 0x19e   :  { %v8108_v43 = vcombine.low %v779_v30, %v787_v31 }
 0x19f   :  { %5039 = vmatpush1.bf16.msra.mxu0 %v7980_v36  ;;  %5162 = vmatpush1.bf16.msra.mxu1 %v7982_v37  ;;  %v8109_v36 = vcombine.high %v779_v30, %v787_v31  ;;  %v8111_v37 = vcombine.high %v780_v32, %v788_v33  ;;  %v126_v30 = vld [vmem:[#allocation5 + $0x1a8] sm:$0xff]  ;;  %v7442_v33 = vcombine.low %v110_v20, %v118_v21 }
 0x1a0   :  { %5040 = vmatprep.subr.bf16.mxu0 %v7997_v39  ;;  %5163 = vmatprep.subr.bf16.mxu1 %v7999_v40  ;;  %v795_v39 = vld [vmem:[#allocation5 + $0x1690] sm:$0xff]  ;;  %v134_v31 = vld [vmem:[#allocation5 + $0x1e8] sm:$0xff] }
 0x1a1   :  { %v803_v40 = vld [vmem:[#allocation5 + $0x16d0] sm:$0xff] }
 0x1a2   :  { %v8124_v50 = vcombine.low %v795_v39, %v803_v40 }
 0x1a3   :  { %5041 = vmatpush1.bf16.msra.mxu0 %v7996_v45  ;;  %5164 = vmatpush1.bf16.msra.mxu1 %v7998_v46  ;;  %v8125_v45 = vcombine.high %v795_v39, %v803_v40  ;;  %v8127_v46 = vcombine.high %v796_v41, %v804_v42  ;;  %v142_v39 = vld [vmem:[#allocation5 + $0x228] sm:$0xff]  ;;  %v7458_v42 = vcombine.low %v126_v30, %v134_v31 }
 0x1a4   :  { %5042 = vmatprep.subr.bf16.mxu0 %v8013_v47  ;;  %5165 = vmatprep.subr.bf16.mxu1 %v8015_v24  ;;  %v811_v47 = vld [vmem:[#allocation5 + $0x1710] sm:$0xff]  ;;  %v150_v40 = vld [vmem:[#allocation5 + $0x268] sm:$0xff] }
 0x1a5   :  { %v819_v24 = vld [vmem:[#allocation5 + $0x1750] sm:$0xff] }
 0x1a6   :  { %v8140_v60 = vcombine.low %v811_v47, %v819_v24 }
 0x1a7   :  { %5043 = vmatpush1.bf16.msra.mxu0 %v8012_v52  ;;  %5166 = vmatpush1.bf16.msra.mxu1 %v8014_v54  ;;  %v8141_v52 = vcombine.high %v811_v47, %v819_v24  ;;  %v8143_v54 = vcombine.high %v812_v48, %v820_v49  ;;  %v158_v47 = vld [vmem:[#allocation5 + $0x2a8] sm:$0xff]  ;;  %v7474_v49 = vcombine.low %v142_v39, %v150_v40 }
 0x1a8   :  { %5044 = vmatprep.subr.bf16.mxu0 %v8029_v55  ;;  %5167 = vmatprep.subr.bf16.mxu1 %v8031_v56  ;;  %v827_v55 = vld [vmem:[#allocation5 + $0x1790] sm:$0xff]  ;;  %v166_v24 = vld [vmem:[#allocation5 + $0x2e8] sm:$0xff] }
 0x1a9   :  { %v835_v56 = vld [vmem:[#allocation5 + $0x17d0] sm:$0xff] }
 0x1aa   :  { %v8156_v4 = vcombine.low %v827_v55, %v835_v56 }
 0x1ab   :  { %5045 = vmatpush1.bf16.msra.mxu0 %v8028_v62  ;;  %5168 = vmatpush1.bf16.msra.mxu1 %v8030_v63  ;;  %v8157_v62 = vcombine.high %v827_v55, %v835_v56  ;;  %v8159_v63 = vcombine.high %v828_v58, %v836_v59  ;;  %v174_v55 = vld [vmem:[#allocation5 + $0x328] sm:$0xff]  ;;  %v7490_v59 = vcombine.low %v158_v47, %v166_v24 }
 0x1ac   :  { %5046 = vmatprep.subr.bf16.mxu0 %v8045_v0  ;;  %5169 = vmatprep.subr.bf16.mxu1 %v8047_v1  ;;  %v77_v0 = vld [vmem:[#allocation5 + $0x20] sm:$0xff]  ;;  %v182_v56 = vld [vmem:[#allocation5 + $0x368] sm:$0xff] }
 0x1ad   :  { %v85_v1 = vld [vmem:[#allocation5 + $0x60] sm:$0xff] }
 0x1ae   :  { %v7408_v13 = vcombine.low %v77_v0, %v85_v1 }
 0x1af   :  { %5047 = vmatpush1.bf16.msra.mxu0 %v8044_v6  ;;  %5170 = vmatpush1.bf16.msra.mxu1 %v8046_v7  ;;  %v7409_v6 = vcombine.high %v77_v0, %v85_v1  ;;  %v7411_v7 = vcombine.high %v78_v2, %v86_v3  ;;  %v197_v0 = vld [vmem:[#allocation5 + $0x3e0] sm:$0xff]  ;;  %v190_v3 = vld [vmem:[#allocation5 + $0x3a8] sm:$0xff] }
 0x1b0   :  { %5048 = vmatprep.subr.bf16.mxu0 %v8061_v8  ;;  %5171 = vmatprep.subr.bf16.mxu1 %v8063_v9  ;;  %v93_v8 = vld [vmem:[#allocation5 + $0xa0] sm:$0xff] }
 0x1b1   :  { %v101_v9 = vld [vmem:[#allocation5 + $0xe0] sm:$0xff] }
 0x1b2   :  { %v7424_v22 = vcombine.low %v93_v8, %v101_v9 }
 0x1b3   :  { %5049 = vmatpush1.bf16.msra.mxu0 %v8060_v16  ;;  %5172 = vmatpush1.bf16.msra.mxu1 %v8062_v17  ;;  %v7425_v16 = vcombine.high %v93_v8, %v101_v9  ;;  %v7427_v17 = vcombine.high %v94_v10, %v102_v11  ;;  %v7506_v10 = vcombine.low %v174_v55, %v182_v56 }
 0x1b4   :  { %5050 = vmatprep.subr.bf16.mxu0 %v8077_v18  ;;  %5173 = vmatprep.subr.bf16.mxu1 %v8079_v19  ;;  %v109_v18 = vld [vmem:[#allocation5 + $0x120] sm:$0xff] }
 0x1b5   :  { %v117_v19 = vld [vmem:[#allocation5 + $0x160] sm:$0xff] }
 0x1b6   :  { %v7440_v32 = vcombine.low %v109_v18, %v117_v19 }
 0x1b7   :  { %5051 = vmatpush1.bf16.msra.mxu0 %v8076_v26  ;;  %5174 = vmatpush1.bf16.msra.mxu1 %v8078_v27  ;;  %v7441_v26 = vcombine.high %v109_v18, %v117_v19  ;;  %v7443_v27 = vcombine.high %v110_v20, %v118_v21  ;;  %v206_v18 = vld [vmem:[#allocation5 + $0x428] sm:$0xff] }
 0x1b8   :  { %5052 = vmatprep.subr.bf16.mxu0 %v8093_v28  ;;  %5175 = vmatprep.subr.bf16.mxu1 %v8095_v29  ;;  %v125_v28 = vld [vmem:[#allocation5 + $0x1a0] sm:$0xff]  ;;  %v214_v19 = vld [vmem:[#allocation5 + $0x468] sm:$0xff] }
 0x1b9   :  { %v133_v29 = vld [vmem:[#allocation5 + $0x1e0] sm:$0xff] }
 0x1ba   :  { %v7456_v41 = vcombine.low %v125_v28, %v133_v29 }
 0x1bb   :  { %5053 = vmatpush1.bf16.msra.mxu0 %v8092_v15  ;;  %5176 = vmatpush1.bf16.msra.mxu1 %v8094_v35  ;;  %v7457_v15 = vcombine.high %v125_v28, %v133_v29  ;;  %v7459_v35 = vcombine.high %v126_v30, %v134_v31  ;;  %v222_v28 = vld [vmem:[#allocation5 + $0x4a8] sm:$0xff]  ;;  %v7538_v31 = vcombine.low %v206_v18, %v214_v19 }
 0x1bc   :  { %5054 = vmatprep.subr.bf16.mxu0 %v8109_v36  ;;  %5177 = vmatprep.subr.bf16.mxu1 %v8111_v37  ;;  %v141_v36 = vld [vmem:[#allocation5 + $0x220] sm:$0xff]  ;;  %v230_v29 = vld [vmem:[#allocation5 + $0x4e8] sm:$0xff] }
 0x1bd   :  { %v149_v37 = vld [vmem:[#allocation5 + $0x260] sm:$0xff] }
 0x1be   :  { %v7472_v48 = vcombine.low %v141_v36, %v149_v37 }
 0x1bf   :  { %5055 = vmatpush1.bf16.msra.mxu0 %v8108_v43  ;;  %5178 = vmatpush1.bf16.msra.mxu1 %v8110_v44  ;;  %v7473_v43 = vcombine.high %v141_v36, %v149_v37  ;;  %v7475_v44 = vcombine.high %v142_v39, %v150_v40  ;;  %v238_v36 = vld [vmem:[#allocation5 + $0x528] sm:$0xff]  ;;  %v7554_v40 = vcombine.low %v222_v28, %v230_v29 }
 0x1c0   :  { %5056 = vmatprep.subr.bf16.mxu0 %v8125_v45  ;;  %5179 = vmatprep.subr.bf16.mxu1 %v8127_v46  ;;  %v157_v45 = vld [vmem:[#allocation5 + $0x2a0] sm:$0xff]  ;;  %v246_v37 = vld [vmem:[#allocation5 + $0x568] sm:$0xff] }
 0x1c1   :  { %v165_v46 = vld [vmem:[#allocation5 + $0x2e0] sm:$0xff] }
 0x1c2   :  { %v7488_v58 = vcombine.low %v157_v45, %v165_v46 }
 0x1c3   :  { %5057 = vmatpush1.bf16.msra.mxu0 %v8124_v50  ;;  %5180 = vmatpush1.bf16.msra.mxu1 %v8126_v51  ;;  %v7489_v50 = vcombine.high %v157_v45, %v165_v46  ;;  %v7491_v51 = vcombine.high %v158_v47, %v166_v24  ;;  %v254_v45 = vld [vmem:[#allocation5 + $0x5a8] sm:$0xff]  ;;  %v7570_v24 = vcombine.low %v238_v36, %v246_v37 }
 0x1c4   :  { %5058 = vmatprep.subr.bf16.mxu0 %v8141_v52  ;;  %5181 = vmatprep.subr.bf16.mxu1 %v8143_v54  ;;  %v173_v52 = vld [vmem:[#allocation5 + $0x320] sm:$0xff]  ;;  %v262_v46 = vld [vmem:[#allocation5 + $0x5e8] sm:$0xff] }
 0x1c5   :  { %v181_v54 = vld [vmem:[#allocation5 + $0x360] sm:$0xff] }
 0x1c7   :  { %5059 = vmatpush1.bf16.msra.mxu0 %v8140_v60  ;;  %5182 = vmatpush1.bf16.msra.mxu1 %v8142_v61  ;;  %v7505_v60 = vcombine.high %v173_v52, %v181_v54 }
 0x1c8   :  { %5060 = vmatprep.subr.bf16.mxu0 %v8157_v62  ;;  %5183 = vmatprep.subr.bf16.mxu1 %v8159_v63  ;;  %v7507_v62 = vcombine.high %v174_v55, %v182_v56  ;;  %v189_v63 = vld [vmem:[#allocation5 + $0x3a0] sm:$0xff]  ;;  %v7586_v56 = vcombine.low %v254_v45, %v262_v46 }
 0x1c9   :  { %v7521_v11 = vcombine.high %v189_v63, %v197_v0  ;;  %v7520_v20 = vcombine.low %v189_v63, %v197_v0  ;;  %v286_v63 = vld [vmem:[#allocation5 + $0x6a8] sm:$0xff] }
 0x1ca   :  { %v294_v0 = vld [vmem:[#allocation5 + $0x6e8] sm:$0xff] }
 0x1cb   :  { %5061 = vmatpush1.bf16.msra.mxu0 %v8156_v4  ;;  %5184 = vmatpush1.bf16.msra.mxu1 %v8158_v5  ;;  %v198_v4 = vld [vmem:[#allocation5 + $0x3e8] sm:$0xff] }
 0x1cc   :  { %5194 = vmatprep.subr.bf16.mxu0 %v7409_v6  ;;  %5317 = vmatprep.subr.bf16.mxu1 %v7411_v7  ;;  %v7504_v7 = vcombine.low %v173_v52, %v181_v54  ;;  %v7522_v21 = vcombine.low %v190_v3, %v198_v4  ;;  %v270_v52 = vld [vmem:[#allocation5 + $0x628] sm:$0xff] }
 0x1cd   :  { %v278_v54 = vld [vmem:[#allocation5 + $0x668] sm:$0xff] }
 0x1ce   :  { %5063 = vmatmul.mubr.bf16.vlgmr.msra.gmra.mrb[4].mxu0 %v8919_v38  ;;  %5186 = vmatmul.mubr.bf16.vlgmr.msra.gmra.mrb[4].mxu1 %v8919_v38 }
 0x1cf   :  { %5195 = vmatpush1.bf16.msra.mxu0 %v7408_v13  ;;  %5318 = vmatpush1.bf16.msra.mxu1 %v7410_v14  ;;  %v7523_v14 = vcombine.high %v190_v3, %v198_v4  ;;  %v7602_v4 = vcombine.low %v270_v52, %v278_v54 }
 0x1d0   :  { %5196 = vmatprep.subr.bf16.mxu0 %v7425_v16  ;;  %5319 = vmatprep.subr.bf16.mxu1 %v7427_v17  ;;  %v205_v16 = vld [vmem:[#allocation5 + $0x420] sm:$0xff] }
 0x1d1   :  { %5226 = vmatprep.mubr.bf16.mxu0 %v8885_v57  ;;  %5349 = vmatprep.mubr.bf16.mxu1 %v8885_v57  ;;  %v213_v17 = vld [vmem:[#allocation5 + $0x460] sm:$0xff] }
 0x1d2   :  { %v7536_v30 = vcombine.low %v205_v16, %v213_v17 }
 0x1d3   :  { %5197 = vmatpush1.bf16.msra.mxu0 %v7424_v22  ;;  %5320 = vmatpush1.bf16.msra.mxu1 %v7426_v23  ;;  %v7537_v22 = vcombine.high %v205_v16, %v213_v17  ;;  %v7539_v23 = vcombine.high %v206_v18, %v214_v19  ;;  %v317_v18 = vld [vmem:[#allocation5 + $0x7a0] sm:$0xff] }
 0x1d4   :  { %5198 = vmatprep.subr.bf16.mxu0 %v7441_v26  ;;  %5321 = vmatprep.subr.bf16.mxu1 %v7443_v27  ;;  %v221_v26 = vld [vmem:[#allocation5 + $0x4a0] sm:$0xff] }
 0x1d5   :  { %v229_v27 = vld [vmem:[#allocation5 + $0x4e0] sm:$0xff] }
 0x1d6   :  { %v7552_v39 = vcombine.low %v221_v26, %v229_v27  ;;  %v325_v19 = vld [vmem:[#allocation5 + $0x7e0] sm:$0xff] }
 0x1d7   :  { %5199 = vmatpush1.bf16.msra.mxu0 %v7440_v32  ;;  %5322 = vmatpush1.bf16.msra.mxu1 %v7442_v33  ;;  %v7553_v32 = vcombine.high %v221_v26, %v229_v27  ;;  %v7555_v33 = vcombine.high %v222_v28, %v230_v29  ;;  %v7649_v26 = vcombine.high %v317_v18, %v325_v19  ;;  %v333_v28 = vld [vmem:[#allocation5 + $0x820] sm:$0xff] }
 0x1d8   :  { %5200 = vmatprep.subr.bf16.mxu0 %v7457_v15  ;;  %5323 = vmatprep.subr.bf16.mxu1 %v7459_v35  ;;  %v237_v15 = vld [vmem:[#allocation5 + $0x520] sm:$0xff] }
 0x1d9   :  { %v245_v35 = vld [vmem:[#allocation5 + $0x560] sm:$0xff] }
 0x1da   :  { %v7568_v47 = vcombine.low %v237_v15, %v245_v35  ;;  %v341_v29 = vld [vmem:[#allocation5 + $0x860] sm:$0xff] }
 0x1db   :  { %5201 = vmatpush1.bf16.msra.mxu0 %v7456_v41  ;;  %5324 = vmatpush1.bf16.msra.mxu1 %v7458_v42  ;;  %v7569_v41 = vcombine.high %v237_v15, %v245_v35  ;;  %v7571_v42 = vcombine.high %v238_v36, %v246_v37  ;;  %v7665_v15 = vcombine.high %v333_v28, %v341_v29  ;;  %v349_v36 = vld [vmem:[#allocation5 + $0x8a0] sm:$0xff] }
 0x1dc   :  { %5202 = vmatprep.subr.bf16.mxu0 %v7473_v43  ;;  %5325 = vmatprep.subr.bf16.mxu1 %v7475_v44  ;;  %v253_v43 = vld [vmem:[#allocation5 + $0x5a0] sm:$0xff] }
 0x1dd   :  { %v261_v44 = vld [vmem:[#allocation5 + $0x5e0] sm:$0xff] }
 0x1de   :  { %v7584_v55 = vcombine.low %v253_v43, %v261_v44  ;;  %v357_v37 = vld [vmem:[#allocation5 + $0x8e0] sm:$0xff] }
 0x1df   :  { %5203 = vmatpush1.bf16.msra.mxu0 %v7472_v48  ;;  %5326 = vmatpush1.bf16.msra.mxu1 %v7474_v49  ;;  %v7585_v48 = vcombine.high %v253_v43, %v261_v44  ;;  %v7587_v49 = vcombine.high %v254_v45, %v262_v46  ;;  %v7681_v43 = vcombine.high %v349_v36, %v357_v37  ;;  %v365_v45 = vld [vmem:[#allocation5 + $0x920] sm:$0xff] }
 0x1e0   :  { %5204 = vmatprep.subr.bf16.mxu0 %v7489_v50  ;;  %5327 = vmatprep.subr.bf16.mxu1 %v7491_v51  ;;  %v269_v50 = vld [vmem:[#allocation5 + $0x620] sm:$0xff] }
 0x1e1   :  { %v8937_v61 = vpop.f32.mrb[0].mxu0  ;;  %v8939_v1 = vpop.f32.mrb[0].mxu1  ;;  %v277_v51 = vld [vmem:[#allocation5 + $0x660] sm:$0xff] }
 0x1e2   :  { %v8941_v2 = vpop.f32.mrb[1].mxu0  ;;  %v8943_v5 = vpop.f32.mrb[1].mxu1  ;;  %v7600_v3 = vcombine.low %v269_v50, %v277_v51  ;;  %v373_v46 = vld [vmem:[#allocation5 + $0x960] sm:$0xff] }
 0x1e3   :  { %v4822_v6 = vpop.f32.mrb[2].mxu0  ;;  %5205 = vmatpush1.bf16.msra.mxu0 %v7488_v58  ;;  %v4945_v8 = vpop.f32.mrb[2].mxu1  ;;  %5328 = vmatpush1.bf16.msra.mxu1 %v7490_v59  ;;  %v7601_v58 = vcombine.high %v269_v50, %v277_v51  ;;  %v7603_v59 = vcombine.high %v270_v52, %v278_v54  ;;  %v7697_v50 = vcombine.high %v365_v45, %v373_v46  ;;  %v381_v52 = vld [vmem:[#allocation5 + $0x9a0] sm:$0xff] }
 0x1e4   :  { %v4823_v9 = vpop.f32.mrb[3].mxu0  ;;  %5206 = vmatprep.subr.bf16.mxu0 %v7505_v60  ;;  %v4946_v13 = vpop.f32.mrb[3].mxu1  ;;  %5329 = vmatprep.subr.bf16.mxu1 %v7507_v62  ;;  %v285_v60 = vld [vmem:[#allocation5 + $0x6a0] sm:$0xff] }
 0x1e5   :  { %v293_v62 = vld [vmem:[#allocation5 + $0x6e0] sm:$0xff] }
 0x1e6   :  { %v7617_v6 = vcombine.high %v285_v60, %v293_v62  ;;  %v301_v8 = vld [vmem:[#allocation5 + $0x720] sm:$0xff]  ;;  %v7616_v13 = vcombine.low %v285_v60, %v293_v62 }
 0x1e7   :  { %5207 = vmatpush1.bf16.msra.mxu0 %v7504_v7  ;;  %5330 = vmatpush1.bf16.msra.mxu1 %v7506_v10  ;;  %v7619_v7 = vcombine.high %v286_v63, %v294_v0  ;;  %v309_v9 = vld [vmem:[#allocation5 + $0x760] sm:$0xff]  ;;  %v302_v10 = vld [vmem:[#allocation5 + $0x728] sm:$0xff] }
 0x1e8   :  { %5208 = vmatprep.subr.bf16.mxu0 %v7521_v11  ;;  %5331 = vmatprep.subr.bf16.mxu1 %v7523_v14  ;;  %v310_v11 = vld [vmem:[#allocation5 + $0x768] sm:$0xff]  ;;  %v7618_v14 = vcombine.low %v286_v63, %v294_v0  ;;  %v7633_v16 = vcombine.high %v301_v8, %v309_v9  ;;  %v389_v54 = vld [vmem:[#allocation5 + $0x9e0] sm:$0xff] }
 0x1e9   :  { %v7635_v17 = vcombine.high %v302_v10, %v310_v11  ;;  %v7713_v60 = vcombine.high %v381_v52, %v389_v54  ;;  %v397_v63 = vld [vmem:[#allocation5 + $0xa20] sm:$0xff] }
 0x1ea   :  { %v405_v0 = vld [vmem:[#allocation5 + $0xa60] sm:$0xff] }
 0x1eb   :  { %5209 = vmatpush1.bf16.msra.mxu0 %v7520_v20  ;;  %5332 = vmatpush1.bf16.msra.mxu1 %v7522_v21  ;;  %v318_v20 = vld [vmem:[#allocation5 + $0x7a8] sm:$0xff] }
 0x1ec   :  { %5210 = vmatprep.subr.bf16.mxu0 %v7537_v22  ;;  %5333 = vmatprep.subr.bf16.mxu1 %v7539_v23  ;;  %v326_v21 = vld [vmem:[#allocation5 + $0x7e8] sm:$0xff]  ;;  %v7632_v22 = vcombine.low %v301_v8, %v309_v9  ;;  %v7634_v23 = vcombine.low %v302_v10, %v310_v11  ;;  %v7729_v8 = vcombine.high %v397_v63, %v405_v0  ;;  %v413_v10 = vld [vmem:[#allocation5 + $0xaa0] sm:$0xff] }
 0x1ed   :  { %v7651_v27 = vcombine.high %v318_v20, %v326_v21  ;;  %v421_v11 = vld [vmem:[#allocation5 + $0xae0] sm:$0xff] }
 0x1ef   :  { %5211 = vmatpush1.bf16.msra.mxu0 %v7536_v30  ;;  %5334 = vmatpush1.bf16.msra.mxu1 %v7538_v31  ;;  %v334_v30 = vld [vmem:[#allocation5 + $0x828] sm:$0xff] }
 0x1f0   :  { %5212 = vmatprep.subr.bf16.mxu0 %v7553_v32  ;;  %5335 = vmatprep.subr.bf16.mxu1 %v7555_v33  ;;  %v342_v31 = vld [vmem:[#allocation5 + $0x868] sm:$0xff]  ;;  %v7648_v32 = vcombine.low %v317_v18, %v325_v19  ;;  %v7650_v33 = vcombine.low %v318_v20, %v326_v21  ;;  %v7745_v18 = vcombine.high %v413_v10, %v421_v11  ;;  %v429_v20 = vld [vmem:[#allocation5 + $0xb20] sm:$0xff] }
 0x1f1   :  { %v7667_v35 = vcombine.high %v334_v30, %v342_v31  ;;  %v437_v21 = vld [vmem:[#allocation5 + $0xb60] sm:$0xff] }
 0x1f3   :  { %5213 = vmatpush1.bf16.msra.mxu0 %v7552_v39  ;;  %5336 = vmatpush1.bf16.msra.mxu1 %v7554_v40  ;;  %v350_v39 = vld [vmem:[#allocation5 + $0x8a8] sm:$0xff] }
 0x1f4   :  { %5214 = vmatprep.subr.bf16.mxu0 %v7569_v41  ;;  %5337 = vmatprep.subr.bf16.mxu1 %v7571_v42  ;;  %v358_v40 = vld [vmem:[#allocation5 + $0x8e8] sm:$0xff]  ;;  %v7664_v41 = vcombine.low %v333_v28, %v341_v29  ;;  %v7666_v42 = vcombine.low %v334_v30, %v342_v31  ;;  %v7761_v28 = vcombine.high %v429_v20, %v437_v21  ;;  %v445_v30 = vld [vmem:[#allocation5 + $0xba0] sm:$0xff] }
 0x1f5   :  { %v7683_v44 = vcombine.high %v350_v39, %v358_v40  ;;  %v453_v31 = vld [vmem:[#allocation5 + $0xbe0] sm:$0xff] }
 0x1f7   :  { %5215 = vmatpush1.bf16.msra.mxu0 %v7568_v47  ;;  %5338 = vmatpush1.bf16.msra.mxu1 %v7570_v24  ;;  %v366_v47 = vld [vmem:[#allocation5 + $0x928] sm:$0xff] }
 0x1f8   :  { %5216 = vmatprep.subr.bf16.mxu0 %v7585_v48  ;;  %5339 = vmatprep.subr.bf16.mxu1 %v7587_v49  ;;  %v374_v24 = vld [vmem:[#allocation5 + $0x968] sm:$0xff]  ;;  %v7680_v48 = vcombine.low %v349_v36, %v357_v37  ;;  %v7682_v49 = vcombine.low %v350_v39, %v358_v40  ;;  %v7777_v36 = vcombine.high %v445_v30, %v453_v31  ;;  %v461_v39 = vld [vmem:[#allocation5 + $0xc20] sm:$0xff] }
 0x1f9   :  { %v7699_v51 = vcombine.high %v366_v47, %v374_v24  ;;  %v469_v40 = vld [vmem:[#allocation5 + $0xc60] sm:$0xff] }
 0x1fb   :  { %5217 = vmatpush1.bf16.msra.mxu0 %v7584_v55  ;;  %5340 = vmatpush1.bf16.msra.mxu1 %v7586_v56  ;;  %v382_v55 = vld [vmem:[#allocation5 + $0x9a8] sm:$0xff] }
 0x1fc   :  { %5218 = vmatprep.subr.bf16.mxu0 %v7601_v58  ;;  %5341 = vmatprep.subr.bf16.mxu1 %v7603_v59  ;;  %v390_v56 = vld [vmem:[#allocation5 + $0x9e8] sm:$0xff]  ;;  %v7696_v58 = vcombine.low %v365_v45, %v373_v46  ;;  %v7698_v59 = vcombine.low %v366_v47, %v374_v24  ;;  %v7793_v45 = vcombine.high %v461_v39, %v469_v40  ;;  %v477_v47 = vld [vmem:[#allocation5 + $0xca0] sm:$0xff] }
 0x1fd   :  { %v7715_v62 = vcombine.high %v382_v55, %v390_v56  ;;  %v485_v24 = vld [vmem:[#allocation5 + $0xce0] sm:$0xff] }
 0x1ff   :  { %5219 = vmatpush1.bf16.msra.mxu0 %v7600_v3  ;;  %5342 = vmatpush1.bf16.msra.mxu1 %v7602_v4  ;;  %v398_v3 = vld [vmem:[#allocation5 + $0xa28] sm:$0xff] }
 0x200   :  { %5220 = vmatprep.subr.bf16.mxu0 %v7617_v6  ;;  %5343 = vmatprep.subr.bf16.mxu1 %v7619_v7  ;;  %v406_v4 = vld [vmem:[#allocation5 + $0xa68] sm:$0xff]  ;;  %v7712_v6 = vcombine.low %v381_v52, %v389_v54  ;;  %v7714_v7 = vcombine.low %v382_v55, %v390_v56  ;;  %v7809_v52 = vcombine.high %v477_v47, %v485_v24  ;;  %v493_v55 = vld [vmem:[#allocation5 + $0xd20] sm:$0xff] }
 0x201   :  { %v7731_v9 = vcombine.high %v398_v3, %v406_v4  ;;  %v501_v56 = vld [vmem:[#allocation5 + $0xd60] sm:$0xff] }
 0x203   :  { %5221 = vmatpush1.bf16.msra.mxu0 %v7616_v13  ;;  %5344 = vmatpush1.bf16.msra.mxu1 %v7618_v14  ;;  %v414_v13 = vld [vmem:[#allocation5 + $0xaa8] sm:$0xff] }
 0x204   :  { %5222 = vmatprep.subr.bf16.mxu0 %v7633_v16  ;;  %5345 = vmatprep.subr.bf16.mxu1 %v7635_v17  ;;  %v422_v14 = vld [vmem:[#allocation5 + $0xae8] sm:$0xff]  ;;  %v7728_v16 = vcombine.low %v397_v63, %v405_v0  ;;  %v7730_v17 = vcombine.low %v398_v3, %v406_v4  ;;  %v7825_v63 = vcombine.high %v493_v55, %v501_v56  ;;  %v509_v3 = vld [vmem:[#allocation5 + $0xda0] sm:$0xff] }
 0x205   :  { %v7747_v19 = vcombine.high %v414_v13, %v422_v14  ;;  %v517_v4 = vld [vmem:[#allocation5 + $0xde0] sm:$0xff] }
 0x207   :  { %5223 = vmatpush1.bf16.msra.mxu0 %v7632_v22  ;;  %5346 = vmatpush1.bf16.msra.mxu1 %v7634_v23  ;;  %v430_v22 = vld [vmem:[#allocation5 + $0xb28] sm:$0xff] }
 0x208   :  { %5224 = vmatprep.subr.bf16.mxu0 %v7649_v26  ;;  %5347 = vmatprep.subr.bf16.mxu1 %v7651_v27  ;;  %v438_v23 = vld [vmem:[#allocation5 + $0xb68] sm:$0xff]  ;;  %v7744_v26 = vcombine.low %v413_v10, %v421_v11  ;;  %v7746_v27 = vcombine.low %v414_v13, %v422_v14  ;;  %v7841_v10 = vcombine.high %v509_v3, %v517_v4  ;;  %v525_v13 = vld [vmem:[#allocation5 + $0xe20] sm:$0xff] }
 0x209   :  { %v7763_v29 = vcombine.high %v430_v22, %v438_v23  ;;  %v533_v14 = vld [vmem:[#allocation5 + $0xe60] sm:$0xff] }
 0x20b   :  { %5225 = vmatpush1.bf16.msra.mxu0 %v7648_v32  ;;  %5348 = vmatpush1.bf16.msra.mxu1 %v7650_v33  ;;  %v446_v32 = vld [vmem:[#allocation5 + $0xba8] sm:$0xff] }
 0x20c   :  { %5235 = vmatprep.subr.bf16.mxu0 %v7665_v15  ;;  %5358 = vmatprep.subr.bf16.mxu1 %v7667_v35  ;;  %v454_v33 = vld [vmem:[#allocation5 + $0xbe8] sm:$0xff]  ;;  %v7760_v15 = vcombine.low %v429_v20, %v437_v21  ;;  %v7762_v35 = vcombine.low %v430_v22, %v438_v23  ;;  %v7857_v20 = vcombine.high %v525_v13, %v533_v14  ;;  %v541_v22 = vld [vmem:[#allocation5 + $0xea0] sm:$0xff] }
 0x20d   :  { %v7779_v37 = vcombine.high %v446_v32, %v454_v33  ;;  %v549_v23 = vld [vmem:[#allocation5 + $0xee0] sm:$0xff] }
 0x20e   :  { %5227 = vmatmul.mubr.bf16.vlgmr.msra.gmra.mrb[8].mxu0 %v8891_v12  ;;  %5350 = vmatmul.mubr.bf16.vlgmr.msra.gmra.mrb[8].mxu1 %v8891_v12 }
 0x20f   :  { %5236 = vmatpush1.bf16.msra.mxu0 %v7664_v41  ;;  %5359 = vmatpush1.bf16.msra.mxu1 %v7666_v42  ;;  %v462_v41 = vld [vmem:[#allocation5 + $0xc28] sm:$0xff] }
 0x210   :  { %5237 = vmatprep.subr.bf16.mxu0 %v7681_v43  ;;  %5360 = vmatprep.subr.bf16.mxu1 %v7683_v44  ;;  %v470_v42 = vld [vmem:[#allocation5 + $0xc68] sm:$0xff]  ;;  %v7776_v43 = vcombine.low %v445_v30, %v453_v31  ;;  %v7778_v44 = vcombine.low %v446_v32, %v454_v33  ;;  %v7873_v30 = vcombine.high %v541_v22, %v549_v23  ;;  %v557_v32 = vld [vmem:[#allocation5 + $0xf20] sm:$0xff] }
 0x211   :  { %5267 = vmatprep.mubr.bf16.mxu0 %v8897_v53  ;;  %5390 = vmatprep.mubr.bf16.mxu1 %v8897_v53  ;;  %v7795_v46 = vcombine.high %v462_v41, %v470_v42  ;;  %v565_v33 = vld [vmem:[#allocation5 + $0xf60] sm:$0xff] }
 0x213   :  { %5238 = vmatpush1.bf16.msra.mxu0 %v7680_v48  ;;  %5361 = vmatpush1.bf16.msra.mxu1 %v7682_v49  ;;  %v478_v48 = vld [vmem:[#allocation5 + $0xca8] sm:$0xff] }
 0x214   :  { %5239 = vmatprep.subr.bf16.mxu0 %v7697_v50  ;;  %5362 = vmatprep.subr.bf16.mxu1 %v7699_v51  ;;  %v486_v49 = vld [vmem:[#allocation5 + $0xce8] sm:$0xff]  ;;  %v7792_v50 = vcombine.low %v461_v39, %v469_v40  ;;  %v7794_v51 = vcombine.low %v462_v41, %v470_v42  ;;  %v7889_v39 = vcombine.high %v557_v32, %v565_v33  ;;  %v573_v41 = vld [vmem:[#allocation5 + $0xfa0] sm:$0xff] }
 0x215   :  { %v7811_v54 = vcombine.high %v478_v48, %v486_v49  ;;  %v581_v42 = vld [vmem:[#allocation5 + $0xfe0] sm:$0xff] }
 0x217   :  { %5240 = vmatpush1.bf16.msra.mxu0 %v7696_v58  ;;  %5363 = vmatpush1.bf16.msra.mxu1 %v7698_v59  ;;  %v494_v58 = vld [vmem:[#allocation5 + $0xd28] sm:$0xff] }
 0x218   :  { %5241 = vmatprep.subr.bf16.mxu0 %v7713_v60  ;;  %5364 = vmatprep.subr.bf16.mxu1 %v7715_v62  ;;  %v502_v59 = vld [vmem:[#allocation5 + $0xd68] sm:$0xff]  ;;  %v7808_v60 = vcombine.low %v477_v47, %v485_v24  ;;  %v7810_v62 = vcombine.low %v478_v48, %v486_v49  ;;  %v7905_v47 = vcombine.high %v573_v41, %v581_v42  ;;  %v589_v48 = vld [vmem:[#allocation5 + $0x1020] sm:$0xff] }
 0x219   :  { %v7827_v0 = vcombine.high %v494_v58, %v502_v59  ;;  %v597_v49 = vld [vmem:[#allocation5 + $0x1060] sm:$0xff] }
 0x21b   :  { %5242 = vmatpush1.bf16.msra.mxu0 %v7712_v6  ;;  %5365 = vmatpush1.bf16.msra.mxu1 %v7714_v7  ;;  %v510_v6 = vld [vmem:[#allocation5 + $0xda8] sm:$0xff] }
 0x21c   :  { %5243 = vmatprep.subr.bf16.mxu0 %v7729_v8  ;;  %5366 = vmatprep.subr.bf16.mxu1 %v7731_v9  ;;  %v518_v7 = vld [vmem:[#allocation5 + $0xde8] sm:$0xff]  ;;  %v7824_v8 = vcombine.low %v493_v55, %v501_v56  ;;  %v7826_v9 = vcombine.low %v494_v58, %v502_v59  ;;  %v7921_v55 = vcombine.high %v589_v48, %v597_v49  ;;  %v605_v58 = vld [vmem:[#allocation5 + $0x10a0] sm:$0xff] }
 0x21d   :  { %v7843_v11 = vcombine.high %v510_v6, %v518_v7  ;;  %v613_v59 = vld [vmem:[#allocation5 + $0x10e0] sm:$0xff] }
 0x21f   :  { %5244 = vmatpush1.bf16.msra.mxu0 %v7728_v16  ;;  %5367 = vmatpush1.bf16.msra.mxu1 %v7730_v17  ;;  %v526_v16 = vld [vmem:[#allocation5 + $0xe28] sm:$0xff] }
 0x220   :  { %5245 = vmatprep.subr.bf16.mxu0 %v7745_v18  ;;  %5368 = vmatprep.subr.bf16.mxu1 %v7747_v19  ;;  %v534_v17 = vld [vmem:[#allocation5 + $0xe68] sm:$0xff]  ;;  %v7840_v18 = vcombine.low %v509_v3, %v517_v4  ;;  %v7842_v19 = vcombine.low %v510_v6, %v518_v7  ;;  %v7937_v3 = vcombine.high %v605_v58, %v613_v59  ;;  %v621_v6 = vld [vmem:[#allocation5 + $0x1120] sm:$0xff] }
 0x221   :  { %v7859_v21 = vcombine.high %v526_v16, %v534_v17  ;;  %v629_v7 = vld [vmem:[#allocation5 + $0x1160] sm:$0xff] }
 0x223   :  { %5246 = vmatpush1.bf16.msra.mxu0 %v7744_v26  ;;  %5369 = vmatpush1.bf16.msra.mxu1 %v7746_v27  ;;  %v542_v26 = vld [vmem:[#allocation5 + $0xea8] sm:$0xff] }
 0x224   :  { %5247 = vmatprep.subr.bf16.mxu0 %v7761_v28  ;;  %5370 = vmatprep.subr.bf16.mxu1 %v7763_v29  ;;  %v550_v27 = vld [vmem:[#allocation5 + $0xee8] sm:$0xff]  ;;  %v7856_v28 = vcombine.low %v525_v13, %v533_v14  ;;  %v7858_v29 = vcombine.low %v526_v16, %v534_v17  ;;  %v7953_v13 = vcombine.high %v621_v6, %v629_v7  ;;  %v637_v16 = vld [vmem:[#allocation5 + $0x11a0] sm:$0xff] }
 0x225   :  { %v7875_v31 = vcombine.high %v542_v26, %v550_v27  ;;  %v645_v17 = vld [vmem:[#allocation5 + $0x11e0] sm:$0xff] }
 0x227   :  { %5248 = vmatpush1.bf16.msra.mxu0 %v7760_v15  ;;  %5371 = vmatpush1.bf16.msra.mxu1 %v7762_v35  ;;  %v558_v15 = vld [vmem:[#allocation5 + $0xf28] sm:$0xff] }
 0x228   :  { %5249 = vmatprep.subr.bf16.mxu0 %v7777_v36  ;;  %5372 = vmatprep.subr.bf16.mxu1 %v7779_v37  ;;  %v566_v35 = vld [vmem:[#allocation5 + $0xf68] sm:$0xff]  ;;  %v7872_v36 = vcombine.low %v541_v22, %v549_v23  ;;  %v7874_v37 = vcombine.low %v542_v26, %v550_v27  ;;  %v7969_v22 = vcombine.high %v637_v16, %v645_v17  ;;  %v653_v26 = vld [vmem:[#allocation5 + $0x1220] sm:$0xff] }
 0x229   :  { %v7891_v40 = vcombine.high %v558_v15, %v566_v35  ;;  %v661_v27 = vld [vmem:[#allocation5 + $0x1260] sm:$0xff] }
 0x22b   :  { %5250 = vmatpush1.bf16.msra.mxu0 %v7776_v43  ;;  %5373 = vmatpush1.bf16.msra.mxu1 %v7778_v44  ;;  %v574_v43 = vld [vmem:[#allocation5 + $0xfa8] sm:$0xff] }
 0x22c   :  { %5251 = vmatprep.subr.bf16.mxu0 %v7793_v45  ;;  %5374 = vmatprep.subr.bf16.mxu1 %v7795_v46  ;;  %v582_v44 = vld [vmem:[#allocation5 + $0xfe8] sm:$0xff]  ;;  %v7888_v45 = vcombine.low %v557_v32, %v565_v33  ;;  %v7890_v46 = vcombine.low %v558_v15, %v566_v35  ;;  %v7985_v32 = vcombine.high %v653_v26, %v661_v27  ;;  %v669_v15 = vld [vmem:[#allocation5 + $0x12a0] sm:$0xff] }
 0x22d   :  { %v7907_v24 = vcombine.high %v574_v43, %v582_v44  ;;  %v677_v35 = vld [vmem:[#allocation5 + $0x12e0] sm:$0xff] }
 0x22f   :  { %5252 = vmatpush1.bf16.msra.mxu0 %v7792_v50  ;;  %5375 = vmatpush1.bf16.msra.mxu1 %v7794_v51  ;;  %v590_v50 = vld [vmem:[#allocation5 + $0x1028] sm:$0xff] }
 0x230   :  { %5253 = vmatprep.subr.bf16.mxu0 %v7809_v52  ;;  %5376 = vmatprep.subr.bf16.mxu1 %v7811_v54  ;;  %v598_v51 = vld [vmem:[#allocation5 + $0x1068] sm:$0xff]  ;;  %v7904_v52 = vcombine.low %v573_v41, %v581_v42  ;;  %v7906_v54 = vcombine.low %v574_v43, %v582_v44  ;;  %v8001_v41 = vcombine.high %v669_v15, %v677_v35  ;;  %v685_v43 = vld [vmem:[#allocation5 + $0x1320] sm:$0xff] }
 0x231   :  { %v7923_v56 = vcombine.high %v590_v50, %v598_v51  ;;  %v693_v44 = vld [vmem:[#allocation5 + $0x1360] sm:$0xff] }
 0x233   :  { %5254 = vmatpush1.bf16.msra.mxu0 %v7808_v60  ;;  %5377 = vmatpush1.bf16.msra.mxu1 %v7810_v62  ;;  %v606_v60 = vld [vmem:[#allocation5 + $0x10a8] sm:$0xff] }
 0x234   :  { %5255 = vmatprep.subr.bf16.mxu0 %v7825_v63  ;;  %5378 = vmatprep.subr.bf16.mxu1 %v7827_v0  ;;  %v614_v62 = vld [vmem:[#allocation5 + $0x10e8] sm:$0xff]  ;;  %v7920_v63 = vcombine.low %v589_v48, %v597_v49  ;;  %v7922_v0 = vcombine.low %v590_v50, %v598_v51  ;;  %v8017_v48 = vcombine.high %v685_v43, %v693_v44  ;;  %v701_v50 = vld [vmem:[#allocation5 + $0x13a0] sm:$0xff] }
 0x235   :  { %v7939_v4 = vcombine.high %v606_v60, %v614_v62  ;;  %v709_v51 = vld [vmem:[#allocation5 + $0x13e0] sm:$0xff] }
 0x237   :  { %5256 = vmatpush1.bf16.msra.mxu0 %v7824_v8  ;;  %5379 = vmatpush1.bf16.msra.mxu1 %v7826_v9  ;;  %v622_v8 = vld [vmem:[#allocation5 + $0x1128] sm:$0xff] }
 0x238   :  { %5257 = vmatprep.subr.bf16.mxu0 %v7841_v10  ;;  %5380 = vmatprep.subr.bf16.mxu1 %v7843_v11  ;;  %v630_v9 = vld [vmem:[#allocation5 + $0x1168] sm:$0xff]  ;;  %v7936_v10 = vcombine.low %v605_v58, %v613_v59  ;;  %v7938_v11 = vcombine.low %v606_v60, %v614_v62  ;;  %v8033_v58 = vcombine.high %v701_v50, %v709_v51  ;;  %v717_v60 = vld [vmem:[#allocation5 + $0x1420] sm:$0xff] }
 0x239   :  { %v7955_v14 = vcombine.high %v622_v8, %v630_v9  ;;  %v725_v62 = vld [vmem:[#allocation5 + $0x1460] sm:$0xff] }
 0x23b   :  { %5258 = vmatpush1.bf16.msra.mxu0 %v7840_v18  ;;  %5381 = vmatpush1.bf16.msra.mxu1 %v7842_v19  ;;  %v638_v18 = vld [vmem:[#allocation5 + $0x11a8] sm:$0xff] }
 0x23c   :  { %5259 = vmatprep.subr.bf16.mxu0 %v7857_v20  ;;  %5382 = vmatprep.subr.bf16.mxu1 %v7859_v21  ;;  %v646_v19 = vld [vmem:[#allocation5 + $0x11e8] sm:$0xff]  ;;  %v7952_v20 = vcombine.low %v621_v6, %v629_v7  ;;  %v7954_v21 = vcombine.low %v622_v8, %v630_v9  ;;  %v8049_v6 = vcombine.high %v717_v60, %v725_v62  ;;  %v733_v8 = vld [vmem:[#allocation5 + $0x14a0] sm:$0xff] }
 0x23d   :  { %v7971_v23 = vcombine.high %v638_v18, %v646_v19  ;;  %v741_v9 = vld [vmem:[#allocation5 + $0x14e0] sm:$0xff] }
 0x23f   :  { %5260 = vmatpush1.bf16.msra.mxu0 %v7856_v28  ;;  %5383 = vmatpush1.bf16.msra.mxu1 %v7858_v29  ;;  %v654_v28 = vld [vmem:[#allocation5 + $0x1228] sm:$0xff] }
 0x240   :  { %5261 = vmatprep.subr.bf16.mxu0 %v7873_v30  ;;  %5384 = vmatprep.subr.bf16.mxu1 %v7875_v31  ;;  %v662_v29 = vld [vmem:[#allocation5 + $0x1268] sm:$0xff]  ;;  %v7968_v30 = vcombine.low %v637_v16, %v645_v17  ;;  %v7970_v31 = vcombine.low %v638_v18, %v646_v19  ;;  %v8065_v16 = vcombine.high %v733_v8, %v741_v9  ;;  %v749_v18 = vld [vmem:[#allocation5 + $0x1520] sm:$0xff] }
 0x241   :  { %v7987_v33 = vcombine.high %v654_v28, %v662_v29  ;;  %v757_v19 = vld [vmem:[#allocation5 + $0x1560] sm:$0xff] }
 0x243   :  { %5262 = vmatpush1.bf16.msra.mxu0 %v7872_v36  ;;  %5385 = vmatpush1.bf16.msra.mxu1 %v7874_v37  ;;  %v670_v36 = vld [vmem:[#allocation5 + $0x12a8] sm:$0xff] }
 0x244   :  { %5263 = vmatprep.subr.bf16.mxu0 %v7889_v39  ;;  %5386 = vmatprep.subr.bf16.mxu1 %v7891_v40  ;;  %v678_v37 = vld [vmem:[#allocation5 + $0x12e8] sm:$0xff]  ;;  %v7984_v39 = vcombine.low %v653_v26, %v661_v27  ;;  %v7986_v40 = vcombine.low %v654_v28, %v662_v29  ;;  %v8081_v26 = vcombine.high %v749_v18, %v757_v19  ;;  %v765_v28 = vld [vmem:[#allocation5 + $0x15a0] sm:$0xff] }
 0x245   :  { %v8003_v42 = vcombine.high %v670_v36, %v678_v37  ;;  %v773_v29 = vld [vmem:[#allocation5 + $0x15e0] sm:$0xff] }
 0x247   :  { %5264 = vmatpush1.bf16.msra.mxu0 %v7888_v45  ;;  %5387 = vmatpush1.bf16.msra.mxu1 %v7890_v46  ;;  %v686_v45 = vld [vmem:[#allocation5 + $0x1328] sm:$0xff] }
 0x248   :  { %5265 = vmatprep.subr.bf16.mxu0 %v7905_v47  ;;  %5388 = vmatprep.subr.bf16.mxu1 %v7907_v24  ;;  %v694_v46 = vld [vmem:[#allocation5 + $0x1368] sm:$0xff]  ;;  %v8000_v47 = vcombine.low %v669_v15, %v677_v35  ;;  %v8002_v24 = vcombine.low %v670_v36, %v678_v37  ;;  %v8097_v15 = vcombine.high %v765_v28, %v773_v29  ;;  %v781_v36 = vld [vmem:[#allocation5 + $0x1620] sm:$0xff] }
 0x249   :  { %v8019_v49 = vcombine.high %v686_v45, %v694_v46  ;;  %v789_v37 = vld [vmem:[#allocation5 + $0x1660] sm:$0xff] }
 0x24b   :  { %5266 = vmatpush1.bf16.msra.mxu0 %v7904_v52  ;;  %5389 = vmatpush1.bf16.msra.mxu1 %v7906_v54  ;;  %v702_v52 = vld [vmem:[#allocation5 + $0x13a8] sm:$0xff] }
 0x24c   :  { %5276 = vmatprep.subr.bf16.mxu0 %v7921_v55  ;;  %5399 = vmatprep.subr.bf16.mxu1 %v7923_v56  ;;  %v710_v54 = vld [vmem:[#allocation5 + $0x13e8] sm:$0xff]  ;;  %v8016_v55 = vcombine.low %v685_v43, %v693_v44  ;;  %v8018_v56 = vcombine.low %v686_v45, %v694_v46  ;;  %v8113_v43 = vcombine.high %v781_v36, %v789_v37  ;;  %v797_v45 = vld [vmem:[#allocation5 + $0x16a0] sm:$0xff] }
 0x24d   :  { %v8035_v59 = vcombine.high %v702_v52, %v710_v54  ;;  %v805_v46 = vld [vmem:[#allocation5 + $0x16e0] sm:$0xff] }
 0x24e   :  { %5268 = vmatmul.mubr.bf16.vlgmr.msra.gmra.mrb[8].mxu0 %v8907_v25  ;;  %5391 = vmatmul.mubr.bf16.vlgmr.msra.gmra.mrb[8].mxu1 %v8907_v25 }
 0x24f   :  { %5277 = vmatpush1.bf16.msra.mxu0 %v7920_v63  ;;  %5400 = vmatpush1.bf16.msra.mxu1 %v7922_v0  ;;  %v718_v63 = vld [vmem:[#allocation5 + $0x1428] sm:$0xff] }
 0x250   :  { %5278 = vmatprep.subr.bf16.mxu0 %v7937_v3  ;;  %5401 = vmatprep.subr.bf16.mxu1 %v7939_v4  ;;  %v726_v0 = vld [vmem:[#allocation5 + $0x1468] sm:$0xff]  ;;  %v8032_v3 = vcombine.low %v701_v50, %v709_v51  ;;  %v8034_v4 = vcombine.low %v702_v52, %v710_v54  ;;  %v8129_v50 = vcombine.high %v797_v45, %v805_v46  ;;  %v813_v52 = vld [vmem:[#allocation5 + $0x1720] sm:$0xff] }
 0x251   :  { %5308 = vmatprep.mubr.bf16.mxu0 %v8911_v34  ;;  %5431 = vmatprep.mubr.bf16.mxu1 %v8911_v34  ;;  %v8051_v7 = vcombine.high %v718_v63, %v726_v0  ;;  %v821_v54 = vld [vmem:[#allocation5 + $0x1760] sm:$0xff] }
 0x253   :  { %5279 = vmatpush1.bf16.msra.mxu0 %v7936_v10  ;;  %5402 = vmatpush1.bf16.msra.mxu1 %v7938_v11  ;;  %v734_v10 = vld [vmem:[#allocation5 + $0x14a8] sm:$0xff] }
 0x254   :  { %5280 = vmatprep.subr.bf16.mxu0 %v7953_v13  ;;  %5403 = vmatprep.subr.bf16.mxu1 %v7955_v14  ;;  %v742_v11 = vld [vmem:[#allocation5 + $0x14e8] sm:$0xff]  ;;  %v8048_v13 = vcombine.low %v717_v60, %v725_v62  ;;  %v8050_v14 = vcombine.low %v718_v63, %v726_v0  ;;  %v8145_v60 = vcombine.high %v813_v52, %v821_v54  ;;  %v829_v63 = vld [vmem:[#allocation5 + $0x17a0] sm:$0xff] }
 0x255   :  { %v8067_v17 = vcombine.high %v734_v10, %v742_v11  ;;  %v837_v0 = vld [vmem:[#allocation5 + $0x17e0] sm:$0xff] }
 0x257   :  { %5281 = vmatpush1.bf16.msra.mxu0 %v7952_v20  ;;  %5404 = vmatpush1.bf16.msra.mxu1 %v7954_v21  ;;  %v750_v20 = vld [vmem:[#allocation5 + $0x1528] sm:$0xff] }
 0x258   :  { %5282 = vmatprep.subr.bf16.mxu0 %v7969_v22  ;;  %5405 = vmatprep.subr.bf16.mxu1 %v7971_v23  ;;  %v758_v21 = vld [vmem:[#allocation5 + $0x1568] sm:$0xff]  ;;  %v8064_v22 = vcombine.low %v733_v8, %v741_v9  ;;  %v8066_v23 = vcombine.low %v734_v10, %v742_v11  ;;  %v8161_v8 = vcombine.high %v829_v63, %v837_v0  ;;  %v79_v10 = vld [vmem:[#allocation5 + $0x30] sm:$0xff] }
 0x259   :  { %v8083_v27 = vcombine.high %v750_v20, %v758_v21  ;;  %v87_v11 = vld [vmem:[#allocation5 + $0x70] sm:$0xff] }
 0x25b   :  { %5283 = vmatpush1.bf16.msra.mxu0 %v7968_v30  ;;  %5406 = vmatpush1.bf16.msra.mxu1 %v7970_v31  ;;  %v766_v30 = vld [vmem:[#allocation5 + $0x15a8] sm:$0xff] }
 0x25c   :  { %5284 = vmatprep.subr.bf16.mxu0 %v7985_v32  ;;  %5407 = vmatprep.subr.bf16.mxu1 %v7987_v33  ;;  %v774_v31 = vld [vmem:[#allocation5 + $0x15e8] sm:$0xff]  ;;  %v8080_v32 = vcombine.low %v749_v18, %v757_v19  ;;  %v8082_v33 = vcombine.low %v750_v20, %v758_v21  ;;  %v7413_v18 = vcombine.high %v79_v10, %v87_v11  ;;  %v95_v20 = vld [vmem:[#allocation5 + $0xb0] sm:$0xff] }
 0x25d   :  { %v8099_v35 = vcombine.high %v766_v30, %v774_v31  ;;  %v103_v21 = vld [vmem:[#allocation5 + $0xf0] sm:$0xff] }
 0x25f   :  { %5285 = vmatpush1.bf16.msra.mxu0 %v7984_v39  ;;  %5408 = vmatpush1.bf16.msra.mxu1 %v7986_v40  ;;  %v782_v39 = vld [vmem:[#allocation5 + $0x1628] sm:$0xff] }
 0x260   :  { %5286 = vmatprep.subr.bf16.mxu0 %v8001_v41  ;;  %5409 = vmatprep.subr.bf16.mxu1 %v8003_v42  ;;  %v790_v40 = vld [vmem:[#allocation5 + $0x1668] sm:$0xff]  ;;  %v8096_v41 = vcombine.low %v765_v28, %v773_v29  ;;  %v8098_v42 = vcombine.low %v766_v30, %v774_v31  ;;  %v7429_v28 = vcombine.high %v95_v20, %v103_v21  ;;  %v111_v30 = vld [vmem:[#allocation5 + $0x130] sm:$0xff] }
 0x261   :  { %v8115_v44 = vcombine.high %v782_v39, %v790_v40  ;;  %v119_v31 = vld [vmem:[#allocation5 + $0x170] sm:$0xff] }
 0x263   :  { %5287 = vmatpush1.bf16.msra.mxu0 %v8000_v47  ;;  %5410 = vmatpush1.bf16.msra.mxu1 %v8002_v24  ;;  %v798_v47 = vld [vmem:[#allocation5 + $0x16a8] sm:$0xff] }
 0x264   :  { %5288 = vmatprep.subr.bf16.mxu0 %v8017_v48  ;;  %5411 = vmatprep.subr.bf16.mxu1 %v8019_v49  ;;  %v806_v24 = vld [vmem:[#allocation5 + $0x16e8] sm:$0xff]  ;;  %v8112_v48 = vcombine.low %v781_v36, %v789_v37  ;;  %v8114_v49 = vcombine.low %v782_v39, %v790_v40  ;;  %v7445_v36 = vcombine.high %v111_v30, %v119_v31  ;;  %v127_v39 = vld [vmem:[#allocation5 + $0x1b0] sm:$0xff] }
 0x265   :  { %v8131_v51 = vcombine.high %v798_v47, %v806_v24  ;;  %v135_v40 = vld [vmem:[#allocation5 + $0x1f0] sm:$0xff] }
 0x267   :  { %5289 = vmatpush1.bf16.msra.mxu0 %v8016_v55  ;;  %5412 = vmatpush1.bf16.msra.mxu1 %v8018_v56  ;;  %v814_v55 = vld [vmem:[#allocation5 + $0x1728] sm:$0xff] }
 0x268   :  { %5290 = vmatprep.subr.bf16.mxu0 %v8033_v58  ;;  %5413 = vmatprep.subr.bf16.mxu1 %v8035_v59  ;;  %v822_v56 = vld [vmem:[#allocation5 + $0x1768] sm:$0xff]  ;;  %v8128_v58 = vcombine.low %v797_v45, %v805_v46  ;;  %v8130_v59 = vcombine.low %v798_v47, %v806_v24  ;;  %v7461_v45 = vcombine.high %v127_v39, %v135_v40  ;;  %v143_v47 = vld [vmem:[#allocation5 + $0x230] sm:$0xff] }
 0x269   :  { %v8147_v62 = vcombine.high %v814_v55, %v822_v56  ;;  %v151_v24 = vld [vmem:[#allocation5 + $0x270] sm:$0xff] }
 0x26b   :  { %5291 = vmatpush1.bf16.msra.mxu0 %v8032_v3  ;;  %5414 = vmatpush1.bf16.msra.mxu1 %v8034_v4  ;;  %v830_v3 = vld [vmem:[#allocation5 + $0x17a8] sm:$0xff] }
 0x26c   :  { %5292 = vmatprep.subr.bf16.mxu0 %v8049_v6  ;;  %5415 = vmatprep.subr.bf16.mxu1 %v8051_v7  ;;  %v838_v4 = vld [vmem:[#allocation5 + $0x17e8] sm:$0xff]  ;;  %v8144_v6 = vcombine.low %v813_v52, %v821_v54  ;;  %v8146_v7 = vcombine.low %v814_v55, %v822_v56  ;;  %v7477_v52 = vcombine.high %v143_v47, %v151_v24  ;;  %v159_v54 = vld [vmem:[#allocation5 + $0x2b0] sm:$0xff]  ;;  %v160_v56 = vld [vmem:[#allocation5 + $0x2b8] sm:$0xff] }
 0x26d   :  { %v8163_v9 = vcombine.high %v830_v3, %v838_v4  ;;  %v167_v55 = vld [vmem:[#allocation5 + $0x2f0] sm:$0xff] }
 0x26f   :  { %5293 = vmatpush1.bf16.msra.mxu0 %v8048_v13  ;;  %5416 = vmatpush1.bf16.msra.mxu1 %v8050_v14  ;;  %v80_v13 = vld [vmem:[#allocation5 + $0x38] sm:$0xff] }
 0x270   :  { %5294 = vmatprep.subr.bf16.mxu0 %v8065_v16  ;;  %5417 = vmatprep.subr.bf16.mxu1 %v8067_v17  ;;  %v88_v14 = vld [vmem:[#allocation5 + $0x78] sm:$0xff]  ;;  %v8160_v16 = vcombine.low %v829_v63, %v837_v0  ;;  %v8162_v17 = vcombine.low %v830_v3, %v838_v4  ;;  %v175_v0 = vld [vmem:[#allocation5 + $0x330] sm:$0xff] }
 0x271   :  { %v7415_v19 = vcombine.high %v80_v13, %v88_v14  ;;  %v183_v3 = vld [vmem:[#allocation5 + $0x370] sm:$0xff]  ;;  %v176_v4 = vld [vmem:[#allocation5 + $0x338] sm:$0xff] }
 0x273   :  { %5295 = vmatpush1.bf16.msra.mxu0 %v8064_v22  ;;  %5418 = vmatpush1.bf16.msra.mxu1 %v8066_v23  ;;  %v96_v22 = vld [vmem:[#allocation5 + $0xb8] sm:$0xff] }
 0x274   :  { %5296 = vmatprep.subr.bf16.mxu0 %v8081_v26  ;;  %5419 = vmatprep.subr.bf16.mxu1 %v8083_v27  ;;  %v104_v23 = vld [vmem:[#allocation5 + $0xf8] sm:$0xff]  ;;  %v7412_v26 = vcombine.low %v79_v10, %v87_v11  ;;  %v7414_v27 = vcombine.low %v80_v13, %v88_v14  ;;  %v191_v13 = vld [vmem:[#allocation5 + $0x3b0] sm:$0xff] }
 0x275   :  { %v7431_v29 = vcombine.high %v96_v22, %v104_v23  ;;  %v199_v14 = vld [vmem:[#allocation5 + $0x3f0] sm:$0xff] }
 0x277   :  { %5297 = vmatpush1.bf16.msra.mxu0 %v8080_v32  ;;  %5420 = vmatpush1.bf16.msra.mxu1 %v8082_v33  ;;  %v112_v32 = vld [vmem:[#allocation5 + $0x138] sm:$0xff] }
 0x278   :  { %5298 = vmatprep.subr.bf16.mxu0 %v8097_v15  ;;  %5421 = vmatprep.subr.bf16.mxu1 %v8099_v35  ;;  %v120_v33 = vld [vmem:[#allocation5 + $0x178] sm:$0xff]  ;;  %v7428_v15 = vcombine.low %v95_v20, %v103_v21  ;;  %v7430_v35 = vcombine.low %v96_v22, %v104_v23  ;;  %v7508_v22 = vcombine.low %v175_v0, %v183_v3 }
 0x279   :  { %v7447_v37 = vcombine.high %v112_v32, %v120_v33 }
 0x27b   :  { %5299 = vmatpush1.bf16.msra.mxu0 %v8096_v41  ;;  %5422 = vmatpush1.bf16.msra.mxu1 %v8098_v42  ;;  %v128_v41 = vld [vmem:[#allocation5 + $0x1b8] sm:$0xff] }
 0x27c   :  { %5300 = vmatprep.subr.bf16.mxu0 %v8113_v43  ;;  %5423 = vmatprep.subr.bf16.mxu1 %v8115_v44  ;;  %v136_v42 = vld [vmem:[#allocation5 + $0x1f8] sm:$0xff]  ;;  %v7444_v43 = vcombine.low %v111_v30, %v119_v31  ;;  %v7446_v44 = vcombine.low %v112_v32, %v120_v33  ;;  %v207_v31 = vld [vmem:[#allocation5 + $0x430] sm:$0xff] }
 0x27d   :  { %v7463_v46 = vcombine.high %v128_v41, %v136_v42  ;;  %v215_v32 = vld [vmem:[#allocation5 + $0x470] sm:$0xff]  ;;  %v208_v33 = vld [vmem:[#allocation5 + $0x438] sm:$0xff] }
 0x27f   :  { %5301 = vmatpush1.bf16.msra.mxu0 %v8112_v48  ;;  %5424 = vmatpush1.bf16.msra.mxu1 %v8114_v49  ;;  %v144_v48 = vld [vmem:[#allocation5 + $0x238] sm:$0xff] }
 0x280   :  { %5302 = vmatprep.subr.bf16.mxu0 %v8129_v50  ;;  %5425 = vmatprep.subr.bf16.mxu1 %v8131_v51  ;;  %v152_v49 = vld [vmem:[#allocation5 + $0x278] sm:$0xff]  ;;  %v7460_v50 = vcombine.low %v127_v39, %v135_v40  ;;  %v7462_v51 = vcombine.low %v128_v41, %v136_v42  ;;  %v223_v40 = vld [vmem:[#allocation5 + $0x4b0] sm:$0xff] }
 0x281   :  { %v231_v41 = vld [vmem:[#allocation5 + $0x4f0] sm:$0xff]  ;;  %v224_v42 = vld [vmem:[#allocation5 + $0x4b8] sm:$0xff] }
 0x283   :  { %5303 = vmatpush1.bf16.msra.mxu0 %v8128_v58  ;;  %5426 = vmatpush1.bf16.msra.mxu1 %v8130_v59  ;;  %v168_v58 = vld [vmem:[#allocation5 + $0x2f8] sm:$0xff]  ;;  %v7476_v59 = vcombine.low %v143_v47, %v151_v24  ;;  %v239_v24 = vld [vmem:[#allocation5 + $0x530] sm:$0xff] }
 0x284   :  { %5304 = vmatprep.subr.bf16.mxu0 %v8145_v60  ;;  %5427 = vmatprep.subr.bf16.mxu1 %v8147_v62  ;;  %v7478_v60 = vcombine.low %v144_v48, %v152_v49  ;;  %v7493_v62 = vcombine.high %v159_v54, %v167_v55  ;;  %v7495_v63 = vcombine.high %v160_v56, %v168_v58 }
 0x287   :  { %5305 = vmatpush1.bf16.msra.mxu0 %v8144_v6  ;;  %5428 = vmatpush1.bf16.msra.mxu1 %v8146_v7  ;;  %v184_v6 = vld [vmem:[#allocation5 + $0x378] sm:$0xff]  ;;  %v7492_v7 = vcombine.low %v159_v54, %v167_v55  ;;  %v255_v55 = vld [vmem:[#allocation5 + $0x5b0] sm:$0xff] }
 0x288   :  { %5306 = vmatprep.subr.bf16.mxu0 %v8161_v8  ;;  %5429 = vmatprep.subr.bf16.mxu1 %v8163_v9  ;;  %v7494_v8 = vcombine.low %v160_v56, %v168_v58  ;;  %v7509_v9 = vcombine.high %v175_v0, %v183_v3  ;;  %v7511_v11 = vcombine.high %v176_v4, %v184_v6  ;;  %v263_v56 = vld [vmem:[#allocation5 + $0x5f0] sm:$0xff]  ;;  %v256_v58 = vld [vmem:[#allocation5 + $0x5b8] sm:$0xff] }
 0x289   :  { %v271_v3 = vld [vmem:[#allocation5 + $0x630] sm:$0xff] }
 0x28b   :  { %5307 = vmatpush1.bf16.msra.mxu0 %v8160_v16  ;;  %5430 = vmatpush1.bf16.msra.mxu1 %v8162_v17 }
 0x28c   :  { %5440 = vmatprep.subr.bf16.mxu0 %v7413_v18  ;;  %5563 = vmatprep.subr.bf16.mxu1 %v7415_v19  ;;  %v192_v18 = vld [vmem:[#allocation5 + $0x3b8] sm:$0xff] }
 0x28d   :  { %v200_v19 = vld [vmem:[#allocation5 + $0x3f8] sm:$0xff] }
 0x28e   :  { %5309 = vmatmul.mubr.bf16.vlgmr.msra.gmra.mrb[8].mxu0 %v8919_v38  ;;  %5432 = vmatmul.mubr.bf16.vlgmr.msra.gmra.mrb[8].mxu1 %v8919_v38  ;;  %v7527_v30 = vcombine.high %v192_v18, %v200_v19 }
 0x28f   :  { %5441 = vmatpush1.bf16.msra.mxu0 %v7412_v26  ;;  %5564 = vmatpush1.bf16.msra.mxu1 %v7414_v27  ;;  %v7510_v27 = vcombine.low %v176_v4, %v184_v6  ;;  %v279_v4 = vld [vmem:[#allocation5 + $0x670] sm:$0xff]  ;;  %v272_v6 = vld [vmem:[#allocation5 + $0x638] sm:$0xff] }
 0x290   :  { %5442 = vmatprep.subr.bf16.mxu0 %v7429_v28  ;;  %5565 = vmatprep.subr.bf16.mxu1 %v7431_v29  ;;  %v7525_v28 = vcombine.high %v191_v13, %v199_v14 }
 0x291   :  { %5472 = vmatprep.mubr.bf16.mxu0 %v8885_v57  ;;  %5595 = vmatprep.mubr.bf16.mxu1 %v8885_v57  ;;  %v7479_v57 = vcombine.high %v144_v48, %v152_v49  ;;  %v247_v48 = vld [vmem:[#allocation5 + $0x570] sm:$0xff]  ;;  %v240_v49 = vld [vmem:[#allocation5 + $0x538] sm:$0xff] }
 0x293   :  { %5443 = vmatpush1.bf16.msra.mxu0 %v7428_v15  ;;  %5566 = vmatpush1.bf16.msra.mxu1 %v7430_v35  ;;  %v216_v15 = vld [vmem:[#allocation5 + $0x478] sm:$0xff]  ;;  %v7524_v35 = vcombine.low %v191_v13, %v199_v14  ;;  %v287_v14 = vld [vmem:[#allocation5 + $0x6b0] sm:$0xff] }
 0x294   :  { %5444 = vmatprep.subr.bf16.mxu0 %v7445_v36  ;;  %5567 = vmatprep.subr.bf16.mxu1 %v7447_v37  ;;  %v7526_v36 = vcombine.low %v192_v18, %v200_v19  ;;  %v7541_v37 = vcombine.high %v207_v31, %v215_v32  ;;  %v7543_v39 = vcombine.high %v208_v33, %v216_v15  ;;  %v295_v18 = vld [vmem:[#allocation5 + $0x6f0] sm:$0xff]  ;;  %v288_v19 = vld [vmem:[#allocation5 + $0x6b8] sm:$0xff] }
 0x297   :  { %5445 = vmatpush1.bf16.msra.mxu0 %v7444_v43  ;;  %5568 = vmatpush1.bf16.msra.mxu1 %v7446_v44  ;;  %v232_v43 = vld [vmem:[#allocation5 + $0x4f8] sm:$0xff]  ;;  %v7540_v44 = vcombine.low %v207_v31, %v215_v32  ;;  %v7620_v32 = vcombine.low %v287_v14, %v295_v18 }
 0x298   :  { %5446 = vmatprep.subr.bf16.mxu0 %v7461_v45  ;;  %5569 = vmatprep.subr.bf16.mxu1 %v7463_v46  ;;  %v7542_v45 = vcombine.low %v208_v33, %v216_v15  ;;  %v7557_v46 = vcombine.high %v223_v40, %v231_v41  ;;  %v7559_v47 = vcombine.high %v224_v42, %v232_v43  ;;  %v312_v31 = vld [vmem:[#allocation5 + $0x778] sm:$0xff] }
 0x29b   :  { %5447 = vmatpush1.bf16.msra.mxu0 %v7460_v50  ;;  %5570 = vmatpush1.bf16.msra.mxu1 %v7462_v51  ;;  %v248_v50 = vld [vmem:[#allocation5 + $0x578] sm:$0xff]  ;;  %v7556_v51 = vcombine.low %v223_v40, %v231_v41 }
 0x29c   :  { %5448 = vmatprep.subr.bf16.mxu0 %v7477_v52  ;;  %5571 = vmatprep.subr.bf16.mxu1 %v7479_v57  ;;  %v7558_v52 = vcombine.low %v224_v42, %v232_v43  ;;  %v7573_v57 = vcombine.high %v239_v24, %v247_v48  ;;  %v7575_v54 = vcombine.high %v240_v49, %v248_v50  ;;  %v328_v40 = vld [vmem:[#allocation5 + $0x7f8] sm:$0xff] }
 0x29f   :  { %5449 = vmatpush1.bf16.msra.mxu0 %v7476_v59  ;;  %5572 = vmatpush1.bf16.msra.mxu1 %v7478_v60  ;;  %v264_v59 = vld [vmem:[#allocation5 + $0x5f8] sm:$0xff]  ;;  %v7572_v60 = vcombine.low %v239_v24, %v247_v48 }
 0x2a0   :  { %5450 = vmatprep.subr.bf16.mxu0 %v7493_v62  ;;  %5573 = vmatprep.subr.bf16.mxu1 %v7495_v63  ;;  %v7574_v62 = vcombine.low %v240_v49, %v248_v50  ;;  %v7589_v63 = vcombine.high %v255_v55, %v263_v56  ;;  %v7591_v0 = vcombine.high %v256_v58, %v264_v59  ;;  %v344_v24 = vld [vmem:[#allocation5 + $0x878] sm:$0xff] }
 0x2a1   :  { %v8957_v10 = vpop.f32.mrb[4].mxu0  ;;  %v8959_v16 = vpop.f32.mrb[4].mxu1 }
 0x2a2   :  { %v8961_v17 = vpop.f32.mrb[5].mxu0  ;;  %v8963_v20 = vpop.f32.mrb[5].mxu1 }
 0x2a3   :  { %v5068_v21 = vpop.f32.mrb[6].mxu0  ;;  %5451 = vmatpush1.bf16.msra.mxu0 %v7492_v7  ;;  %v5191_v23 = vpop.f32.mrb[6].mxu1  ;;  %5574 = vmatpush1.bf16.msra.mxu1 %v7494_v8  ;;  %v280_v7 = vld [vmem:[#allocation5 + $0x678] sm:$0xff]  ;;  %v7588_v8 = vcombine.low %v255_v55, %v263_v56 }
 0x2a4   :  { %v5069_v26 = vpop.f32.mrb[7].mxu0  ;;  %5452 = vmatprep.subr.bf16.mxu0 %v7509_v9  ;;  %v5192_v29 = vpop.f32.mrb[7].mxu1  ;;  %5575 = vmatprep.subr.bf16.mxu1 %v7511_v11  ;;  %v7590_v9 = vcombine.low %v256_v58, %v264_v59  ;;  %v7605_v11 = vcombine.high %v271_v3, %v279_v4  ;;  %v7607_v13 = vcombine.high %v272_v6, %v280_v7  ;;  %v296_v21 = vld [vmem:[#allocation5 + $0x6f8] sm:$0xff] }
 0x2a5   :  { %v7606_v23 = vcombine.low %v272_v6, %v280_v7  ;;  %v7621_v26 = vcombine.high %v287_v14, %v295_v18  ;;  %v311_v29 = vld [vmem:[#allocation5 + $0x770] sm:$0xff]  ;;  %v7622_v33 = vcombine.low %v288_v19, %v296_v21  ;;  %v360_v55 = vld [vmem:[#allocation5 + $0x8f8] sm:$0xff] }
 0x2a6   :  { %v392_v14 = vld [vmem:[#allocation5 + $0x9f8] sm:$0xff] }
 0x2a7   :  { %5453 = vmatpush1.bf16.msra.mxu0 %v7508_v22  ;;  %5576 = vmatpush1.bf16.msra.mxu1 %v7510_v27  ;;  %v7604_v22 = vcombine.low %v271_v3, %v279_v4  ;;  %v7623_v27 = vcombine.high %v288_v19, %v296_v21  ;;  %v376_v3 = vld [vmem:[#allocation5 + $0x978] sm:$0xff] }
 0x2a8   :  { %5454 = vmatprep.subr.bf16.mxu0 %v7525_v28  ;;  %5577 = vmatprep.subr.bf16.mxu1 %v7527_v30  ;;  %v303_v28 = vld [vmem:[#allocation5 + $0x730] sm:$0xff]  ;;  %v304_v30 = vld [vmem:[#allocation5 + $0x738] sm:$0xff] }
 0x2a9   :  { %v7637_v15 = vcombine.high %v303_v28, %v311_v29  ;;  %v7636_v41 = vcombine.low %v303_v28, %v311_v29  ;;  %v7638_v42 = vcombine.low %v304_v30, %v312_v31 }
 0x2ab   :  { %5455 = vmatpush1.bf16.msra.mxu0 %v7524_v35  ;;  %5578 = vmatpush1.bf16.msra.mxu1 %v7526_v36  ;;  %v7639_v35 = vcombine.high %v304_v30, %v312_v31  ;;  %v319_v36 = vld [vmem:[#allocation5 + $0x7b0] sm:$0xff] }
 0x2ac   :  { %5456 = vmatprep.subr.bf16.mxu0 %v7541_v37  ;;  %5579 = vmatprep.subr.bf16.mxu1 %v7543_v39  ;;  %v327_v37 = vld [vmem:[#allocation5 + $0x7f0] sm:$0xff]  ;;  %v320_v39 = vld [vmem:[#allocation5 + $0x7b8] sm:$0xff] }
 0x2ad   :  { %v7653_v43 = vcombine.high %v319_v36, %v327_v37  ;;  %v7652_v48 = vcombine.low %v319_v36, %v327_v37  ;;  %v7654_v49 = vcombine.low %v320_v39, %v328_v40  ;;  %v415_v31 = vld [vmem:[#allocation5 + $0xab0] sm:$0xff] }
 0x2af   :  { %5457 = vmatpush1.bf16.msra.mxu0 %v7540_v44  ;;  %5580 = vmatpush1.bf16.msra.mxu1 %v7542_v45  ;;  %v7655_v44 = vcombine.high %v320_v39, %v328_v40  ;;  %v335_v45 = vld [vmem:[#allocation5 + $0x830] sm:$0xff] }
 0x2b0   :  { %5458 = vmatprep.subr.bf16.mxu0 %v7557_v46  ;;  %5581 = vmatprep.subr.bf16.mxu1 %v7559_v47  ;;  %v343_v46 = vld [vmem:[#allocation5 + $0x870] sm:$0xff]  ;;  %v336_v47 = vld [vmem:[#allocation5 + $0x838] sm:$0xff] }
 0x2b1   :  { %v7669_v50 = vcombine.high %v335_v45, %v343_v46  ;;  %v7668_v56 = vcombine.low %v335_v45, %v343_v46  ;;  %v7670_v58 = vcombine.low %v336_v47, %v344_v24  ;;  %v431_v40 = vld [vmem:[#allocation5 + $0xb30] sm:$0xff] }
 0x2b3   :  { %5459 = vmatpush1.bf16.msra.mxu0 %v7556_v51  ;;  %5582 = vmatpush1.bf16.msra.mxu1 %v7558_v52  ;;  %v7671_v51 = vcombine.high %v336_v47, %v344_v24  ;;  %v351_v52 = vld [vmem:[#allocation5 + $0x8b0] sm:$0xff] }
 0x2b4   :  { %5460 = vmatprep.subr.bf16.mxu0 %v7573_v57  ;;  %5583 = vmatprep.subr.bf16.mxu1 %v7575_v54  ;;  %v359_v57 = vld [vmem:[#allocation5 + $0x8f0] sm:$0xff]  ;;  %v352_v54 = vld [vmem:[#allocation5 + $0x8b8] sm:$0xff] }
 0x2b5   :  { %v7685_v59 = vcombine.high %v351_v52, %v359_v57  ;;  %v7684_v4 = vcombine.low %v351_v52, %v359_v57  ;;  %v7686_v6 = vcombine.low %v352_v54, %v360_v55  ;;  %v447_v24 = vld [vmem:[#allocation5 + $0xbb0] sm:$0xff] }
 0x2b7   :  { %5461 = vmatpush1.bf16.msra.mxu0 %v7572_v60  ;;  %5584 = vmatpush1.bf16.msra.mxu1 %v7574_v62  ;;  %v7687_v60 = vcombine.high %v352_v54, %v360_v55  ;;  %v367_v62 = vld [vmem:[#allocation5 + $0x930] sm:$0xff] }
 0x2b8   :  { %5462 = vmatprep.subr.bf16.mxu0 %v7589_v63  ;;  %5585 = vmatprep.subr.bf16.mxu1 %v7591_v0  ;;  %v375_v63 = vld [vmem:[#allocation5 + $0x970] sm:$0xff]  ;;  %v368_v0 = vld [vmem:[#allocation5 + $0x938] sm:$0xff] }
 0x2b9   :  { %v7701_v7 = vcombine.high %v367_v62, %v375_v63  ;;  %v7700_v18 = vcombine.low %v367_v62, %v375_v63  ;;  %v463_v55 = vld [vmem:[#allocation5 + $0xc30] sm:$0xff] }
 0x2bb   :  { %5463 = vmatpush1.bf16.msra.mxu0 %v7588_v8  ;;  %5586 = vmatpush1.bf16.msra.mxu1 %v7590_v9  ;;  %v7703_v8 = vcombine.high %v368_v0, %v376_v3  ;;  %v383_v9 = vld [vmem:[#allocation5 + $0x9b0] sm:$0xff] }
 0x2bc   :  { %5464 = vmatprep.subr.bf16.mxu0 %v7605_v11  ;;  %5587 = vmatprep.subr.bf16.mxu1 %v7607_v13  ;;  %v391_v11 = vld [vmem:[#allocation5 + $0x9f0] sm:$0xff]  ;;  %v384_v13 = vld [vmem:[#allocation5 + $0x9b8] sm:$0xff] }
 0x2bd   :  { %v7717_v19 = vcombine.high %v383_v9, %v391_v11  ;;  %v7719_v21 = vcombine.high %v384_v13, %v392_v14  ;;  %v7716_v28 = vcombine.low %v383_v9, %v391_v11  ;;  %v7718_v29 = vcombine.low %v384_v13, %v392_v14  ;;  %v495_v14 = vld [vmem:[#allocation5 + $0xd30] sm:$0xff] }
 0x2bf   :  { %5465 = vmatpush1.bf16.msra.mxu0 %v7604_v22  ;;  %5588 = vmatpush1.bf16.msra.mxu1 %v7606_v23  ;;  %v399_v22 = vld [vmem:[#allocation5 + $0xa30] sm:$0xff] }
 0x2c0   :  { %5466 = vmatprep.subr.bf16.mxu0 %v7621_v26  ;;  %5589 = vmatprep.subr.bf16.mxu1 %v7623_v27  ;;  %v407_v23 = vld [vmem:[#allocation5 + $0xa70] sm:$0xff]  ;;  %v400_v26 = vld [vmem:[#allocation5 + $0xa38] sm:$0xff] }
 0x2c1   :  { %v408_v27 = vld [vmem:[#allocation5 + $0xa78] sm:$0xff]  ;;  %v7733_v30 = vcombine.high %v399_v22, %v407_v23 }
 0x2c2   :  { %v7734_v36 = vcombine.low %v400_v26, %v408_v27 }
 0x2c3   :  { %5467 = vmatpush1.bf16.msra.mxu0 %v7620_v32  ;;  %5590 = vmatpush1.bf16.msra.mxu1 %v7622_v33  ;;  %v423_v32 = vld [vmem:[#allocation5 + $0xaf0] sm:$0xff]  ;;  %v416_v33 = vld [vmem:[#allocation5 + $0xab8] sm:$0xff] }
 0x2c4   :  { %5468 = vmatprep.subr.bf16.mxu0 %v7637_v15  ;;  %5591 = vmatprep.subr.bf16.mxu1 %v7639_v35  ;;  %v424_v15 = vld [vmem:[#allocation5 + $0xaf8] sm:$0xff]  ;;  %v7732_v35 = vcombine.low %v399_v22, %v407_v23  ;;  %v7749_v37 = vcombine.high %v415_v31, %v423_v32 }
 0x2c5   :  { %v7751_v39 = vcombine.high %v416_v33, %v424_v15  ;;  %v7750_v45 = vcombine.low %v416_v33, %v424_v15  ;;  %v527_v15 = vld [vmem:[#allocation5 + $0xe30] sm:$0xff] }
 0x2c7   :  { %5469 = vmatpush1.bf16.msra.mxu0 %v7636_v41  ;;  %5592 = vmatpush1.bf16.msra.mxu1 %v7638_v42  ;;  %v439_v41 = vld [vmem:[#allocation5 + $0xb70] sm:$0xff]  ;;  %v432_v42 = vld [vmem:[#allocation5 + $0xb38] sm:$0xff] }
 0x2c8   :  { %5470 = vmatprep.subr.bf16.mxu0 %v7653_v43  ;;  %5593 = vmatprep.subr.bf16.mxu1 %v7655_v44  ;;  %v440_v43 = vld [vmem:[#allocation5 + $0xb78] sm:$0xff]  ;;  %v7748_v44 = vcombine.low %v415_v31, %v423_v32  ;;  %v7765_v46 = vcombine.high %v431_v40, %v439_v41 }
 0x2c9   :  { %v7767_v47 = vcombine.high %v432_v42, %v440_v43  ;;  %v7766_v52 = vcombine.low %v432_v42, %v440_v43  ;;  %v543_v43 = vld [vmem:[#allocation5 + $0xeb0] sm:$0xff] }
 0x2cb   :  { %5471 = vmatpush1.bf16.msra.mxu0 %v7652_v48  ;;  %5594 = vmatpush1.bf16.msra.mxu1 %v7654_v49  ;;  %v455_v48 = vld [vmem:[#allocation5 + $0xbf0] sm:$0xff]  ;;  %v448_v49 = vld [vmem:[#allocation5 + $0xbb8] sm:$0xff] }
 0x2cc   :  { %5481 = vmatprep.subr.bf16.mxu0 %v7669_v50  ;;  %5604 = vmatprep.subr.bf16.mxu1 %v7671_v51  ;;  %v456_v50 = vld [vmem:[#allocation5 + $0xbf8] sm:$0xff]  ;;  %v7764_v51 = vcombine.low %v431_v40, %v439_v41  ;;  %v7781_v57 = vcombine.high %v447_v24, %v455_v48 }
 0x2cd   :  { %v7783_v54 = vcombine.high %v448_v49, %v456_v50  ;;  %v7782_v62 = vcombine.low %v448_v49, %v456_v50  ;;  %v559_v50 = vld [vmem:[#allocation5 + $0xf30] sm:$0xff] }
 0x2ce   :  { %5473 = vmatmul.mubr.bf16.vlgmr.msra.gmra.mrb[12].mxu0 %v8891_v12  ;;  %5596 = vmatmul.mubr.bf16.vlgmr.msra.gmra.mrb[12].mxu1 %v8891_v12  ;;  %v7702_v12 = vcombine.low %v368_v0, %v376_v3  ;;  %v479_v3 = vld [vmem:[#allocation5 + $0xcb0] sm:$0xff] }
 0x2cf   :  { %5482 = vmatpush1.bf16.msra.mxu0 %v7668_v56  ;;  %5605 = vmatpush1.bf16.msra.mxu1 %v7670_v58  ;;  %v471_v56 = vld [vmem:[#allocation5 + $0xc70] sm:$0xff]  ;;  %v464_v58 = vld [vmem:[#allocation5 + $0xc38] sm:$0xff] }
 0x2d0   :  { %5483 = vmatprep.subr.bf16.mxu0 %v7685_v59  ;;  %5606 = vmatprep.subr.bf16.mxu1 %v7687_v60  ;;  %v472_v59 = vld [vmem:[#allocation5 + $0xc78] sm:$0xff]  ;;  %v7780_v60 = vcombine.low %v447_v24, %v455_v48  ;;  %v7797_v63 = vcombine.high %v463_v55, %v471_v56 }
 0x2d1   :  { %5513 = vmatprep.mubr.bf16.mxu0 %v8897_v53  ;;  %5636 = vmatprep.mubr.bf16.mxu1 %v8897_v53  ;;  %v7735_v53 = vcombine.high %v400_v26, %v408_v27  ;;  %v7799_v0 = vcombine.high %v464_v58, %v472_v59  ;;  %v7798_v9 = vcombine.low %v464_v58, %v472_v59  ;;  %v511_v27 = vld [vmem:[#allocation5 + $0xdb0] sm:$0xff] }
 0x2d2   :  { %v575_v59 = vld [vmem:[#allocation5 + $0xfb0] sm:$0xff] }
 0x2d3   :  { %5484 = vmatpush1.bf16.msra.mxu0 %v7684_v4  ;;  %5607 = vmatpush1.bf16.msra.mxu1 %v7686_v6  ;;  %v487_v4 = vld [vmem:[#allocation5 + $0xcf0] sm:$0xff]  ;;  %v480_v6 = vld [vmem:[#allocation5 + $0xcb8] sm:$0xff] }
 0x2d4   :  { %5485 = vmatprep.subr.bf16.mxu0 %v7701_v7  ;;  %5608 = vmatprep.subr.bf16.mxu1 %v7703_v8  ;;  %v488_v7 = vld [vmem:[#allocation5 + $0xcf8] sm:$0xff]  ;;  %v7796_v8 = vcombine.low %v463_v55, %v471_v56  ;;  %v7813_v11 = vcombine.high %v479_v3, %v487_v4 }
 0x2d5   :  { %v7815_v13 = vcombine.high %v480_v6, %v488_v7  ;;  %v7814_v22 = vcombine.low %v480_v6, %v488_v7  ;;  %v591_v7 = vld [vmem:[#allocation5 + $0x1030] sm:$0xff] }
 0x2d7   :  { %5486 = vmatpush1.bf16.msra.mxu0 %v7700_v18  ;;  %5609 = vmatpush1.bf16.msra.mxu1 %v7702_v12  ;;  %v503_v18 = vld [vmem:[#allocation5 + $0xd70] sm:$0xff]  ;;  %v496_v12 = vld [vmem:[#allocation5 + $0xd38] sm:$0xff] }
 0x2d8   :  { %5487 = vmatprep.subr.bf16.mxu0 %v7717_v19  ;;  %5610 = vmatprep.subr.bf16.mxu1 %v7719_v21  ;;  %v504_v19 = vld [vmem:[#allocation5 + $0xd78] sm:$0xff]  ;;  %v7812_v21 = vcombine.low %v479_v3, %v487_v4  ;;  %v7829_v23 = vcombine.high %v495_v14, %v503_v18 }
 0x2d9   :  { %v7831_v26 = vcombine.high %v496_v12, %v504_v19  ;;  %v7830_v31 = vcombine.low %v496_v12, %v504_v19  ;;  %v607_v19 = vld [vmem:[#allocation5 + $0x10b0] sm:$0xff] }
 0x2db   :  { %5488 = vmatpush1.bf16.msra.mxu0 %v7716_v28  ;;  %5611 = vmatpush1.bf16.msra.mxu1 %v7718_v29  ;;  %v519_v28 = vld [vmem:[#allocation5 + $0xdf0] sm:$0xff]  ;;  %v512_v29 = vld [vmem:[#allocation5 + $0xdb8] sm:$0xff] }
 0x2dc   :  { %5489 = vmatprep.subr.bf16.mxu0 %v7733_v30  ;;  %5612 = vmatprep.subr.bf16.mxu1 %v7735_v53  ;;  %v520_v30 = vld [vmem:[#allocation5 + $0xdf8] sm:$0xff]  ;;  %v7828_v53 = vcombine.low %v495_v14, %v503_v18  ;;  %v7845_v32 = vcombine.high %v511_v27, %v519_v28 }
 0x2dd   :  { %v7847_v33 = vcombine.high %v512_v29, %v520_v30  ;;  %v7846_v40 = vcombine.low %v512_v29, %v520_v30  ;;  %v623_v30 = vld [vmem:[#allocation5 + $0x1130] sm:$0xff] }
 0x2df   :  { %5490 = vmatpush1.bf16.msra.mxu0 %v7732_v35  ;;  %5613 = vmatpush1.bf16.msra.mxu1 %v7734_v36  ;;  %v535_v35 = vld [vmem:[#allocation5 + $0xe70] sm:$0xff]  ;;  %v528_v36 = vld [vmem:[#allocation5 + $0xe38] sm:$0xff] }
 0x2e0   :  { %5491 = vmatprep.subr.bf16.mxu0 %v7749_v37  ;;  %5614 = vmatprep.subr.bf16.mxu1 %v7751_v39  ;;  %v536_v37 = vld [vmem:[#allocation5 + $0xe78] sm:$0xff]  ;;  %v7844_v39 = vcombine.low %v511_v27, %v519_v28  ;;  %v7861_v41 = vcombine.high %v527_v15, %v535_v35 }
 0x2e1   :  { %v7863_v42 = vcombine.high %v528_v36, %v536_v37  ;;  %v7862_v24 = vcombine.low %v528_v36, %v536_v37  ;;  %v639_v37 = vld [vmem:[#allocation5 + $0x11b0] sm:$0xff] }
 0x2e3   :  { %5492 = vmatpush1.bf16.msra.mxu0 %v7748_v44  ;;  %5615 = vmatpush1.bf16.msra.mxu1 %v7750_v45  ;;  %v551_v44 = vld [vmem:[#allocation5 + $0xef0] sm:$0xff]  ;;  %v544_v45 = vld [vmem:[#allocation5 + $0xeb8] sm:$0xff] }
 0x2e4   :  { %5493 = vmatprep.subr.bf16.mxu0 %v7765_v46  ;;  %5616 = vmatprep.subr.bf16.mxu1 %v7767_v47  ;;  %v552_v46 = vld [vmem:[#allocation5 + $0xef8] sm:$0xff]  ;;  %v7860_v47 = vcombine.low %v527_v15, %v535_v35  ;;  %v7877_v48 = vcombine.high %v543_v43, %v551_v44 }
 0x2e5   :  { %v7879_v49 = vcombine.high %v544_v45, %v552_v46  ;;  %v7878_v55 = vcombine.low %v544_v45, %v552_v46  ;;  %v655_v45 = vld [vmem:[#allocation5 + $0x1230] sm:$0xff] }
 0x2e6   :  { %v663_v46 = vld [vmem:[#allocation5 + $0x1270] sm:$0xff] }
 0x2e7   :  { %5494 = vmatpush1.bf16.msra.mxu0 %v7764_v51  ;;  %5617 = vmatpush1.bf16.msra.mxu1 %v7766_v52  ;;  %v567_v51 = vld [vmem:[#allocation5 + $0xf70] sm:$0xff]  ;;  %v560_v52 = vld [vmem:[#allocation5 + $0xf38] sm:$0xff] }
 0x2e8   :  { %5495 = vmatprep.subr.bf16.mxu0 %v7781_v57  ;;  %5618 = vmatprep.subr.bf16.mxu1 %v7783_v54  ;;  %v568_v57 = vld [vmem:[#allocation5 + $0xf78] sm:$0xff]  ;;  %v7876_v54 = vcombine.low %v543_v43, %v551_v44  ;;  %v7893_v56 = vcombine.high %v559_v50, %v567_v51 }
 0x2e9   :  { %v7895_v58 = vcombine.high %v560_v52, %v568_v57  ;;  %v7894_v3 = vcombine.low %v560_v52, %v568_v57  ;;  %v679_v52 = vld [vmem:[#allocation5 + $0x12f0] sm:$0xff]  ;;  %v672_v57 = vld [vmem:[#allocation5 + $0x12b8] sm:$0xff] }
 0x2eb   :  { %5496 = vmatpush1.bf16.msra.mxu0 %v7780_v60  ;;  %5619 = vmatpush1.bf16.msra.mxu1 %v7782_v62  ;;  %v583_v60 = vld [vmem:[#allocation5 + $0xff0] sm:$0xff]  ;;  %v576_v62 = vld [vmem:[#allocation5 + $0xfb8] sm:$0xff] }
 0x2ec   :  { %5497 = vmatprep.subr.bf16.mxu0 %v7797_v63  ;;  %5620 = vmatprep.subr.bf16.mxu1 %v7799_v0  ;;  %v584_v63 = vld [vmem:[#allocation5 + $0xff8] sm:$0xff]  ;;  %v7892_v0 = vcombine.low %v559_v50, %v567_v51  ;;  %v7909_v4 = vcombine.high %v575_v59, %v583_v60  ;;  %v7989_v50 = vcombine.high %v655_v45, %v663_v46  ;;  %v671_v51 = vld [vmem:[#allocation5 + $0x12b0] sm:$0xff] }
 0x2ed   :  { %v7911_v6 = vcombine.high %v576_v62, %v584_v63  ;;  %v7910_v14 = vcombine.low %v576_v62, %v584_v63  ;;  %v695_v62 = vld [vmem:[#allocation5 + $0x1370] sm:$0xff]  ;;  %v688_v63 = vld [vmem:[#allocation5 + $0x1338] sm:$0xff] }
 0x2ef   :  { %5498 = vmatpush1.bf16.msra.mxu0 %v7796_v8  ;;  %5621 = vmatpush1.bf16.msra.mxu1 %v7798_v9  ;;  %v599_v8 = vld [vmem:[#allocation5 + $0x1070] sm:$0xff]  ;;  %v592_v9 = vld [vmem:[#allocation5 + $0x1038] sm:$0xff] }
 0x2f0   :  { %5499 = vmatprep.subr.bf16.mxu0 %v7813_v11  ;;  %5622 = vmatprep.subr.bf16.mxu1 %v7815_v13  ;;  %v600_v11 = vld [vmem:[#allocation5 + $0x1078] sm:$0xff]  ;;  %v7908_v13 = vcombine.low %v575_v59, %v583_v60  ;;  %v7925_v18 = vcombine.high %v591_v7, %v599_v8  ;;  %v687_v60 = vld [vmem:[#allocation5 + $0x1330] sm:$0xff] }
 0x2f1   :  { %v7927_v12 = vcombine.high %v592_v9, %v600_v11  ;;  %v7926_v27 = vcombine.low %v592_v9, %v600_v11  ;;  %v711_v9 = vld [vmem:[#allocation5 + $0x13f0] sm:$0xff]  ;;  %v704_v11 = vld [vmem:[#allocation5 + $0x13b8] sm:$0xff] }
 0x2f3   :  { %5500 = vmatpush1.bf16.msra.mxu0 %v7812_v21  ;;  %5623 = vmatpush1.bf16.msra.mxu1 %v7814_v22  ;;  %v615_v21 = vld [vmem:[#allocation5 + $0x10f0] sm:$0xff]  ;;  %v608_v22 = vld [vmem:[#allocation5 + $0x10b8] sm:$0xff] }
 0x2f4   :  { %5501 = vmatprep.subr.bf16.mxu0 %v7829_v23  ;;  %5624 = vmatprep.subr.bf16.mxu1 %v7831_v26  ;;  %v616_v23 = vld [vmem:[#allocation5 + $0x10f8] sm:$0xff]  ;;  %v7924_v26 = vcombine.low %v591_v7, %v599_v8  ;;  %v7941_v28 = vcombine.high %v607_v19, %v615_v21  ;;  %v703_v8 = vld [vmem:[#allocation5 + $0x13b0] sm:$0xff] }
 0x2f5   :  { %v7943_v29 = vcombine.high %v608_v22, %v616_v23  ;;  %v7942_v15 = vcombine.low %v608_v22, %v616_v23  ;;  %v727_v22 = vld [vmem:[#allocation5 + $0x1470] sm:$0xff]  ;;  %v720_v23 = vld [vmem:[#allocation5 + $0x1438] sm:$0xff] }
 0x2f7   :  { %5502 = vmatpush1.bf16.msra.mxu0 %v7828_v53  ;;  %5625 = vmatpush1.bf16.msra.mxu1 %v7830_v31  ;;  %v631_v53 = vld [vmem:[#allocation5 + $0x1170] sm:$0xff]  ;;  %v624_v31 = vld [vmem:[#allocation5 + $0x1138] sm:$0xff] }
 0x2f8   :  { %5503 = vmatprep.subr.bf16.mxu0 %v7845_v32  ;;  %5626 = vmatprep.subr.bf16.mxu1 %v7847_v33  ;;  %v632_v32 = vld [vmem:[#allocation5 + $0x1178] sm:$0xff]  ;;  %v7940_v33 = vcombine.low %v607_v19, %v615_v21  ;;  %v7957_v35 = vcombine.high %v623_v30, %v631_v53  ;;  %v719_v21 = vld [vmem:[#allocation5 + $0x1430] sm:$0xff] }
 0x2f9   :  { %v7959_v36 = vcombine.high %v624_v31, %v632_v32 }
 0x2fb   :  { %5504 = vmatpush1.bf16.msra.mxu0 %v7844_v39  ;;  %5627 = vmatpush1.bf16.msra.mxu1 %v7846_v40  ;;  %v647_v39 = vld [vmem:[#allocation5 + $0x11f0] sm:$0xff]  ;;  %v640_v40 = vld [vmem:[#allocation5 + $0x11b8] sm:$0xff] }
 0x2fc   :  { %5505 = vmatprep.subr.bf16.mxu0 %v7861_v41  ;;  %5628 = vmatprep.subr.bf16.mxu1 %v7863_v42  ;;  %v648_v41 = vld [vmem:[#allocation5 + $0x11f8] sm:$0xff]  ;;  %v7956_v42 = vcombine.low %v623_v30, %v631_v53  ;;  %v7973_v43 = vcombine.high %v639_v37, %v647_v39  ;;  %v8053_v30 = vcombine.high %v719_v21, %v727_v22  ;;  %v5834_v53 = vrot.slane %v8943_v5, 4 }
 0x2fd   :  { %v7975_v44 = vcombine.high %v640_v40, %v648_v41 }
 0x2ff   :  { %5506 = vmatpush1.bf16.msra.mxu0 %v7860_v47  ;;  %5629 = vmatpush1.bf16.msra.mxu1 %v7862_v24  ;;  %v656_v47 = vld [vmem:[#allocation5 + $0x1238] sm:$0xff] }
 0x300   :  { %5507 = vmatprep.subr.bf16.mxu0 %v7877_v48  ;;  %5630 = vmatprep.subr.bf16.mxu1 %v7879_v49  ;;  %v664_v24 = vld [vmem:[#allocation5 + $0x1278] sm:$0xff]  ;;  %v7972_v48 = vcombine.low %v639_v37, %v647_v39  ;;  %v7974_v49 = vcombine.low %v640_v40, %v648_v41  ;;  %v5884_v41 = vsel %vm5686_vm0, %v5834_v53, 0.0 }
 0x303   :  { %5508 = vmatpush1.bf16.msra.mxu0 %v7876_v54  ;;  %5631 = vmatpush1.bf16.msra.mxu1 %v7878_v55  ;;  %v680_v54 = vld [vmem:[#allocation5 + $0x12f8] sm:$0xff]  ;;  %v7988_v55 = vcombine.low %v655_v45, %v663_v46 }
 0x304   :  { %5509 = vmatprep.subr.bf16.mxu0 %v7893_v56  ;;  %5632 = vmatprep.subr.bf16.mxu1 %v7895_v58  ;;  %v7990_v56 = vcombine.low %v656_v47, %v664_v24  ;;  %v8005_v58 = vcombine.high %v671_v51, %v679_v52  ;;  %v8007_v59 = vcombine.high %v672_v57, %v680_v54  ;;  %v752_v45 = vld [vmem:[#allocation5 + $0x1538] sm:$0xff] }
 0x305   :  { %v760_v46 = vld [vmem:[#allocation5 + $0x1578] sm:$0xff] }
 0x307   :  { %5510 = vmatpush1.bf16.msra.mxu0 %v7892_v0  ;;  %5633 = vmatpush1.bf16.msra.mxu1 %v7894_v3  ;;  %v696_v0 = vld [vmem:[#allocation5 + $0x1378] sm:$0xff]  ;;  %v8004_v3 = vcombine.low %v671_v51, %v679_v52  ;;  %v8087_v52 = vcombine.high %v752_v45, %v760_v46 }
 0x308   :  { %5511 = vmatprep.subr.bf16.mxu0 %v7909_v4  ;;  %5634 = vmatprep.subr.bf16.mxu1 %v7911_v6  ;;  %v8006_v4 = vcombine.low %v672_v57, %v680_v54  ;;  %v8021_v6 = vcombine.high %v687_v60, %v695_v62  ;;  %v8023_v7 = vcombine.high %v688_v63, %v696_v0  ;;  %v767_v57 = vld [vmem:[#allocation5 + $0x15b0] sm:$0xff] }
 0x309   :  { %v775_v54 = vld [vmem:[#allocation5 + $0x15f0] sm:$0xff] }
 0x30b   :  { %5512 = vmatpush1.bf16.msra.mxu0 %v7908_v13  ;;  %5635 = vmatpush1.bf16.msra.mxu1 %v7910_v14  ;;  %v712_v13 = vld [vmem:[#allocation5 + $0x13f8] sm:$0xff]  ;;  %v8020_v14 = vcombine.low %v687_v60, %v695_v62  ;;  %v8101_v62 = vcombine.high %v767_v57, %v775_v54 }
 0x30c   :  { %5522 = vmatprep.subr.bf16.mxu0 %v7925_v18  ;;  %5645 = vmatprep.subr.bf16.mxu1 %v7927_v12  ;;  %v8022_v18 = vcombine.low %v688_v63, %v696_v0  ;;  %v8037_v12 = vcombine.high %v703_v8, %v711_v9  ;;  %v8039_v19 = vcombine.high %v704_v11, %v712_v13 }
 0x30e   :  { %5514 = vmatmul.mubr.bf16.vlgmr.msra.gmra.mrb[12].mxu0 %v8907_v25  ;;  %5637 = vmatmul.mubr.bf16.vlgmr.msra.gmra.mrb[12].mxu1 %v8907_v25  ;;  %v7958_v25 = vcombine.low %v624_v31, %v632_v32  ;;  %v735_v32 = vld [vmem:[#allocation5 + $0x14b0] sm:$0xff] }
 0x30f   :  { %5523 = vmatpush1.bf16.msra.mxu0 %v7924_v26  ;;  %5646 = vmatpush1.bf16.msra.mxu1 %v7926_v27  ;;  %v728_v26 = vld [vmem:[#allocation5 + $0x1478] sm:$0xff]  ;;  %v8036_v27 = vcombine.low %v703_v8, %v711_v9 }
 0x310   :  { %5524 = vmatprep.subr.bf16.mxu0 %v7941_v28  ;;  %5647 = vmatprep.subr.bf16.mxu1 %v7943_v29  ;;  %v5832_v28 = vrot.slane %v8941_v2, 4  ;;  %v8038_v29 = vcombine.low %v704_v11, %v712_v13  ;;  %v8055_v31 = vcombine.high %v720_v23, %v728_v26  ;;  %v8054_v39 = vcombine.low %v720_v23, %v728_v26  ;;  %v792_v8 = vld [vmem:[#allocation5 + $0x1678] sm:$0xff] }
 0x311   :  { %5554 = vmatprep.mubr.bf16.mxu0 %v8911_v34  ;;  %5677 = vmatprep.mubr.bf16.mxu1 %v8911_v34  ;;  %v7991_v34 = vcombine.high %v656_v47, %v664_v24  ;;  %v5708_v24 = vsel %vm5686_vm0, %v8943_v5, 0.0  ;;  %v8086_v5 = vcombine.low %v752_v45, %v760_v46  ;;  %v8100_v11 = vcombine.low %v767_v57, %v775_v54  ;;  %v800_v26 = vld [vmem:[#allocation5 + $0x16b8] sm:$0xff]  ;;  %v831_v46 = vld [vmem:[#allocation5 + $0x17b0] sm:$0xff] }
 0x312   :  { %v5870_v37 = vsel %vm5686_vm0, %v5832_v28, 0.0 }
 0x313   :  { %5525 = vmatpush1.bf16.msra.mxu0 %v7940_v33  ;;  %5648 = vmatpush1.bf16.msra.mxu1 %v7942_v15  ;;  %v743_v33 = vld [vmem:[#allocation5 + $0x14f0] sm:$0xff]  ;;  %v736_v15 = vld [vmem:[#allocation5 + $0x14b8] sm:$0xff]  ;;  %v5871_v47 = vrot.slane %v5870_v37, 4 }
 0x314   :  { %5526 = vmatprep.subr.bf16.mxu0 %v7957_v35  ;;  %5649 = vmatprep.subr.bf16.mxu1 %v7959_v36  ;;  %v744_v35 = vld [vmem:[#allocation5 + $0x14f8] sm:$0xff]  ;;  %v8052_v36 = vcombine.low %v719_v21, %v727_v22  ;;  %v8069_v40 = vcombine.high %v735_v32, %v743_v33  ;;  %v799_v21 = vld [vmem:[#allocation5 + $0x16b0] sm:$0xff] }
 0x315   :  { %v807_v22 = vld [vmem:[#allocation5 + $0x16f0] sm:$0xff] }
 0x317   :  { %5527 = vmatpush1.bf16.msra.mxu0 %v7956_v42  ;;  %5650 = vmatpush1.bf16.msra.mxu1 %v7958_v25  ;;  %v8071_v42 = vcombine.high %v736_v15, %v744_v35  ;;  %v751_v25 = vld [vmem:[#allocation5 + $0x1530] sm:$0xff] }
 0x318   :  { %5528 = vmatprep.subr.bf16.mxu0 %v7973_v43  ;;  %5651 = vmatprep.subr.bf16.mxu1 %v7975_v44  ;;  %v759_v43 = vld [vmem:[#allocation5 + $0x1570] sm:$0xff]  ;;  %v5694_v44 = vsel %vm5686_vm0, %v8941_v2, 0.0  ;;  %v768_v2 = vld [vmem:[#allocation5 + $0x15b8] sm:$0xff] }
 0x319   :  { %v5695_v51 = vrot.slane %v5694_v44, 4 }
 0x31b   :  { %5529 = vmatpush1.bf16.msra.mxu0 %v7972_v48  ;;  %5652 = vmatpush1.bf16.msra.mxu1 %v7974_v49  ;;  %v8068_v48 = vcombine.low %v735_v32, %v743_v33  ;;  %v5885_v49 = vrot.slane %v5884_v41, 4  ;;  %v5696_v63 = vadd.f32 %v5695_v51, %v5694_v44 }
 0x31c   :  { %5530 = vmatprep.subr.bf16.mxu0 %v7989_v50  ;;  %5653 = vmatprep.subr.bf16.mxu1 %v7991_v34  ;;  %v8070_v50 = vcombine.low %v736_v15, %v744_v35  ;;  %v8085_v34 = vcombine.high %v751_v25, %v759_v43  ;;  %v815_v15 = vld [vmem:[#allocation5 + $0x1730] sm:$0xff] }
 0x31d   :  { %v5886_v60 = vadd.f32 %v5885_v49, %v5884_v41  ;;  %v823_v35 = vld [vmem:[#allocation5 + $0x1770] sm:$0xff]  ;;  %v8132_v41 = vcombine.low %v799_v21, %v807_v22  ;;  %v840_v49 = vld [vmem:[#allocation5 + $0x17f8] sm:$0xff] }
 0x31f   :  { %5531 = vmatpush1.bf16.msra.mxu0 %v7988_v55  ;;  %5654 = vmatpush1.bf16.msra.mxu1 %v7990_v56  ;;  %v5709_v55 = vrot.slane %v5708_v24, 4  ;;  %v776_v56 = vld [vmem:[#allocation5 + $0x15f8] sm:$0xff]  ;;  %v5887_v13 = vrot.slane %v5886_v60, 2 }
 0x320   :  { %5532 = vmatprep.subr.bf16.mxu0 %v8005_v58  ;;  %5655 = vmatprep.subr.bf16.mxu1 %v8007_v59  ;;  %v5872_v58 = vadd.f32 %v5871_v47, %v5870_v37  ;;  %v8084_v59 = vcombine.low %v751_v25, %v759_v43  ;;  %v8103_v0 = vcombine.high %v768_v2, %v776_v56  ;;  %v816_v37 = vld [vmem:[#allocation5 + $0x1738] sm:$0xff]  ;;  %v839_v47 = vld [vmem:[#allocation5 + $0x17f0] sm:$0xff] }
 0x321   :  { %v8149_v43 = vcombine.high %v815_v15, %v823_v35  ;;  %v8165_v57 = vcombine.high %v831_v46, %v839_v47 }
 0x322   :  { %v5873_v9 = vrot.slane %v5872_v58, 2 }
 0x323   :  { %5533 = vmatpush1.bf16.msra.mxu0 %v8004_v3  ;;  %5656 = vmatpush1.bf16.msra.mxu1 %v8006_v4  ;;  %v783_v3 = vld [vmem:[#allocation5 + $0x1630] sm:$0xff] }
 0x324   :  { %5534 = vmatprep.subr.bf16.mxu0 %v8021_v6  ;;  %5657 = vmatprep.subr.bf16.mxu1 %v8023_v7  ;;  %v791_v4 = vld [vmem:[#allocation5 + $0x1670] sm:$0xff]  ;;  %v5710_v6 = vadd.f32 %v5709_v55, %v5708_v24  ;;  %v784_v7 = vld [vmem:[#allocation5 + $0x1638] sm:$0xff]  ;;  %v5874_v28 = vadd.f32 %v5873_v9, %v5872_v58  ;;  %v5833_v58 = vrot.slane %v8939_v1, 4 }
 0x325   :  { %v8118_v53 = vcombine.low %v784_v7, %v792_v8 }
 0x326   :  { %v5711_v23 = vrot.slane %v5710_v6, 2  ;;  %v5877_v9 = vsel %vm5686_vm0, %v5833_v58, 0.0  ;;  %v8568_v58 = vld [vmem:[#allocation7 + $0xe0] sm:$0xff]  }
 0x327   :  { %5535 = vmatpush1.bf16.msra.mxu0 %v8020_v14  ;;  %5658 = vmatpush1.bf16.msra.mxu1 %v8022_v18  ;;  %v8102_v14 = vcombine.low %v768_v2, %v776_v56  ;;  %v8117_v18 = vcombine.high %v783_v3, %v791_v4  ;;  %v5831_v2 = vrot.slane %v8937_v61, 4 }
 0x328   :  { %5536 = vmatprep.subr.bf16.mxu0 %v8037_v12  ;;  %5659 = vmatprep.subr.bf16.mxu1 %v8039_v19  ;;  %v5697_v12 = vrot.slane %v5696_v63, 2  ;;  %v8119_v19 = vcombine.high %v784_v7, %v792_v8 }
 0x329   :  { %v5863_v7 = vsel %vm5686_vm0, %v5831_v2, 0.0 }
 0x32a   :  { %v5698_v32 = vadd.f32 %v5697_v12, %v5696_v63  ;;  %v8551_v63 = vld [vmem:[#allocation7 + $0x40] sm:$0xff]  }
 0x32b   :  { %5537 = vmatpush1.bf16.msra.mxu0 %v8036_v27  ;;  %5660 = vmatpush1.bf16.msra.mxu1 %v8038_v29  ;;  %v808_v27 = vld [vmem:[#allocation5 + $0x16f8] sm:$0xff]  ;;  %v8116_v29 = vcombine.low %v783_v3, %v791_v4  ;;  %v5838_v4 = vrot.slane %v8963_v20, 4  ;;  %v8554_v12 = vld [vmem:[#allocation7 + $0x80] sm:$0xff]  }
 0x32c   :  { %5538 = vmatprep.subr.bf16.mxu0 %v8053_v30  ;;  %5661 = vmatprep.subr.bf16.mxu1 %v8055_v31  ;;  %v5888_v30 = vadd.f32 %v5887_v13, %v5886_v60  ;;  %v8133_v31 = vcombine.high %v799_v21, %v807_v22  ;;  %v8135_v33 = vcombine.high %v800_v26, %v808_v27  ;;  %v5699_v44 = vrot.slane %v5698_v32, 1 }
 0x32d   :  { %v8134_v25 = vcombine.low %v800_v26, %v808_v27  ;;  %v5864_v21 = vrot.slane %v5863_v7, 4  ;;  %v5701_v22 = vsel %vm5686_vm0, %v8939_v1, 0.0  ;;  %v8555_v26 = vld [vmem:[#allocation7 + $0x48] sm:$0xff]   ;;  %v5878_v27 = vrot.slane %v5877_v9, 4 }
 0x32e   :  { %v5700_v54 = vadd.f32 %v5699_v44, %v5698_v32  ;;  %v8557_v32 = vld [vmem:[#allocation7 + $0x8] sm:$0xff]   ;;  %v8562_v44 = vld [vmem:[#allocation7 + $0x90] sm:$0xff]  }
 0x32f   :  { %5539 = vmatpush1.bf16.msra.mxu0 %v8052_v36  ;;  %5662 = vmatpush1.bf16.msra.mxu1 %v8054_v39  ;;  %v5712_v36 = vadd.f32 %v5711_v23, %v5710_v6  ;;  %v824_v39 = vld [vmem:[#allocation5 + $0x1778] sm:$0xff]  ;;  %v8552_v6 = vld [vmem:[#allocation7 + $0xc0] sm:$0xff]   ;;  %v5912_v23 = vsel %vm5686_vm0, %v5838_v4, 0.0 }
 0x330   :  { %5540 = vmatprep.subr.bf16.mxu0 %v8069_v40  ;;  %5663 = vmatprep.subr.bf16.mxu1 %v8071_v42  ;;  %v5875_v40 = vrot.slane %v5874_v28, 1  ;;  %v5889_v42 = vrot.slane %v5888_v30, 1  ;;  %v8151_v45 = vcombine.high %v816_v37, %v824_v39  ;;  %v5800_v3 = vmul.f32 0.25, %v5700_v54  ;;  %v8566_v54 = vld [vmem:[#allocation7 + $0x98] sm:$0xff]   ;;  %v8570_v4 = vld [vmem:[#allocation7 + $0xa0] sm:$0xff]  }
 0x331   :  { %v5713_v24 = vrot.slane %v5712_v36, 1 }
 0x332   :  { %v5890_v51 = vadd.f32 %v5889_v42, %v5888_v30 }
 0x333   :  { %5541 = vmatpush1.bf16.msra.mxu0 %v8068_v48  ;;  %5664 = vmatpush1.bf16.msra.mxu1 %v8070_v50  ;;  %v832_v48 = vld [vmem:[#allocation5 + $0x17b8] sm:$0xff]  ;;  %v5876_v50 = vadd.f32 %v5875_v40, %v5874_v28  ;;  %v5714_v56 = vadd.f32 %v5713_v24, %v5712_v36  ;;  %v5722_v28 = vsel %vm5686_vm0, %v8961_v17, 0.0  ;;  %v5865_v36 = vadd.f32 %v5864_v21, %v5863_v7 }
 0x334   :  { %5542 = vmatprep.subr.bf16.mxu0 %v8085_v34  ;;  %5665 = vmatprep.subr.bf16.mxu1 %v8087_v52  ;;  %v8148_v34 = vcombine.low %v815_v15, %v823_v35  ;;  %v8150_v52 = vcombine.low %v816_v37, %v824_v39  ;;  %v8167_v55 = vcombine.high %v832_v48, %v840_v49  ;;  %v5913_v15 = vrot.slane %v5912_v23, 4  ;;  %v8558_v35 = vld [vmem:[#allocation7 + $0x88] sm:$0xff]   ;;  %v8560_v39 = vld [vmem:[#allocation7 + $0xd0] sm:$0xff]   ;;  %v8564_v24 = vld [vmem:[#allocation7 + $0xd8] sm:$0xff]  }
 0x335   :  { %v5976_v60 = vmul.f32 0.25, %v5876_v50  ;;  %v5802_v8 = vmul.f32 0.25, %v5714_v56  ;;  %v5723_v37 = vrot.slane %v5722_v28, 4  ;;  %v5879_v40 = vadd.f32 %v5878_v27, %v5877_v9  ;;  %v8572_v9 = vld [vmem:[#allocation7 + $0xe8] sm:$0xff]  }
 0x337   :  { %5543 = vmatpush1.bf16.msra.mxu0 %v8084_v59  ;;  %5666 = vmatpush1.bf16.msra.mxu1 %v8086_v5  ;;  %v8164_v59 = vcombine.low %v831_v46, %v839_v47  ;;  %v5836_v5 = vrot.slane %v8961_v17, 4  ;;  %v5993_v13 = vsel %vm5991_vm1, %v5800_v3, %v5976_v60  ;;  %v8559_v17 = vld [vmem:[#allocation7 + $0x50] sm:$0xff]   ;;  %v5866_v46 = vrot.slane %v5865_v36, 2 }
 0x338   :  { %5544 = vmatprep.subr.bf16.mxu0 %v8101_v62  ;;  %5667 = vmatprep.subr.bf16.mxu1 %v8103_v0  ;;  %v8166_v62 = vcombine.low %v832_v48, %v840_v49  ;;  %v5978_v0 = vmul.f32 0.25, %v5890_v51  ;;  %v5724_v47 = vadd.f32 %v5723_v37, %v5722_v28  ;;  %v5880_v48 = vrot.slane %v5879_v40, 2  ;;  %v8565_v51 = vld [vmem:[#allocation7 + $0x18] sm:$0xff]  }
 0x339   :  { %v5867_v2 = vadd.f32 %v5866_v46, %v5865_v36 }
 0x33a   :  { %v5725_v56 = vrot.slane %v5724_v47, 2 }
 0x33b   :  { %5545 = vmatpush1.bf16.msra.mxu0 %v8100_v11  ;;  %5668 = vmatpush1.bf16.msra.mxu1 %v8102_v14  ;;  %v8553_v11 = vld [vmem:[#allocation7] sm:$0xff]   ;;  %v5687_v14 = vsel %vm5686_vm0, %v8937_v61, 0.0  ;;  %v6009_v61 = vpack.c.bf16 %v5993_v13, %v5993_v13  ;;  %v5868_v7 = vrot.slane %v5867_v2, 1 }
 0x33c   :  { %5546 = vmatprep.subr.bf16.mxu0 %v8117_v18  ;;  %5669 = vmatprep.subr.bf16.mxu1 %v8119_v19  ;;  %v5898_v18 = vsel %vm5686_vm0, %v5836_v5, 0.0  ;;  %v5995_v19 = vsel %vm5991_vm1, %v5802_v8, %v5978_v0  ;;  %v5688_v30 = vrot.slane %v5687_v14, 4  ;;  %v5726_v8 = vadd.f32 %v5725_v56, %v5724_v47 }
 0x33d   :  { %v6011_v1 = vpack.c.bf16 %v5995_v19, %v5995_v19  ;;  %v5837_v47 = vrot.slane %v8959_v16, 4 }
 0x33e   :  { %v5727_v27 = vrot.slane %v5726_v8, 1 }
 0x33f   :  { %5547 = vmatpush1.bf16.msra.mxu0 %v8116_v29  ;;  %5670 = vmatpush1.bf16.msra.mxu1 %v8118_v53  ;;  %v8556_v29 = vld [vmem:[#allocation7 + $0xc8] sm:$0xff]   ;;  %v5899_v53 = vrot.slane %v5898_v18, 4 }
 0x340   :  { %5548 = vmatprep.subr.bf16.mxu0 %v8133_v31  ;;  %5671 = vmatprep.subr.bf16.mxu1 %v8135_v33  ;;  %v5736_v31 = vsel %vm5686_vm0, %v8963_v20, 0.0  ;;  %v5702_v33 = vrot.slane %v5701_v22, 4  ;;  %v5689_v20 = vadd.f32 %v5688_v30, %v5687_v14 }
 0x341   :  { %v5900_v42 = vadd.f32 %v5899_v53, %v5898_v18 }
 0x342   :  { %v5690_v50 = vrot.slane %v5689_v20, 2 }
 0x343   :  { %5549 = vmatpush1.bf16.msra.mxu0 %v8132_v41  ;;  %5672 = vmatpush1.bf16.msra.mxu1 %v8134_v25  ;;  %v5737_v41 = vrot.slane %v5736_v31, 4  ;;  %v5703_v25 = vadd.f32 %v5702_v33, %v5701_v22  ;;  %v8574_v22 = vld [vmem:[#allocation7 + $0xa8] sm:$0xff]  }
 0x344   :  { %5550 = vmatprep.subr.bf16.mxu0 %v8149_v43  ;;  %5673 = vmatprep.subr.bf16.mxu1 %v8151_v45  ;;  %v5914_v43 = vadd.f32 %v5913_v15, %v5912_v23  ;;  %v8563_v45 = vld [vmem:[#allocation7 + $0x58] sm:$0xff]   ;;  %v5691_v5 = vadd.f32 %v5690_v50, %v5689_v20  ;;  %v8575_v23 = vld [vmem:[#allocation7 + $0x70] sm:$0xff]  }
 0x345   :  { %v5738_v49 = vadd.f32 %v5737_v41, %v5736_v31  ;;  %v8579_v41 = vld [vmem:[#allocation7 + $0x78] sm:$0xff]  }
 0x346   :  { %v5692_v14 = vrot.slane %v5691_v5, 1 }
 0x347   :  { %5551 = vmatpush1.bf16.msra.mxu0 %v8148_v34  ;;  %5674 = vmatpush1.bf16.msra.mxu1 %v8150_v52  ;;  %v5901_v34 = vrot.slane %v5900_v42, 2  ;;  %v5704_v52 = vrot.slane %v5703_v25, 2  ;;  %v5739_v60 = vrot.slane %v5738_v49, 2 }
 0x348   :  { %5552 = vmatprep.subr.bf16.mxu0 %v8165_v57  ;;  %5675 = vmatprep.subr.bf16.mxu1 %v8167_v55  ;;  %v5915_v57 = vrot.slane %v5914_v43, 2  ;;  %v8567_v55 = vld [vmem:[#allocation7 + $0x60] sm:$0xff]  }
 0x349   :  { %v5705_v0 = vadd.f32 %v5704_v52, %v5703_v25  ;;  %v5740_v13 = vadd.f32 %v5739_v60, %v5738_v49  ;;  %v8580_v25 = vld [vmem:[#allocation7 + $0xf8] sm:$0xff]   ;;  %v5905_v60 = vsel %vm5686_vm0, %v5837_v47, 0.0 }
 0x34a   :  { %v5916_v3 = vadd.f32 %v5915_v57, %v5914_v43 }
 0x34b   :  { %5553 = vmatpush1.bf16.msra.mxu0 %v8164_v59  ;;  %5676 = vmatpush1.bf16.msra.mxu1 %v8166_v62  ;;  %v5881_v59 = vadd.f32 %v5880_v48, %v5879_v40  ;;  %v5902_v62 = vadd.f32 %v5901_v34, %v5900_v42  ;;  %v5706_v19 = vrot.slane %v5705_v0, 1  ;;  %v5741_v30 = vrot.slane %v5740_v13, 1  ;;  %v8578_v40 = vld [vmem:[#allocation7 + $0xb0] sm:$0xff]   ;;  %v8582_v34 = vld [vmem:[#allocation7 + $0xb8] sm:$0xff]  }
 0x34c   :  { %8297 = vmatprep.subr.bf16.mxu0 %v8551_v63  ;;  %8319 = vmatprep.subr.bf16.mxu1 %v8552_v6  ;;  %v8569_v63 = vld [vmem:[#allocation7 + $0x20] sm:$0xff]   ;;  %v8571_v6 = vld [vmem:[#allocation7 + $0x68] sm:$0xff]   ;;  %v5917_v21 = vrot.slane %v5916_v3, 1  ;;  %v5728_v42 = vadd.f32 %v5727_v27, %v5726_v8  ;;  %v5729_v8 = vsel %vm5686_vm0, %v8959_v16, 0.0 }
 0x34d   :  { %v5903_v18 = vrot.slane %v5902_v62, 1  ;;  %v8589_v16 = vld [vmem:[#allocation7 + $0x108] sm:$0xff]  }
 0x34e   :  { %5555 = vmatmul.mubr.bf16.vlgmr.msra.gmra.mrb[12].mxu0 %v8919_v38  ;;  %5678 = vmatmul.mubr.bf16.vlgmr.msra.gmra.mrb[12].mxu1 %v8919_v38  ;;  %v8561_v38 = vld [vmem:[#allocation7 + $0x10] sm:$0xff]   ;;  %v5918_v36 = vadd.f32 %v5917_v21, %v5916_v3  ;;  %v5804_v57 = vmul.f32 0.25, %v5728_v42  ;;  %v8596_v42 = vld [vmem:[#allocation7 + $0x1d8] sm:$0xff]  }
 0x34f   :  { %8298 = vmatpush3.bf16.msra.mxu0 %v8553_v11  ;;  %7087 = vmatprep.mubr.bf16.mxu0 %v6009_v61  ;;  %v5882_v11 = vrot.slane %v5881_v59, 1  ;;  %v8576_v61 = vld [vmem:[#allocation7 + $0xf0] sm:$0xff]  }
 0x350   :  { %8320 = vmatpush3.bf16.msra.mxu1 %v8554_v12  ;;  %7127 = vmatprep.mubr.bf16.mxu1 %v6011_v1  ;;  %v8573_v12 = vld [vmem:[#allocation7 + $0x28] sm:$0xff]   ;;  %v5693_v1 = vadd.f32 %v5692_v14, %v5691_v5  ;;  %v5982_v52 = vmul.f32 0.25, %v5918_v36  ;;  %v8585_v5 = vld [vmem:[#allocation7 + $0x100] sm:$0xff]   ;;  %v5906_v14 = vrot.slane %v5905_v60, 4 }
 0x351   :  { %8299 = vmatprep.subr.bf16.mxu0 %v8555_v26  ;;  %8321 = vmatprep.subr.bf16.mxu1 %v8556_v29  ;;  %v5869_v26 = vadd.f32 %v5868_v7, %v5867_v2  ;;  %v5883_v29 = vadd.f32 %v5882_v11, %v5881_v59  ;;  %v8584_v2 = vld [vmem:[#allocation7 + $0x1c0] sm:$0xff]  }
 0x352   :  { %v5799_v46 = vmul.f32 0.25, %v5693_v1  ;;  %v8592_v1 = vld [vmem:[#allocation7 + $0x1d0] sm:$0xff]  }
 0x353   :  { %8300 = vmatpush3.bf16.msra.mxu0 %v8557_v32  ;;  %v5904_v32 = vadd.f32 %v5903_v18, %v5902_v62  ;;  %v5975_v20 = vmul.f32 0.25, %v5869_v26  ;;  %v5977_v43 = vmul.f32 0.25, %v5883_v29  ;;  %v5730_v26 = vrot.slane %v5729_v8, 4  ;;  %v8591_v29 = vld [vmem:[#allocation7 + $0x150] sm:$0xff]  }
 0x354   :  { %8322 = vmatpush3.bf16.msra.mxu1 %v8558_v35  ;;  %8301 = vmatprep.subr.bf16.mxu0 %v8559_v17  ;;  %v8577_v35 = vld [vmem:[#allocation7 + $0x30] sm:$0xff]   ;;  %v5707_v17 = vadd.f32 %v5706_v19, %v5705_v0 }
 0x355   :  { %8323 = vmatprep.subr.bf16.mxu1 %v8560_v39  ;;  %v5980_v48 = vmul.f32 0.25, %v5904_v32  ;;  %v5907_v32 = vadd.f32 %v5906_v14, %v5905_v60  ;;  %v5731_v36 = vadd.f32 %v5730_v26, %v5729_v8  ;;  %v8610_v26 = vld [vmem:[#allocation7 + $0x1b0] sm:$0xff]  }
 0x356   :  { %v5801_v49 = vmul.f32 0.25, %v5707_v17  ;;  %v8593_v17 = vld [vmem:[#allocation7 + $0x110] sm:$0xff]  }
 0x357   :  { %8302 = vmatpush3.bf16.msra.mxu0 %v8561_v38  ;;  %v5997_v62 = vsel %vm5991_vm1, %v5804_v57, %v5980_v48  ;;  %v8599_v48 = vld [vmem:[#allocation7 + $0x160] sm:$0xff]  }
 0x358   :  { %8324 = vmatpush3.bf16.msra.mxu1 %v8562_v44  ;;  %8303 = vmatprep.subr.bf16.mxu0 %v8563_v45  ;;  %v5835_v44 = vrot.slane %v8957_v10, 4  ;;  %v5742_v45 = vadd.f32 %v5741_v30, %v5740_v13  ;;  %v5994_v59 = vsel %vm5991_vm1, %v5801_v49, %v5977_v43  ;;  %v8587_v13 = vld [vmem:[#allocation7 + $0x148] sm:$0xff]   ;;  %v6013_v18 = vpack.c.bf16 %v5997_v62, %v5997_v62 }
 0x359   :  { %8325 = vmatprep.subr.bf16.mxu1 %v8564_v24  ;;  %v8581_v24 = vld [vmem:[#allocation7 + $0x38] sm:$0xff]   ;;  %v6010_v11 = vpack.c.bf16 %v5994_v59, %v5994_v59  ;;  %v8603_v59 = vld [vmem:[#allocation7 + $0x168] sm:$0xff]  }
 0x35a   :  { %v5891_v56 = vsel %vm5686_vm0, %v5835_v44, 0.0  ;;  %v8604_v62 = vld [vmem:[#allocation7 + $0x1e8] sm:$0xff]  }
 0x35b   :  { %8304 = vmatpush3.bf16.msra.mxu0 %v8565_v51  ;;  %v8583_v51 = vld [vmem:[#allocation7 + $0x140] sm:$0xff]   ;;  %v5892_v7 = vrot.slane %v5891_v56, 4 }
 0x35c   :  { %8326 = vmatpush3.bf16.msra.mxu1 %v8566_v54  ;;  %8305 = vmatprep.subr.bf16.mxu0 %v8567_v55  ;;  %v5992_v55 = vsel %vm5991_vm1, %v5799_v46, %v5975_v20  ;;  %v5732_v46 = vrot.slane %v5731_v36, 2 }
 0x35d   :  { %8327 = vmatprep.subr.bf16.mxu1 %v8568_v58  ;;  %v5806_v58 = vmul.f32 0.25, %v5742_v45  ;;  %v6008_v3 = vpack.c.bf16 %v5992_v55, %v5992_v55  ;;  %v5893_v30 = vadd.f32 %v5892_v7, %v5891_v56  ;;  %v8597_v45 = vld [vmem:[#allocation7 + $0x118] sm:$0xff]   ;;  %v8601_v55 = vld [vmem:[#allocation7 + $0x120] sm:$0xff]  }
 0x35f   :  { %8306 = vmatpush3.bf16.msra.mxu0 %v8569_v63  ;;  %v5715_v63 = vsel %vm5686_vm0, %v8957_v10, 0.0 }
 0x360   :  { %8328 = vmatpush3.bf16.msra.mxu1 %v8570_v4  ;;  %8307 = vmatprep.subr.bf16.mxu0 %v8571_v6  ;;  %v8586_v4 = vld [vmem:[#allocation7 + $0x180] sm:$0xff]   ;;  %v5999_v6 = vsel %vm5991_vm1, %v5806_v58, %v5982_v52  ;;  %v5716_v19 = vrot.slane %v5715_v63, 4 }
 0x361   :  { %v9001_v28 = vpop.f32.mrb[8].mxu0  ;;  %8329 = vmatprep.subr.bf16.mxu1 %v8572_v9  ;;  %v9003_v53 = vpop.f32.mrb[8].mxu1  ;;  %v8602_v58 = vld [vmem:[#allocation7 + $0x1a0] sm:$0xff]  }
 0x362   :  { %v5312_v31 = vpop.f32.mrb[9].mxu0  ;;  %v9005_v33 = vpop.f32.mrb[9].mxu1 }
 0x363   :  { %v5314_v15 = vpop.f32.mrb[10].mxu0  ;;  %8308 = vmatpush3.bf16.msra.mxu0 %v8573_v12  ;;  %v5437_v37 = vpop.f32.mrb[10].mxu1  ;;  %v5840_v50 = vrot.slane %v5312_v31, 4  ;;  %v5842_v54 = vrot.slane %v9005_v33, 4  ;;  %v5750_v10 = vsel %vm5686_vm0, %v5312_v31, 0.0  ;;  %v8588_v12 = vld [vmem:[#allocation7 + $0x1c8] sm:$0xff]  }
 0x364   :  { %8330 = vmatpush3.bf16.msra.mxu1 %v8574_v22  ;;  %v5315_v39 = vpop.f32.mrb[11].mxu0  ;;  %8309 = vmatprep.subr.bf16.mxu0 %v8575_v23  ;;  %v5438_v38 = vpop.f32.mrb[11].mxu1  ;;  %v5764_v22 = vsel %vm5686_vm0, %v9005_v33, 0.0  ;;  %v6015_v23 = vpack.c.bf16 %v5999_v6, %v5999_v6  ;;  %v5751_v31 = vrot.slane %v5750_v10, 4  ;;  %v8605_v6 = vld [vmem:[#allocation7 + $0x128] sm:$0xff]  }
 0x365   :  { %8331 = vmatprep.subr.bf16.mxu1 %v8576_v61  ;;  %v5926_v0 = vsel %vm5686_vm0, %v5840_v50, 0.0  ;;  %v5940_v9 = vsel %vm5686_vm0, %v5842_v54, 0.0  ;;  %v8590_v61 = vld [vmem:[#allocation7 + $0x188] sm:$0xff]   ;;  %v5765_v15 = vrot.slane %v5764_v22, 4  ;;  %v8594_v39 = vld [vmem:[#allocation7 + $0x190] sm:$0xff]   ;;  %v5908_v38 = vrot.slane %v5907_v32, 2 }
 0x366   :  { %v5927_v21 = vrot.slane %v5926_v0, 4  ;;  %v5941_v27 = vrot.slane %v5940_v9, 4  ;;  %v5752_v20 = vadd.f32 %v5751_v31, %v5750_v10  ;;  %v8608_v10 = vld [vmem:[#allocation7 + $0x1f0] sm:$0xff]  }
 0x367   :  { %8310 = vmatpush3.bf16.msra.mxu0 %v8577_v35  ;;  %v5717_v35 = vadd.f32 %v5716_v19, %v5715_v63 }
 0x368   :  { %8332 = vmatpush3.bf16.msra.mxu1 %v8578_v40  ;;  %8311 = vmatprep.subr.bf16.mxu0 %v8579_v41  ;;  %v5928_v33 = vadd.f32 %v5927_v21, %v5926_v0  ;;  %v5942_v37 = vadd.f32 %v5941_v27, %v5940_v9  ;;  %v8595_v40 = vld [vmem:[#allocation7 + $0x158] sm:$0xff]   ;;  %v5894_v41 = vrot.slane %v5893_v30, 2  ;;  %v5753_v50 = vrot.slane %v5752_v20, 2  ;;  %v8606_v9 = vld [vmem:[#allocation7 + $0x1a8] sm:$0xff]  }
 0x369   :  { %8333 = vmatprep.subr.bf16.mxu1 %v8580_v25  ;;  %v5766_v25 = vadd.f32 %v5765_v15, %v5764_v22  ;;  %v5718_v43 = vrot.slane %v5717_v35, 2  ;;  %v8609_v22 = vld [vmem:[#allocation7 + $0x130] sm:$0xff]   ;;  %v8611_v27 = vld [vmem:[#allocation7 + $0x178] sm:$0xff]  }
 0x36a   :  { %v5929_v44 = vrot.slane %v5928_v33, 2  ;;  %v5943_v47 = vrot.slane %v5942_v37, 2  ;;  %v5895_v49 = vadd.f32 %v5894_v41, %v5893_v30  ;;  %v8612_v30 = vld [vmem:[#allocation7 + $0x1f8] sm:$0xff]  }
 0x36b   :  { %8312 = vmatpush3.bf16.msra.mxu0 %v8581_v24  ;;  %v8598_v24 = vld [vmem:[#allocation7 + $0x198] sm:$0xff]   ;;  %v5767_v52 = vrot.slane %v5766_v25, 2  ;;  %v5719_v57 = vadd.f32 %v5718_v43, %v5717_v35  ;;  %v5841_v35 = vrot.slane %v9003_v53, 4 }
 0x36c   :  { %8334 = vmatpush3.bf16.msra.mxu1 %v8582_v34  ;;  %8341 = vmatprep.subr.bf16.mxu0 %v8583_v51  ;;  %v8600_v34 = vld [vmem:[#allocation7 + $0x1e0] sm:$0xff]   ;;  %v5909_v51 = vadd.f32 %v5908_v38, %v5907_v32  ;;  %v5930_v54 = vadd.f32 %v5929_v44, %v5928_v33  ;;  %v5944_v56 = vadd.f32 %v5943_v47, %v5942_v37  ;;  %v5896_v60 = vrot.slane %v5895_v49, 1  ;;  %v8613_v33 = vld [vmem:[#allocation7 + $0x138] sm:$0xff]  }
 0x36d   :  { %8363 = vmatprep.subr.bf16.mxu1 %v8584_v2  ;;  %v5733_v2 = vadd.f32 %v5732_v46, %v5731_v36  ;;  %v5768_v0 = vadd.f32 %v5767_v52, %v5766_v25  ;;  %v8614_v37 = vld [vmem:[#allocation7 + $0x1b8] sm:$0xff]   ;;  %v5933_v44 = vsel %vm5686_vm0, %v5841_v35, 0.0  ;;  %v5743_v47 = vsel %vm5686_vm0, %v9001_v28, 0.0  ;;  %v8619_v52 = vld [vmem:[#allocation7 + $0x248] sm:$0xff]   ;;  %v8639_v35 = vld [vmem:[#allocation7 + $0x270] sm:$0xff]  }
 0x36e   :  { %7088 = vmatmul.mubr.bf16.vlgmr.msra.gmra.mrb[16].mxu0 %v6008_v3  ;;  %v5910_v63 = vrot.slane %v5909_v51, 1  ;;  %v5720_v3 = vrot.slane %v5719_v57, 1  ;;  %v5945_v8 = vrot.slane %v5944_v56, 1 }
 0x36f   :  { %7128 = vmatmul.mubr.bf16.vlgmr.msra.gmra.mrb[16].mxu1 %v6010_v11  ;;  %8342 = vmatpush3.bf16.msra.mxu0 %v8585_v5  ;;  %v5754_v5 = vadd.f32 %v5753_v50, %v5752_v20  ;;  %v5734_v7 = vrot.slane %v5733_v2, 1  ;;  %v8607_v11 = vld [vmem:[#allocation7 + $0x170] sm:$0xff]  }
 0x370   :  { %7167 = vmatprep.mubr.bf16.mxu0 %v6013_v18  ;;  %8364 = vmatpush3.bf16.msra.mxu1 %v8586_v4  ;;  %v5931_v4 = vrot.slane %v5930_v54, 1  ;;  %v5911_v18 = vadd.f32 %v5910_v63, %v5909_v51  ;;  %v5721_v19 = vadd.f32 %v5720_v3, %v5719_v57  ;;  %v5934_v57 = vrot.slane %v5933_v44, 4 }
 0x371   :  { %7207 = vmatprep.mubr.bf16.mxu1 %v6015_v23  ;;  %8343 = vmatprep.subr.bf16.mxu0 %v8587_v13  ;;  %v5897_v13 = vadd.f32 %v5896_v60, %v5895_v49  ;;  %v5755_v14 = vrot.slane %v5754_v5, 1  ;;  %v5735_v23 = vadd.f32 %v5734_v7, %v5733_v2  ;;  %v5744_v2 = vrot.slane %v5743_v47, 4  ;;  %v8623_v60 = vld [vmem:[#allocation7 + $0x250] sm:$0xff]  }
 0x372   :  { %8365 = vmatprep.subr.bf16.mxu1 %v8588_v12  ;;  %v5769_v12 = vrot.slane %v5768_v0, 1  ;;  %v5932_v21 = vadd.f32 %v5931_v4, %v5930_v54  ;;  %v5981_v31 = vmul.f32 0.25, %v5911_v18  ;;  %v5803_v15 = vmul.f32 0.25, %v5721_v19  ;;  %v8626_v4 = vld [vmem:[#allocation7 + $0x290] sm:$0xff]   ;;  %v8631_v18 = vld [vmem:[#allocation7 + $0x260] sm:$0xff]  }
 0x373   :  { %8344 = vmatpush3.bf16.msra.mxu0 %v8589_v16  ;;  %v5946_v16 = vadd.f32 %v5945_v8, %v5944_v56  ;;  %v5805_v36 = vmul.f32 0.25, %v5735_v23  ;;  %v8621_v56 = vld [vmem:[#allocation7 + $0x208] sm:$0xff]   ;;  %v5745_v63 = vadd.f32 %v5744_v2, %v5743_v47  ;;  %v8628_v8 = vld [vmem:[#allocation7 + $0x2d8] sm:$0xff]   ;;  %v8632_v19 = vld [vmem:[#allocation7 + $0x2e0] sm:$0xff]  }
 0x374   :  { %8366 = vmatpush3.bf16.msra.mxu1 %v8590_v61  ;;  %8345 = vmatprep.subr.bf16.mxu0 %v8591_v29  ;;  %v5979_v61 = vmul.f32 0.25, %v5897_v13  ;;  %v5756_v29 = vadd.f32 %v5755_v14, %v5754_v5  ;;  %v5770_v32 = vadd.f32 %v5769_v12, %v5768_v0  ;;  %v8625_v0 = vld [vmem:[#allocation7 + $0x210] sm:$0xff]   ;;  %v8629_v13 = vld [vmem:[#allocation7 + $0x218] sm:$0xff]   ;;  %v8633_v23 = vld [vmem:[#allocation7 + $0x220] sm:$0xff]  }
 0x375   :  { %8367 = vmatprep.subr.bf16.mxu1 %v8592_v1  ;;  %v5839_v1 = vrot.slane %v9001_v28, 4  ;;  %v5998_v43 = vsel %vm5991_vm1, %v5805_v36, %v5981_v31  ;;  %v8647_v47 = vld [vmem:[#allocation7 + $0x340] sm:$0xff]   ;;  %v8654_v2 = vld [vmem:[#allocation7 + $0x388] sm:$0xff]  }
 0x376   :  { %v5808_v41 = vmul.f32 0.25, %v5756_v29  ;;  %v5996_v20 = vsel %vm5991_vm1, %v5803_v15, %v5979_v61  ;;  %v5810_v25 = vmul.f32 0.25, %v5770_v32  ;;  %v6014_v51 = vpack.c.bf16 %v5998_v43, %v5998_v43  ;;  %v8636_v29 = vld [vmem:[#allocation7 + $0x2e8] sm:$0xff]  }
 0x377   :  { %8346 = vmatpush3.bf16.msra.mxu0 %v8593_v17  ;;  %v5984_v17 = vmul.f32 0.25, %v5932_v21  ;;  %v5919_v38 = vsel %vm5686_vm0, %v5839_v1, 0.0  ;;  %v8637_v1 = vld [vmem:[#allocation7 + $0x228] sm:$0xff]  }
 0x378   :  { %8368 = vmatpush3.bf16.msra.mxu1 %v8594_v39  ;;  %8347 = vmatprep.subr.bf16.mxu0 %v8595_v40  ;;  %v8615_v39 = vld [vmem:[#allocation7 + $0x240] sm:$0xff]   ;;  %v5986_v40 = vmul.f32 0.25, %v5946_v16  ;;  %v5920_v50 = vrot.slane %v5919_v38, 4  ;;  %v8638_v15 = vld [vmem:[#allocation7 + $0x2a8] sm:$0xff]  }
 0x379   :  { %8369 = vmatprep.subr.bf16.mxu1 %v8596_v42  ;;  %v8616_v42 = vld [vmem:[#allocation7 + $0x2c0] sm:$0xff]   ;;  %v6001_v46 = vsel %vm5991_vm1, %v5808_v41, %v5984_v17  ;;  %v8640_v17 = vld [vmem:[#allocation7 + $0x2f0] sm:$0xff]  }
 0x37a   :  { %v6003_v49 = vsel %vm5991_vm1, %v5810_v25, %v5986_v40  ;;  %v6017_v54 = vpack.c.bf16 %v6001_v46, %v6001_v46  ;;  %v5921_v5 = vadd.f32 %v5920_v50, %v5919_v38  ;;  %v8642_v41 = vld [vmem:[#allocation7 + $0x2b0] sm:$0xff]   ;;  %v8644_v38 = vld [vmem:[#allocation7 + $0x2f8] sm:$0xff]   ;;  %v8649_v50 = vld [vmem:[#allocation7 + $0x300] sm:$0xff]  }
 0x37b   :  { %8348 = vmatpush3.bf16.msra.mxu0 %v8597_v45  ;;  %v8617_v45 = vld [vmem:[#allocation7 + $0x200] sm:$0xff]   ;;  %v6019_v28 = vpack.c.bf16 %v6003_v49, %v6003_v49  ;;  %v8646_v46 = vld [vmem:[#allocation7 + $0x2b8] sm:$0xff]  }
 0x37c   :  { %8370 = vmatpush3.bf16.msra.mxu1 %v8598_v24  ;;  %8349 = vmatprep.subr.bf16.mxu0 %v8599_v48  ;;  %v6012_v24 = vpack.c.bf16 %v5996_v20, %v5996_v20  ;;  %v8618_v48 = vld [vmem:[#allocation7 + $0x280] sm:$0xff]   ;;  %v5922_v7 = vrot.slane %v5921_v5, 2  ;;  %v8643_v20 = vld [vmem:[#allocation7 + $0x278] sm:$0xff]  }
 0x37d   :  { %8371 = vmatprep.subr.bf16.mxu1 %v8600_v34  ;;  %v5757_v34 = vsel %vm5686_vm0, %v9003_v53, 0.0  ;;  %v8624_v53 = vld [vmem:[#allocation7 + $0x2d0] sm:$0xff]  }
 0x37e   :  { %v5923_v12 = vadd.f32 %v5922_v7, %v5921_v5  ;;  %v8660_v5 = vld [vmem:[#allocation7 + $0x3d8] sm:$0xff]   ;;  %v8668_v7 = vld [vmem:[#allocation7 + $0x3e8] sm:$0xff]  }
 0x37f   :  { %8350 = vmatpush3.bf16.msra.mxu0 %v8601_v55  ;;  %v8620_v55 = vld [vmem:[#allocation7 + $0x2c8] sm:$0xff]  }
 0x380   :  { %8372 = vmatpush3.bf16.msra.mxu1 %v8602_v58  ;;  %8351 = vmatprep.subr.bf16.mxu0 %v8603_v59  ;;  %v5758_v58 = vrot.slane %v5757_v34, 4  ;;  %v8622_v59 = vld [vmem:[#allocation7 + $0x288] sm:$0xff]   ;;  %v5924_v61 = vrot.slane %v5923_v12, 1 }
 0x381   :  { %8373 = vmatprep.subr.bf16.mxu1 %v8604_v62  ;;  %v5935_v62 = vadd.f32 %v5934_v57, %v5933_v44  ;;  %v8645_v44 = vld [vmem:[#allocation7 + $0x238] sm:$0xff]  }
 0x382   :  { %v5759_v3 = vadd.f32 %v5758_v58, %v5757_v34  ;;  %v8657_v58 = vld [vmem:[#allocation7 + $0x310] sm:$0xff]  }
 0x383   :  { %8352 = vmatpush3.bf16.msra.mxu0 %v8605_v6  ;;  %v8627_v6 = vld [vmem:[#allocation7 + $0x258] sm:$0xff]  }
 0x384   :  { %8374 = vmatpush3.bf16.msra.mxu1 %v8606_v9  ;;  %8353 = vmatprep.subr.bf16.mxu0 %v8607_v11  ;;  %v5936_v9 = vrot.slane %v5935_v62, 2  ;;  %v5746_v11 = vrot.slane %v5745_v63, 2  ;;  %v5760_v14 = vrot.slane %v5759_v3, 2 }
 0x385   :  { %8375 = vmatprep.subr.bf16.mxu1 %v8608_v10  ;;  %v8630_v10 = vld [vmem:[#allocation7 + $0x298] sm:$0xff]  }
 0x386   :  { %v5937_v21 = vadd.f32 %v5936_v9, %v5935_v62  ;;  %v5761_v16 = vadd.f32 %v5760_v14, %v5759_v3  ;;  %v8662_v62 = vld [vmem:[#allocation7 + $0x398] sm:$0xff]   ;;  %v8665_v3 = vld [vmem:[#allocation7 + $0x320] sm:$0xff]   ;;  %v8670_v9 = vld [vmem:[#allocation7 + $0x3a8] sm:$0xff]  }
 0x387   :  { %8354 = vmatpush3.bf16.msra.mxu0 %v8609_v22  ;;  %v5747_v22 = vadd.f32 %v5746_v11, %v5745_v63  ;;  %v8663_v63 = vld [vmem:[#allocation7 + $0x360] sm:$0xff]   ;;  %v8671_v11 = vld [vmem:[#allocation7 + $0x370] sm:$0xff]  }
 0x388   :  { %8376 = vmatpush3.bf16.msra.mxu1 %v8610_v26  ;;  %8355 = vmatprep.subr.bf16.mxu0 %v8611_v27  ;;  %v8634_v26 = vld [vmem:[#allocation7 + $0x2a0] sm:$0xff]   ;;  %v8635_v27 = vld [vmem:[#allocation7 + $0x268] sm:$0xff]   ;;  %v5762_v32 = vrot.slane %v5761_v16, 1  ;;  %v8673_v14 = vld [vmem:[#allocation7 + $0x330] sm:$0xff]  }
 0x389   :  { %8377 = vmatprep.subr.bf16.mxu1 %v8612_v30  ;;  %v5938_v30 = vrot.slane %v5937_v21, 1  ;;  %v5748_v31 = vrot.slane %v5747_v22, 1 }
 0x38a   :  { %v5763_v40 = vadd.f32 %v5762_v32, %v5761_v16 }
 0x38b   :  { %8356 = vmatpush3.bf16.msra.mxu0 %v8613_v33  ;;  %v5925_v33 = vadd.f32 %v5924_v61, %v5923_v12  ;;  %v5939_v36 = vadd.f32 %v5938_v30, %v5937_v21  ;;  %v8676_v12 = vld [vmem:[#allocation7 + $0x3f8] sm:$0xff]  }
 0x38c   :  { %8378 = vmatpush3.bf16.msra.mxu1 %v8614_v37  ;;  %8385 = vmatprep.subr.bf16.mxu0 %v8615_v39  ;;  %v5749_v37 = vadd.f32 %v5748_v31, %v5747_v22  ;;  %v8641_v39 = vld [vmem:[#allocation7 + $0x230] sm:$0xff]   ;;  %v8678_v21 = vld [vmem:[#allocation7 + $0x3b8] sm:$0xff]  }
 0x38d   :  { %8407 = vmatprep.subr.bf16.mxu1 %v8616_v42  ;;  %v5983_v42 = vmul.f32 0.25, %v5925_v33  ;;  %v5985_v25 = vmul.f32 0.25, %v5939_v36 }
 0x38e   :  { %7168 = vmatmul.mubr.bf16.vlgmr.msra.gmra.mrb[20].mxu0 %v6012_v24  ;;  %v5807_v43 = vmul.f32 0.25, %v5749_v37 }
 0x38f   :  { %7208 = vmatmul.mubr.bf16.vlgmr.msra.gmra.mrb[20].mxu1 %v6014_v51  ;;  %8386 = vmatpush3.bf16.msra.mxu0 %v8617_v45  ;;  %v5809_v45 = vmul.f32 0.25, %v5763_v40  ;;  %v8650_v51 = vld [vmem:[#allocation7 + $0x380] sm:$0xff]  }
 0x390   :  { %7247 = vmatprep.mubr.bf16.mxu0 %v6017_v54  ;;  %8408 = vmatpush3.bf16.msra.mxu1 %v8618_v48  ;;  %v6000_v24 = vsel %vm5991_vm1, %v5807_v43, %v5983_v42  ;;  %v8648_v48 = vld [vmem:[#allocation7 + $0x3c0] sm:$0xff]   ;;  %v8652_v54 = vld [vmem:[#allocation7 + $0x3c8] sm:$0xff]  }
 0x391   :  { %7287 = vmatprep.mubr.bf16.mxu1 %v6019_v28  ;;  %8387 = vmatprep.subr.bf16.mxu0 %v8619_v52  ;;  %v6002_v49 = vsel %vm5991_vm1, %v5809_v45, %v5985_v25  ;;  %v6016_v34 = vpack.c.bf16 %v6000_v24, %v6000_v24  ;;  %v8651_v52 = vld [vmem:[#allocation7 + $0x348] sm:$0xff]   ;;  %v8655_v28 = vld [vmem:[#allocation7 + $0x350] sm:$0xff]  }
 0x392   :  { %8409 = vmatprep.subr.bf16.mxu1 %v8620_v55  ;;  %v6018_v57 = vpack.c.bf16 %v6002_v49, %v6002_v49  ;;  %v8653_v55 = vld [vmem:[#allocation7 + $0x308] sm:$0xff]  }
 0x393   :  { %8388 = vmatpush3.bf16.msra.mxu0 %v8621_v56  ;;  %v8656_v56 = vld [vmem:[#allocation7 + $0x3d0] sm:$0xff]  }
 0x394   :  { %8410 = vmatpush3.bf16.msra.mxu1 %v8622_v59  ;;  %8389 = vmatprep.subr.bf16.mxu0 %v8623_v60  ;;  %v8658_v59 = vld [vmem:[#allocation7 + $0x390] sm:$0xff]   ;;  %v8659_v60 = vld [vmem:[#allocation7 + $0x358] sm:$0xff]  }
 0x395   :  { %8411 = vmatprep.subr.bf16.mxu1 %v8624_v53  ;;  %v8661_v53 = vld [vmem:[#allocation7 + $0x318] sm:$0xff]  }
 0x397   :  { %8390 = vmatpush3.bf16.msra.mxu0 %v8625_v0  ;;  %v8664_v0 = vld [vmem:[#allocation7 + $0x3e0] sm:$0xff]  }
 0x398   :  { %8412 = vmatpush3.bf16.msra.mxu1 %v8626_v4  ;;  %8391 = vmatprep.subr.bf16.mxu0 %v8627_v6  ;;  %v8666_v4 = vld [vmem:[#allocation7 + $0x3a0] sm:$0xff]   ;;  %v8667_v6 = vld [vmem:[#allocation7 + $0x368] sm:$0xff]  }
 0x399   :  { %8413 = vmatprep.subr.bf16.mxu1 %v8628_v8  ;;  %v8669_v8 = vld [vmem:[#allocation7 + $0x328] sm:$0xff]  }
 0x39b   :  { %8392 = vmatpush3.bf16.msra.mxu0 %v8629_v13  ;;  %v8672_v13 = vld [vmem:[#allocation7 + $0x3f0] sm:$0xff]  }
 0x39c   :  { %8414 = vmatpush3.bf16.msra.mxu1 %v8630_v10  ;;  %8393 = vmatprep.subr.bf16.mxu0 %v8631_v18  ;;  %v8674_v10 = vld [vmem:[#allocation7 + $0x3b0] sm:$0xff]   ;;  %v8675_v18 = vld [vmem:[#allocation7 + $0x378] sm:$0xff]  }
 0x39d   :  { %8415 = vmatprep.subr.bf16.mxu1 %v8632_v19  ;;  %v8677_v19 = vld [vmem:[#allocation7 + $0x338] sm:$0xff]  }
 0x39f   :  { %8394 = vmatpush3.bf16.msra.mxu0 %v8633_v23 }
 0x3a0   :  { %8416 = vmatpush3.bf16.msra.mxu1 %v8634_v26  ;;  %8395 = vmatprep.subr.bf16.mxu0 %v8635_v27 }
 0x3a1   :  { %8417 = vmatprep.subr.bf16.mxu1 %v8636_v29 }
 0x3a3   :  { %8396 = vmatpush3.bf16.msra.mxu0 %v8637_v1 }
 0x3a4   :  { %8418 = vmatpush3.bf16.msra.mxu1 %v8638_v15  ;;  %8397 = vmatprep.subr.bf16.mxu0 %v8639_v35 }
 0x3a5   :  { %8419 = vmatprep.subr.bf16.mxu1 %v8640_v17 }
 0x3a7   :  { %8398 = vmatpush3.bf16.msra.mxu0 %v8641_v39 }
 0x3a8   :  { %8420 = vmatpush3.bf16.msra.mxu1 %v8642_v41  ;;  %8399 = vmatprep.subr.bf16.mxu0 %v8643_v20 }
 0x3a9   :  { %8421 = vmatprep.subr.bf16.mxu1 %v8644_v38 }
 0x3ab   :  { %8400 = vmatpush3.bf16.msra.mxu0 %v8645_v44 }
 0x3ac   :  { %8422 = vmatpush3.bf16.msra.mxu1 %v8646_v46  ;;  %8429 = vmatprep.subr.bf16.mxu0 %v8647_v47 }
 0x3ad   :  { %8451 = vmatprep.subr.bf16.mxu1 %v8648_v48 }
 0x3ae   :  { %7248 = vmatmul.mubr.bf16.vlgmr.msra.gmra.mrb[24].mxu0 %v6016_v34 }
 0x3af   :  { %7288 = vmatmul.mubr.bf16.vlgmr.msra.gmra.mrb[24].mxu1 %v6018_v57  ;;  %8430 = vmatpush3.bf16.msra.mxu0 %v8649_v50 }
 0x3b0   :  { %8452 = vmatpush3.bf16.msra.mxu1 %v8650_v51  ;;  %8431 = vmatprep.subr.bf16.mxu0 %v8651_v52 }
 0x3b1   :  { %8453 = vmatprep.subr.bf16.mxu1 %v8652_v54 }
 0x3b3   :  { %8432 = vmatpush3.bf16.msra.mxu0 %v8653_v55 }
 0x3b4   :  { %8454 = vmatpush3.bf16.msra.mxu1 %v8654_v2  ;;  %8433 = vmatprep.subr.bf16.mxu0 %v8655_v28 }
 0x3b5   :  { %8455 = vmatprep.subr.bf16.mxu1 %v8656_v56 }
 0x3b7   :  { %8434 = vmatpush3.bf16.msra.mxu0 %v8657_v58 }
 0x3b8   :  { %8456 = vmatpush3.bf16.msra.mxu1 %v8658_v59  ;;  %8435 = vmatprep.subr.bf16.mxu0 %v8659_v60 }
 0x3b9   :  { %8457 = vmatprep.subr.bf16.mxu1 %v8660_v5 }
 0x3bb   :  { %8436 = vmatpush3.bf16.msra.mxu0 %v8661_v53 }
 0x3bc   :  { %8458 = vmatpush3.bf16.msra.mxu1 %v8662_v62  ;;  %8437 = vmatprep.subr.bf16.mxu0 %v8663_v63 }
 0x3bd   :  { %8459 = vmatprep.subr.bf16.mxu1 %v8664_v0 }
 0x3bf   :  { %8438 = vmatpush3.bf16.msra.mxu0 %v8665_v3 }
 0x3c0   :  { %8460 = vmatpush3.bf16.msra.mxu1 %v8666_v4  ;;  %8439 = vmatprep.subr.bf16.mxu0 %v8667_v6 }
 0x3c1   :  { %8461 = vmatprep.subr.bf16.mxu1 %v8668_v7 }
 0x3c3   :  { %8440 = vmatpush3.bf16.msra.mxu0 %v8669_v8 }
 0x3c4   :  { %8462 = vmatpush3.bf16.msra.mxu1 %v8670_v9  ;;  %8441 = vmatprep.subr.bf16.mxu0 %v8671_v11 }
 0x3c5   :  { %8463 = vmatprep.subr.bf16.mxu1 %v8672_v13 }
 0x3c7   :  { %8442 = vmatpush3.bf16.msra.mxu0 %v8673_v14 }
 0x3c8   :  { %8464 = vmatpush3.bf16.msra.mxu1 %v8674_v10  ;;  %8443 = vmatprep.subr.bf16.mxu0 %v8675_v18 }
 0x3c9   :  { %8465 = vmatprep.subr.bf16.mxu1 %v8676_v12 }
 0x3cb   :  { %8444 = vmatpush3.bf16.msra.mxu0 %v8677_v19 }
 0x3cc   :  { %8466 = vmatpush3.bf16.msra.mxu1 %v8678_v21 }
 0x421   :  { %v5556_v22 = vpop.f32.mrb[12].mxu0  ;;  %v5679_v26 = vpop.f32.mrb[12].mxu1 }
 0x422   :  { %v5771_v23 = vsel %vm5686_vm0, %v5556_v22, 0.0  ;;  %v5843_v16 = vrot.slane %v5556_v22, 4  ;;  %v5558_v27 = vpop.f32.mrb[13].mxu0  ;;  %v5785_v29 = vsel %vm5686_vm0, %v5679_v26, 0.0  ;;  %v5845_v30 = vrot.slane %v5679_v26, 4  ;;  %v5681_v1 = vpop.f32.mrb[13].mxu1 }
 0x423   :  { %v5772_v61 = vrot.slane %v5771_v23, 4  ;;  %v5778_v31 = vsel %vm5686_vm0, %v5558_v27, 0.0  ;;  %v5560_v32 = vpop.f32.mrb[14].mxu0  ;;  %v5786_v35 = vrot.slane %v5785_v29, 4  ;;  %v5844_v17 = vrot.slane %v5558_v27, 4  ;;  %v5683_v36 = vpop.f32.mrb[14].mxu1 }
 0x424   :  { %v5947_v15 = vsel %vm5686_vm0, %v5843_v16, 0.0  ;;  %v5779_v33 = vrot.slane %v5778_v31, 4  ;;  %v5561_v37 = vpop.f32.mrb[15].mxu0  ;;  %v5961_v41 = vsel %vm5686_vm0, %v5845_v30, 0.0  ;;  %v5792_v20 = vsel %vm5686_vm0, %v5681_v1, 0.0  ;;  %v5684_v42 = vpop.f32.mrb[15].mxu1 }
 0x425   :  { %v5773_v39 = vadd.f32 %v5772_v61, %v5771_v23  ;;  %v5948_v40 = vrot.slane %v5947_v15, 4  ;;  %v5787_v38 = vadd.f32 %v5786_v35, %v5785_v29  ;;  %v5962_v25 = vrot.slane %v5961_v41, 4 }
 0x426   :  { %v5780_v43 = vadd.f32 %v5779_v33, %v5778_v31  ;;  %v5954_v44 = vsel %vm5686_vm0, %v5844_v17, 0.0  ;;  %v5793_v24 = vrot.slane %v5792_v20, 4  ;;  %v5846_v34 = vrot.slane %v5681_v1, 4 }
 0x427   :  { %v5774_v45 = vrot.slane %v5773_v39, 2  ;;  %v5949_v46 = vadd.f32 %v5948_v40, %v5947_v15  ;;  %v5955_v47 = vrot.slane %v5954_v44, 4  ;;  %v5788_v48 = vrot.slane %v5787_v38, 2 }
 0x428   :  { %v5963_v49 = vadd.f32 %v5962_v25, %v5961_v41  ;;  %v5781_v50 = vrot.slane %v5780_v43, 2  ;;  %v5794_v54 = vadd.f32 %v5793_v24, %v5792_v20  ;;  %v5968_v56 = vsel %vm5686_vm0, %v5846_v34, 0.0 }
 0x429   :  { %v5775_v51 = vadd.f32 %v5774_v45, %v5773_v39  ;;  %v5950_v52 = vrot.slane %v5949_v46, 2  ;;  %v5956_v57 = vadd.f32 %v5955_v47, %v5954_v44  ;;  %v5789_v55 = vadd.f32 %v5788_v48, %v5787_v38  ;;  %v8168_v38 = vld [vmem:[#allocation8] ss:$0 sm:$0xff] }
 0x42a   :  { %v5964_v2 = vrot.slane %v5963_v49, 2  ;;  %v5782_v28 = vadd.f32 %v5781_v50, %v5780_v43  ;;  %v5795_v5 = vrot.slane %v5794_v54, 2  ;;  %v5969_v63 = vrot.slane %v5968_v56, 4 }
 0x42b   :  { %v5776_v58 = vrot.slane %v5775_v51, 1  ;;  %v5951_v59 = vadd.f32 %v5950_v52, %v5949_v46  ;;  %v5957_v60 = vrot.slane %v5956_v57, 2  ;;  %v5790_v11 = vrot.slane %v5789_v55, 1 }
 0x42c   :  { %v5965_v53 = vadd.f32 %v5964_v2, %v5963_v49  ;;  %v5783_v62 = vrot.slane %v5782_v28, 1  ;;  %v5796_v4 = vadd.f32 %v5795_v5, %v5794_v54  ;;  %v5970_v8 = vadd.f32 %v5969_v63, %v5968_v56 }
 0x42d   :  { %v5952_v0 = vrot.slane %v5951_v59, 1  ;;  %v5958_v3 = vadd.f32 %v5957_v60, %v5956_v57  ;;  %v5777_v6 = vadd.f32 %v5776_v58, %v5775_v51  ;;  %v5791_v16 = vadd.f32 %v5790_v11, %v5789_v55 }
 0x42e   :  { %v5966_v7 = vrot.slane %v5965_v53, 1  ;;  %v5784_v13 = vadd.f32 %v5783_v62, %v5782_v28  ;;  %v5797_v10 = vrot.slane %v5796_v4, 1  ;;  %v5971_v18 = vrot.slane %v5970_v8, 2 }
 0x42f   :  { %v5953_v9 = vadd.f32 %v5952_v0, %v5951_v59  ;;  %v5959_v14 = vrot.slane %v5958_v3, 1  ;;  %v5811_v22 = vmul.f32 0.25, %v5777_v6  ;;  %v5813_v35 = vmul.f32 0.25, %v5791_v16 }
 0x430   :  { %v5967_v19 = vadd.f32 %v5966_v7, %v5965_v53  ;;  %v5972_v23 = vadd.f32 %v5971_v18, %v5970_v8  ;;  %v5812_v26 = vmul.f32 0.25, %v5784_v13  ;;  %v5798_v61 = vadd.f32 %v5797_v10, %v5796_v4 }
 0x431   :  { %v5987_v12 = vmul.f32 0.25, %v5953_v9  ;;  %v5960_v21 = vadd.f32 %v5959_v14, %v5958_v3 }
 0x432   :  { %v5973_v29 = vrot.slane %v5972_v23, 1  ;;  %v5989_v31 = vmul.f32 0.25, %v5967_v19  ;;  %v5814_v17 = vmul.f32 0.25, %v5798_v61 }
 0x433   :  { %v5988_v27 = vmul.f32 0.25, %v5960_v21  ;;  %v6004_v30 = vsel %vm5991_vm1, %v5811_v22, %v5987_v12 }
 0x434   :  { %v5974_v32 = vadd.f32 %v5973_v29, %v5972_v23  ;;  %v6020_v33 = vpack.c.bf16 %v6004_v30, %v6004_v30  ;;  %v6006_v37 = vsel %vm5991_vm1, %v5813_v35, %v5989_v31 }
 0x435   :  { %v6005_v1 = vsel %vm5991_vm1, %v5812_v26, %v5988_v27  ;;  %v6022_v41 = vpack.c.bf16 %v6006_v37, %v6006_v37 }
 0x436   :  { %v6021_v15 = vpack.c.bf16 %v6005_v1, %v6005_v1  ;;  %v5990_v36 = vmul.f32 0.25, %v5974_v32 }
 0x438   :  { %7327 = vmatprep.mubr.bf16.mxu0 %v6021_v15  ;;  %v6007_v39 = vsel %vm5991_vm1, %v5814_v17, %v5990_v36 }
 0x439   :  { %7328 = vmatmul.mubr.bf16.vlgmr.msra.gmra.mrb[28].mxu0 %v6020_v33  ;;  %v6023_v40 = vpack.c.bf16 %v6007_v39, %v6007_v39 }
 0x43b   :  { %7367 = vmatprep.mubr.bf16.mxu1 %v6023_v40 }
 0x43c   :  { %7368 = vmatmul.mubr.bf16.vlgmr.msra.gmra.mrb[28].mxu1 %v6022_v41 }
 0x441   :  { %v8313_v20 = vpop.f32.mrb[16].mxu0 }
 0x442   :  { %v8335_v42 = vpop.f32.mrb[16].mxu1  ;;  %v8314_v25 = vpop.f32.mrb[17].mxu0 }
 0x443   :  { %v8315_v43 = vadd.f32 %v8314_v25, %v8313_v20  ;;  %v8336_v44 = vpop.f32.mrb[17].mxu1  ;;  %v8316_v45 = vpop.f32.mrb[18].mxu0 }
 0x444   :  { %v8337_v46 = vadd.f32 %v8336_v44, %v8335_v42  ;;  %v8338_v47 = vpop.f32.mrb[18].mxu1  ;;  %v8317_v24 = vpop.f32.mrb[19].mxu0 }
 0x445   :  { %v7090_v48 = vadd.f32 %v8315_v43, %v8168_v38  ;;  %v8339_v49 = vpop.f32.mrb[19].mxu1 }
 0x447   :  { %v7130_v50 = vadd.f32 %v8337_v46, %v7090_v48 }
 0x461   :  { %v8357_v34 = vpop.f32.mrb[20].mxu0 }
 0x462   :  { %v8379_v51 = vpop.f32.mrb[20].mxu1  ;;  %v8358_v52 = vpop.f32.mrb[21].mxu0 }
 0x463   :  { %v8359_v57 = vadd.f32 %v8358_v52, %v8357_v34  ;;  %v8380_v54 = vpop.f32.mrb[21].mxu1  ;;  %v8360_v55 = vpop.f32.mrb[22].mxu0 }
 0x464   :  { %v8381_v2 = vadd.f32 %v8380_v54, %v8379_v51  ;;  %v8382_v28 = vpop.f32.mrb[22].mxu1  ;;  %v8361_v56 = vpop.f32.mrb[23].mxu0 }
 0x465   :  { %v7170_v58 = vadd.f32 %v8359_v57, %v7130_v50  ;;  %v8383_v59 = vpop.f32.mrb[23].mxu1 }
 0x467   :  { %v7210_v60 = vadd.f32 %v8381_v2, %v7170_v58 }
 0x481   :  { %v8401_v5 = vpop.f32.mrb[24].mxu0 }
 0x482   :  { %v8423_v53 = vpop.f32.mrb[24].mxu1  ;;  %v8402_v62 = vpop.f32.mrb[25].mxu0 }
 0x483   :  { %v8403_v63 = vadd.f32 %v8402_v62, %v8401_v5  ;;  %v8424_v0 = vpop.f32.mrb[25].mxu1  ;;  %v8404_v3 = vpop.f32.mrb[26].mxu0 }
 0x484   :  { %v8425_v4 = vadd.f32 %v8424_v0, %v8423_v53  ;;  %v8426_v6 = vpop.f32.mrb[26].mxu1  ;;  %v8405_v7 = vpop.f32.mrb[27].mxu0 }
 0x485   :  { %v7250_v8 = vadd.f32 %v8403_v63, %v7210_v60  ;;  %v8427_v9 = vpop.f32.mrb[27].mxu1 }
 0x487   :  { %v7290_v11 = vadd.f32 %v8425_v4, %v7250_v8 }
 0x50c   :  { %v8445_v13 = vpop.f32.mrb[28].mxu0 }
 0x50d   :  { %v8446_v14 = vpop.f32.mrb[29].mxu0 }
 0x50e   :  { %v8447_v10 = vadd.f32 %v8446_v14, %v8445_v13  ;;  %v8448_v18 = vpop.f32.mrb[30].mxu0 }
 0x50f   :  { %v8449_v12 = vpop.f32.mrb[31].mxu0  ;;  %v8467_v21 = vpop.f32.mrb[28].mxu1 }
 0x510   :  { %v7330_v19 = vadd.f32 %v8447_v10, %v7290_v11  ;;  %v8468_v22 = vpop.f32.mrb[29].mxu1 }
 0x511   :  { %v8469_v23 = vadd.f32 %v8468_v22, %v8467_v21  ;;  %v8470_v16 = vpop.f32.mrb[30].mxu1 }
 0x512   :  { %v8471_v26 = vpop.f32.mrb[31].mxu1 }
 0x513   :  { %v7370_v27 = vadd.f32 %v8469_v23, %v7330_v19 }
 0x515   :  { %v7375_v61 = vpack.c.bf16 %v7370_v27, %v7370_v27 }
 0x517   :  { %7376 = vst [vmem:[#allocation10] sm:$0x1] %v7375_v61 }
 0x518   :  { %8778 = shalt.err (!%p8775_p8)
}
 0x519   :  { %s8779_s16 = scalar_lea.hbm %s9067_s4, 16 }
 0x51a   :  { %p8780_p9 = scmp.ne.s32.totalorder %s9067_s4, %s8779_s16  ;;  %p8783_p10 = scmp.lt.u32.totalorder %s8779_s16, %s9067_s4 }
 0x51c   :  { %p8785_p11 = pnand %p8783_p10, %p8780_p9 }
 0x51e   :  { %8788 = shalt.err (!%p8785_p11)
}
 0x51f   :  { %7386 = dma.vmem_to_hbm [thread:$0]  %s7384_s12, 16, %s9067_s4, [#allocation4]  }
 0x520   :  { %8795 = dma.done.wait [#allocation4], 16  }
 0x521   :  { %8796 = vsyncadd [#allocation4], 4294967280 }
 0x522   :  { %7390 = vsyncpa [#allocation3], 1 }
 0x523   :  { %7391 = vsyncpa [#allocation6], 1 }
 0x524   :  { %7392 = vsyncpa [#allocation9], 1 }
 0x525   :  { %7393 = vsyncpa [#allocation4], 1 }

</bundles_post_ra>
